<compile_context>
chip_gen: v7x
topology: tpu7x:2x2x1
jax: 0.10.0
libtpu: 0.0.40
codegen_flags: <defaults>
</compile_context>

<pallas_src>
import jax
import jax.numpy as jnp
from jax import lax
from jax.experimental import pallas as pl
from jax.experimental.pallas import tpu as pltpu

BP = 8  # padded batch = f32 sublane count


# ----------------------------------------------------------------------------
# Fused kernel: embedding gather + 2-layer bi-LSTM + time max-pool + Linear.
# Single invocation (no grid); all operands whole-array resident.
# Gate columns are pre-permuted host-side to [i, f, o, g] (PyTorch order is
# i, f, g, o), and fwd|bwd W_ih / bias are pre-concatenated along columns.
# ----------------------------------------------------------------------------
def make_fused_kernel(T, B, Bp, H, num_layers):
    G = 4 * H  # per-direction gate width (= 128 for H = 32)
    n_w = 4 * num_layers

    def kernel(*refs):
        tok_ref = refs[0]                    # (B, T) int32, SMEM
        emb_ref = refs[1]                    # (V, 1, E) f32, VMEM
        w_refs = refs[2:2 + n_w]             # per layer: wih, whh_f, whh_b, bias
        fc_w_ref = refs[2 + n_w]             # (2H, H)
        fc_b_ref = refs[3 + n_w]             # (1, H)
        out_ref = refs[4 + n_w]              # (Bp, H)
        x_scr = refs[5 + n_w]                # (T*Bp, E) VMEM scratch (layer-0 input)
        xh_scr = refs[6 + n_w] if num_layers > 1 else None  # (T*Bp, 2H) VMEM scratch

        # ---- Embedding gather prologue (tokens in SMEM, rows in VMEM). ----
        x_scr[...] = jnp.zeros_like(x_scr)   # zero the Bp-padding rows
        for t in range(T):                   # T*B = 16 static row copies
            for b in range(B):
                tok = tok_ref[b, t]                      # SMEM scalar read
                x_scr[t * Bp + b:t * Bp + b + 1, :] = emb_ref[tok]  # (1, E)

        x_flat = x_scr[...]                                          # (T*Bp, E)

        pool_f = pool_b = None
        for layer in range(num_layers):
            wih = w_refs[4 * layer + 0][...]   # (Din, 8H)  cols = [fwd 4H | bwd 4H]
            whh_f = w_refs[4 * layer + 1][...] # (H, 4H)
            whh_b = w_refs[4 * layer + 2][...] # (H, 4H)
            bias = w_refs[4 * layer + 3][...]  # (1, 8H)
            last = layer + 1 == num_layers

            # Hoisted fwd+bwd input projection: one matmul per layer, off the
            # recurrent critical path.
            gin = jnp.dot(x_flat, wih, preferred_element_type=jnp.float32) + bias
            gin_f = gin[:, :G]                 # (T*Bp, 4H)
            gin_b = gin[:, G:]                 # (T*Bp, 4H)

            h_f = jnp.zeros((Bp, H), jnp.float32)
            c_f = jnp.zeros((Bp, H), jnp.float32)
            h_b = jnp.zeros((Bp, H), jnp.float32)
            c_b = jnp.zeros((Bp, H), jnp.float32)

            for s in range(T):                 # T tiny & static -> full unroll
                tf = s                         # forward timestep
                tb = T - 1 - s                 # backward timestep
                # Two independent MXU ops per step -> scheduler interleaves.
                g_f = gin_f[tf * Bp:(tf + 1) * Bp, :] + jnp.dot(
                    h_f, whh_f, preferred_element_type=jnp.float32)
                g_b = gin_b[tb * Bp:(tb + 1) * Bp, :] + jnp.dot(
                    h_b, whh_b, preferred_element_type=jnp.float32)
                # Gate order [i, f, o, g]: one sigmoid + one tanh per direction.
                sfo_f = jax.nn.sigmoid(g_f[:, :3 * H])
                sfo_b = jax.nn.sigmoid(g_b[:, :3 * H])
                gg_f = jnp.tanh(g_f[:, 3 * H:])
                gg_b = jnp.tanh(g_b[:, 3 * H:])
                c_f = sfo_f[:, H:2 * H] * c_f + sfo_f[:, :H] * gg_f
                c_b = sfo_b[:, H:2 * H] * c_b + sfo_b[:, :H] * gg_b
                h_f = sfo_f[:, 2 * H:] * jnp.tanh(c_f)
                h_b = sfo_b[:, 2 * H:] * jnp.tanh(c_b)

                if last:
                    # Fold the global max-pool over time as we go.
                    pool_f = h_f if s == 0 else jnp.maximum(pool_f, h_f)
                    pool_b = h_b if s == 0 else jnp.maximum(pool_b, h_b)
                else:
                    # Inter-layer activation handoff via VMEM scratch.
                    # TODO(synk): nn.LSTM inter-layer dropout(0.3) is
                    #             training-only; omitted (eval semantics).
                    xh_scr[tf * Bp:(tf + 1) * Bp, 0:H] = h_f
                    xh_scr[tb * Bp:(tb + 1) * Bp, H:2 * H] = h_b

            if not last:
                x_flat = xh_scr[...]                               # (T*Bp, 2H)

        pooled = jnp.concatenate([pool_f, pool_b], axis=-1)        # (Bp, 2H)
        out_ref[...] = (
            jnp.dot(pooled, fc_w_ref[...], preferred_element_type=jnp.float32)
            + fc_b_ref[...]
        ).astype(out_ref.dtype)

    return kernel


# ----------------------------------------------------------------------------
# Full forward: one Pallas call, nothing else.
# ----------------------------------------------------------------------------
@jax.jit
def bilstm_kmer_branch_forward(tokens, packed):
    B, T = tokens.shape
    emb = packed["emb"]
    V, E = emb.shape
    layers = packed["layers"]
    num_layers = len(layers)
    H = layers[0]["whh_f"].shape[0]
    Bp = BP

    emb3 = emb.reshape(V, 1, E)  # leading-dim dynamic indexing inside the kernel

    flat_weights = []
    for lp in layers:
        flat_weights.extend([lp["wih"], lp["whh_f"], lp["whh_b"], lp["bias"]])

    n_vmem_in = 1 + len(flat_weights) + 2    # emb3, weights, fc_w_t, fc_b
    in_specs = ([pl.BlockSpec(memory_space=pltpu.MemorySpace.SMEM)]
                + [pl.BlockSpec(memory_space=pltpu.MemorySpace.VMEM)] * n_vmem_in)
    scratch_shapes = [pltpu.VMEM((T * Bp, E), jnp.float32)]
    if num_layers > 1:
        scratch_shapes.append(pltpu.VMEM((T * Bp, 2 * H), jnp.float32))

    out = pl.pallas_call(
        make_fused_kernel(T, B, Bp, H, num_layers),
        out_shape=jax.ShapeDtypeStruct((Bp, H), jnp.float32),
        in_specs=in_specs,
        out_specs=pl.BlockSpec(memory_space=pltpu.MemorySpace.VMEM),
        scratch_shapes=scratch_shapes,
    )(tokens, emb3, *flat_weights, packed["fc_w_t"], packed["fc_b"])
    return out[:B]                            # drop the batch padding rows


# ----------------------------------------------------------------------------
# Pure-JAX reference (lax.scan, HIGHEST-precision matmuls) for correctness.
# ----------------------------------------------------------------------------
def _ref_lstm_dir(x_tbe, wih_t, whh_t, bias):
    B = x_tbe.shape[1]
    H = whh_t.shape[0]

    def step(carry, x_t):
        h, c = carry
        g = (jnp.dot(x_t, wih_t, precision=lax.Precision.HIGHEST)
             + jnp.dot(h, whh_t, precision=lax.Precision.HIGHEST) + bias[0])
        i_g = jax.nn.sigmoid(g[:, :H])
        f_g = jax.nn.sigmoid(g[:, H:2 * H])
        g_g = jnp.tanh(g[:, 2 * H:3 * H])
        o_g = jax.nn.sigmoid(g[:, 3 * H:])
        c = f_g * c + i_g * g_g
        h = o_g * jnp.tanh(c)
        return (h, c), h

    init = (jnp.zeros((B, H), jnp.float32), jnp.zeros((B, H), jnp.float32))
    _, hs = lax.scan(step, init, x_tbe)
    return hs


def reference_forward(tokens, params):
    x = jnp.take(params["emb"], tokens, axis=0)
    x = jnp.transpose(x, (1, 0, 2))                       # (T, B, E)
    for lp in params["lstm"]:
        h_f = _ref_lstm_dir(x, *lp["fwd"])
        h_b = _ref_lstm_dir(x[::-1], *lp["bwd"])[::-1]
        x = jnp.concatenate([h_f, h_b], axis=-1)
    pooled = jnp.max(x, axis=0)                           # (B, 2H)
    return (jnp.dot(pooled, params["fc_w_t"], precision=lax.Precision.HIGHEST)
            + params["fc_b"][0])


# ----------------------------------------------------------------------------
# Deterministic parameters (PyTorch-style) + kernel-friendly repacking.
# ----------------------------------------------------------------------------
def make_params(key, vocab_size, hidden_dim, embed_dim, num_layers):
    keys = iter(jax.random.split(key, 128))
    k = 1.0 / jnp.sqrt(jnp.float32(hidden_dim))

    emb = jax.random.normal(next(keys), (vocab_size, embed_dim), jnp.float32)
    emb = emb.at[vocab_size - 1].set(0.0)                 # padding_idx row

    lstm_params = []
    for layer in range(num_layers):
        in_dim = embed_dim if layer == 0 else 2 * hidden_dim
        layer_p = {}
        for direction in ("fwd", "bwd"):
            w_ih = jax.random.uniform(next(keys), (4 * hidden_dim, in_dim),
                                      jnp.float32, -k, k)
            w_hh = jax.random.uniform(next(keys), (4 * hidden_dim, hidden_dim),
                                      jnp.float32, -k, k)
            b_ih = jax.random.uniform(next(keys), (4 * hidden_dim,),
                                      jnp.float32, -k, k)
            b_hh = jax.random.uniform(next(keys), (4 * hidden_dim,),
                                      jnp.float32, -k, k)
            layer_p[direction] = (
                jnp.transpose(w_ih),                       # (in_dim, 4H)
                jnp.transpose(w_hh),                       # (H, 4H)
                (b_ih + b_hh).reshape(1, 4 * hidden_dim),  # (1, 4H)
            )
        lstm_params.append(layer_p)

    k_fc = 1.0 / jnp.sqrt(jnp.float32(2 * hidden_dim))
    fc_w = jax.random.uniform(next(keys), (hidden_dim, 2 * hidden_dim),
                              jnp.float32, -k_fc, k_fc)
    fc_b = jax.random.uniform(next(keys), (hidden_dim,), jnp.float32, -k_fc, k_fc)

    return {
        "emb": emb,
        "lstm": lstm_params,
        "fc_w_t": jnp.transpose(fc_w),                    # (2H, H)
        "fc_b": fc_b.reshape(1, hidden_dim),              # (1, H)
    }


def _permute_gates(w, H):
    # Columns [i | f | g | o] (PyTorch) -> [i | f | o | g] (kernel layout).
    return jnp.concatenate([w[..., :2 * H], w[..., 3 * H:], w[..., 2 * H:3 * H]],
                           axis=-1)


def pack_params(params):
    H = params["lstm"][0]["fwd"][1].shape[0]
    layers = []
    for lp in params["lstm"]:
        wih_f, whh_f, b_f = lp["fwd"]
        wih_b, whh_b, b_b = lp["bwd"]
        layers.append({
            "wih": jnp.concatenate(
                [_permute_gates(wih_f, H), _permute_gates(wih_b, H)], axis=1),
            "whh_f": _permute_gates(whh_f, H),
            "whh_b": _permute_gates(whh_b, H),
            "bias": jnp.concatenate(
                [_permute_gates(b_f, H), _permute_gates(b_b, H)], axis=1),
        })
    return {"emb": params["emb"], "layers": layers,
            "fc_w_t": params["fc_w_t"], "fc_b": params["fc_b"]}


if __name__ == "__main__":
    VOCAB, HIDDEN, EMBED, LAYERS = 10, 32, 128, 2
    BATCH, SEQ = 2, 8

    root = jax.random.PRNGKey(0)
    k_params, k_tok = jax.random.split(root)
    params = make_params(k_params, VOCAB, HIDDEN, EMBED, LAYERS)
    packed = pack_params(params)
    tokens = jax.random.randint(k_tok, (BATCH, SEQ), 0, VOCAB, dtype=jnp.int32)

    out = jax.block_until_ready(bilstm_kmer_branch_forward(tokens, packed))
    assert out.shape == (BATCH, HIDDEN), out.shape

    ref = jax.block_until_ready(reference_forward(tokens, params))
    # All-f32 pipeline typically agrees to ~1e-5; tolerance 1e-2 (2x tighter
    # than before) leaves headroom for the MXU's multi-pass f32 emulation while
    # still catching any gate-permutation / packing mistake (those are O(0.1-1)).
    err = float(jnp.max(jnp.abs(out - ref)))
    assert jnp.allclose(out, ref, rtol=1e-2, atol=1e-2), err

    print("KERNEL_OK")
</pallas_src>

<mosaic_0001>
module attributes {stable_mosaic.version = 11 : i64} {
  func.func @kernel(%arg0: memref<2x8xi32, #tpu.memory_space<smem>>, %arg1: memref<10x1x128xf32, #tpu.memory_space<vmem>>, %arg2: memref<128x256xf32, #tpu.memory_space<vmem>>, %arg3: memref<32x128xf32, #tpu.memory_space<vmem>>, %arg4: memref<32x128xf32, #tpu.memory_space<vmem>>, %arg5: memref<1x256xf32, #tpu.memory_space<vmem>>, %arg6: memref<64x256xf32, #tpu.memory_space<vmem>>, %arg7: memref<32x128xf32, #tpu.memory_space<vmem>>, %arg8: memref<32x128xf32, #tpu.memory_space<vmem>>, %arg9: memref<1x256xf32, #tpu.memory_space<vmem>>, %arg10: memref<64x32xf32, #tpu.memory_space<vmem>>, %arg11: memref<1x32xf32, #tpu.memory_space<vmem>>, %arg12: memref<8x32xf32, #tpu.memory_space<vmem>>, %arg13: memref<64x128xf32, #tpu.memory_space<vmem>>, %arg14: memref<64x64xf32, #tpu.memory_space<vmem>>) attributes {dimension_semantics = [], scalar_prefetch = 0 : i64, scratch_operands = 2 : i64, tpu.core_type = #tpu.core_type<tc>} {
    %cst = arith.constant 0.000000e+00 : f32
    %0 = vector.broadcast %cst : f32 to vector<64x128xf32>
    %c0 = arith.constant 0 : index
    %c0_0 = arith.constant 0 : index
    %1 = vector.load %arg13[%c0, %c0_0] : memref<64x128xf32, #tpu.memory_space<vmem>>, vector<64x128xf32>
    tpu.vector_store %arg13[%c0, %c0_0], %0 {strides = array<i32>} : memref<64x128xf32, #tpu.memory_space<vmem>>, vector<64x128xf32>,
    %c0_1 = arith.constant 0 : index
    %c0_2 = arith.constant 0 : index
    %2 = memref.load %arg0[%c0_1, %c0_2] : memref<2x8xi32, #tpu.memory_space<smem>>
    %3 = arith.index_cast %2 : i32 to index
    %c0_3 = arith.constant 0 : index
    %c0_4 = arith.constant 0 : index
    %4 = vector.load %arg1[%3, %c0_3, %c0_4] : memref<10x1x128xf32, #tpu.memory_space<vmem>>, vector<1x1x128xf32>
    %5 = vector.shape_cast %4 : vector<1x1x128xf32> to vector<1x128xf32>
    %c0_5 = arith.constant 0 : index
    %c0_6 = arith.constant 0 : index
    %6 = vector.load %arg13[%c0_5, %c0_6] : memref<64x128xf32, #tpu.memory_space<vmem>>, vector<1x128xf32>
    tpu.vector_store %arg13[%c0_5, %c0_6], %5 {strides = array<i32>} : memref<64x128xf32, #tpu.memory_space<vmem>>, vector<1x128xf32>,
    %c1 = arith.constant 1 : index
    %c0_7 = arith.constant 0 : index
    %7 = memref.load %arg0[%c1, %c0_7] : memref<2x8xi32, #tpu.memory_space<smem>>
    %8 = arith.index_cast %7 : i32 to index
    %c0_8 = arith.constant 0 : index
    %c0_9 = arith.constant 0 : index
    %9 = vector.load %arg1[%8, %c0_8, %c0_9] : memref<10x1x128xf32, #tpu.memory_space<vmem>>, vector<1x1x128xf32>
    %10 = vector.shape_cast %9 : vector<1x1x128xf32> to vector<1x128xf32>
    %c1_10 = arith.constant 1 : index
    %c0_11 = arith.constant 0 : index
    %11 = vector.load %arg13[%c1_10, %c0_11] : memref<64x128xf32, #tpu.memory_space<vmem>>, vector<1x128xf32>
    tpu.vector_store %arg13[%c1_10, %c0_11], %10 {strides = array<i32>} : memref<64x128xf32, #tpu.memory_space<vmem>>, vector<1x128xf32>,
    %c0_12 = arith.constant 0 : index
    %c1_13 = arith.constant 1 : index
    %12 = memref.load %arg0[%c0_12, %c1_13] : memref<2x8xi32, #tpu.memory_space<smem>>
    %13 = arith.index_cast %12 : i32 to index
    %c0_14 = arith.constant 0 : index
    %c0_15 = arith.constant 0 : index
    %14 = vector.load %arg1[%13, %c0_14, %c0_15] : memref<10x1x128xf32, #tpu.memory_space<vmem>>, vector<1x1x128xf32>
    %15 = vector.shape_cast %14 : vector<1x1x128xf32> to vector<1x128xf32>
    %c8 = arith.constant 8 : index
    %c0_16 = arith.constant 0 : index
    %16 = vector.load %arg13[%c8, %c0_16] : memref<64x128xf32, #tpu.memory_space<vmem>>, vector<1x128xf32>
    tpu.vector_store %arg13[%c8, %c0_16], %15 {strides = array<i32>} : memref<64x128xf32, #tpu.memory_space<vmem>>, vector<1x128xf32>,
    %c1_17 = arith.constant 1 : index
    %c1_18 = arith.constant 1 : index
    %17 = memref.load %arg0[%c1_17, %c1_18] : memref<2x8xi32, #tpu.memory_space<smem>>
    %18 = arith.index_cast %17 : i32 to index
    %c0_19 = arith.constant 0 : index
    %c0_20 = arith.constant 0 : index
    %19 = vector.load %arg1[%18, %c0_19, %c0_20] : memref<10x1x128xf32, #tpu.memory_space<vmem>>, vector<1x1x128xf32>
    %20 = vector.shape_cast %19 : vector<1x1x128xf32> to vector<1x128xf32>
    %c9 = arith.constant 9 : index
    %c0_21 = arith.constant 0 : index
    %21 = vector.load %arg13[%c9, %c0_21] : memref<64x128xf32, #tpu.memory_space<vmem>>, vector<1x128xf32>
    tpu.vector_store %arg13[%c9, %c0_21], %20 {strides = array<i32>} : memref<64x128xf32, #tpu.memory_space<vmem>>, vector<1x128xf32>,
    %c0_22 = arith.constant 0 : index
    %c2 = arith.constant 2 : index
    %22 = memref.load %arg0[%c0_22, %c2] : memref<2x8xi32, #tpu.memory_space<smem>>
    %23 = arith.index_cast %22 : i32 to index
    %c0_23 = arith.constant 0 : index
    %c0_24 = arith.constant 0 : index
    %24 = vector.load %arg1[%23, %c0_23, %c0_24] : memref<10x1x128xf32, #tpu.memory_space<vmem>>, vector<1x1x128xf32>
    %25 = vector.shape_cast %24 : vector<1x1x128xf32> to vector<1x128xf32>
    %c16 = arith.constant 16 : index
    %c0_25 = arith.constant 0 : index
    %26 = vector.load %arg13[%c16, %c0_25] : memref<64x128xf32, #tpu.memory_space<vmem>>, vector<1x128xf32>
    tpu.vector_store %arg13[%c16, %c0_25], %25 {strides = array<i32>} : memref<64x128xf32, #tpu.memory_space<vmem>>, vector<1x128xf32>,
    %c1_26 = arith.constant 1 : index
    %c2_27 = arith.constant 2 : index
    %27 = memref.load %arg0[%c1_26, %c2_27] : memref<2x8xi32, #tpu.memory_space<smem>>
    %28 = arith.index_cast %27 : i32 to index
    %c0_28 = arith.constant 0 : index
    %c0_29 = arith.constant 0 : index
    %29 = vector.load %arg1[%28, %c0_28, %c0_29] : memref<10x1x128xf32, #tpu.memory_space<vmem>>, vector<1x1x128xf32>
    %30 = vector.shape_cast %29 : vector<1x1x128xf32> to vector<1x128xf32>
    %c17 = arith.constant 17 : index
    %c0_30 = arith.constant 0 : index
    %31 = vector.load %arg13[%c17, %c0_30] : memref<64x128xf32, #tpu.memory_space<vmem>>, vector<1x128xf32>
    tpu.vector_store %arg13[%c17, %c0_30], %30 {strides = array<i32>} : memref<64x128xf32, #tpu.memory_space<vmem>>, vector<1x128xf32>,
    %c0_31 = arith.constant 0 : index
    %c3 = arith.constant 3 : index
    %32 = memref.load %arg0[%c0_31, %c3] : memref<2x8xi32, #tpu.memory_space<smem>>
    %33 = arith.index_cast %32 : i32 to index
    %c0_32 = arith.constant 0 : index
    %c0_33 = arith.constant 0 : index
    %34 = vector.load %arg1[%33, %c0_32, %c0_33] : memref<10x1x128xf32, #tpu.memory_space<vmem>>, vector<1x1x128xf32>
    %35 = vector.shape_cast %34 : vector<1x1x128xf32> to vector<1x128xf32>
    %c24 = arith.constant 24 : index
    %c0_34 = arith.constant 0 : index
    %36 = vector.load %arg13[%c24, %c0_34] : memref<64x128xf32, #tpu.memory_space<vmem>>, vector<1x128xf32>
    tpu.vector_store %arg13[%c24, %c0_34], %35 {strides = array<i32>} : memref<64x128xf32, #tpu.memory_space<vmem>>, vector<1x128xf32>,
    %c1_35 = arith.constant 1 : index
    %c3_36 = arith.constant 3 : index
    %37 = memref.load %arg0[%c1_35, %c3_36] : memref<2x8xi32, #tpu.memory_space<smem>>
    %38 = arith.index_cast %37 : i32 to index
    %c0_37 = arith.constant 0 : index
    %c0_38 = arith.constant 0 : index
    %39 = vector.load %arg1[%38, %c0_37, %c0_38] : memref<10x1x128xf32, #tpu.memory_space<vmem>>, vector<1x1x128xf32>
    %40 = vector.shape_cast %39 : vector<1x1x128xf32> to vector<1x128xf32>
    %c25 = arith.constant 25 : index
    %c0_39 = arith.constant 0 : index
    %41 = vector.load %arg13[%c25, %c0_39] : memref<64x128xf32, #tpu.memory_space<vmem>>, vector<1x128xf32>
    tpu.vector_store %arg13[%c25, %c0_39], %40 {strides = array<i32>} : memref<64x128xf32, #tpu.memory_space<vmem>>, vector<1x128xf32>,
    %c0_40 = arith.constant 0 : index
    %c4 = arith.constant 4 : index
    %42 = memref.load %arg0[%c0_40, %c4] : memref<2x8xi32, #tpu.memory_space<smem>>
    %43 = arith.index_cast %42 : i32 to index
    %c0_41 = arith.constant 0 : index
    %c0_42 = arith.constant 0 : index
    %44 = vector.load %arg1[%43, %c0_41, %c0_42] : memref<10x1x128xf32, #tpu.memory_space<vmem>>, vector<1x1x128xf32>
    %45 = vector.shape_cast %44 : vector<1x1x128xf32> to vector<1x128xf32>
    %c32 = arith.constant 32 : index
    %c0_43 = arith.constant 0 : index
    %46 = vector.load %arg13[%c32, %c0_43] : memref<64x128xf32, #tpu.memory_space<vmem>>, vector<1x128xf32>
    tpu.vector_store %arg13[%c32, %c0_43], %45 {strides = array<i32>} : memref<64x128xf32, #tpu.memory_space<vmem>>, vector<1x128xf32>,
    %c1_44 = arith.constant 1 : index
    %c4_45 = arith.constant 4 : index
    %47 = memref.load %arg0[%c1_44, %c4_45] : memref<2x8xi32, #tpu.memory_space<smem>>
    %48 = arith.index_cast %47 : i32 to index
    %c0_46 = arith.constant 0 : index
    %c0_47 = arith.constant 0 : index
    %49 = vector.load %arg1[%48, %c0_46, %c0_47] : memref<10x1x128xf32, #tpu.memory_space<vmem>>, vector<1x1x128xf32>
    %50 = vector.shape_cast %49 : vector<1x1x128xf32> to vector<1x128xf32>
    %c33 = arith.constant 33 : index
    %c0_48 = arith.constant 0 : index
    %51 = vector.load %arg13[%c33, %c0_48] : memref<64x128xf32, #tpu.memory_space<vmem>>, vector<1x128xf32>
    tpu.vector_store %arg13[%c33, %c0_48], %50 {strides = array<i32>} : memref<64x128xf32, #tpu.memory_space<vmem>>, vector<1x128xf32>,
    %c0_49 = arith.constant 0 : index
    %c5 = arith.constant 5 : index
    %52 = memref.load %arg0[%c0_49, %c5] : memref<2x8xi32, #tpu.memory_space<smem>>
    %53 = arith.index_cast %52 : i32 to index
    %c0_50 = arith.constant 0 : index
    %c0_51 = arith.constant 0 : index
    %54 = vector.load %arg1[%53, %c0_50, %c0_51] : memref<10x1x128xf32, #tpu.memory_space<vmem>>, vector<1x1x128xf32>
    %55 = vector.shape_cast %54 : vector<1x1x128xf32> to vector<1x128xf32>
    %c40 = arith.constant 40 : index
    %c0_52 = arith.constant 0 : index
    %56 = vector.load %arg13[%c40, %c0_52] : memref<64x128xf32, #tpu.memory_space<vmem>>, vector<1x128xf32>
    tpu.vector_store %arg13[%c40, %c0_52], %55 {strides = array<i32>} : memref<64x128xf32, #tpu.memory_space<vmem>>, vector<1x128xf32>,
    %c1_53 = arith.constant 1 : index
    %c5_54 = arith.constant 5 : index
    %57 = memref.load %arg0[%c1_53, %c5_54] : memref<2x8xi32, #tpu.memory_space<smem>>
    %58 = arith.index_cast %57 : i32 to index
    %c0_55 = arith.constant 0 : index
    %c0_56 = arith.constant 0 : index
    %59 = vector.load %arg1[%58, %c0_55, %c0_56] : memref<10x1x128xf32, #tpu.memory_space<vmem>>, vector<1x1x128xf32>
    %60 = vector.shape_cast %59 : vector<1x1x128xf32> to vector<1x128xf32>
    %c41 = arith.constant 41 : index
    %c0_57 = arith.constant 0 : index
    %61 = vector.load %arg13[%c41, %c0_57] : memref<64x128xf32, #tpu.memory_space<vmem>>, vector<1x128xf32>
    tpu.vector_store %arg13[%c41, %c0_57], %60 {strides = array<i32>} : memref<64x128xf32, #tpu.memory_space<vmem>>, vector<1x128xf32>,
    %c0_58 = arith.constant 0 : index
    %c6 = arith.constant 6 : index
    %62 = memref.load %arg0[%c0_58, %c6] : memref<2x8xi32, #tpu.memory_space<smem>>
    %63 = arith.index_cast %62 : i32 to index
    %c0_59 = arith.constant 0 : index
    %c0_60 = arith.constant 0 : index
    %64 = vector.load %arg1[%63, %c0_59, %c0_60] : memref<10x1x128xf32, #tpu.memory_space<vmem>>, vector<1x1x128xf32>
    %65 = vector.shape_cast %64 : vector<1x1x128xf32> to vector<1x128xf32>
    %c48 = arith.constant 48 : index
    %c0_61 = arith.constant 0 : index
    %66 = vector.load %arg13[%c48, %c0_61] : memref<64x128xf32, #tpu.memory_space<vmem>>, vector<1x128xf32>
    tpu.vector_store %arg13[%c48, %c0_61], %65 {strides = array<i32>} : memref<64x128xf32, #tpu.memory_space<vmem>>, vector<1x128xf32>,
    %c1_62 = arith.constant 1 : index
    %c6_63 = arith.constant 6 : index
    %67 = memref.load %arg0[%c1_62, %c6_63] : memref<2x8xi32, #tpu.memory_space<smem>>
    %68 = arith.index_cast %67 : i32 to index
    %c0_64 = arith.constant 0 : index
    %c0_65 = arith.constant 0 : index
    %69 = vector.load %arg1[%68, %c0_64, %c0_65] : memref<10x1x128xf32, #tpu.memory_space<vmem>>, vector<1x1x128xf32>
    %70 = vector.shape_cast %69 : vector<1x1x128xf32> to vector<1x128xf32>
    %c49 = arith.constant 49 : index
    %c0_66 = arith.constant 0 : index
    %71 = vector.load %arg13[%c49, %c0_66] : memref<64x128xf32, #tpu.memory_space<vmem>>, vector<1x128xf32>
    tpu.vector_store %arg13[%c49, %c0_66], %70 {strides = array<i32>} : memref<64x128xf32, #tpu.memory_space<vmem>>, vector<1x128xf32>,
    %c0_67 = arith.constant 0 : index
    %c7 = arith.constant 7 : index
    %72 = memref.load %arg0[%c0_67, %c7] : memref<2x8xi32, #tpu.memory_space<smem>>
    %73 = arith.index_cast %72 : i32 to index
    %c0_68 = arith.constant 0 : index
    %c0_69 = arith.constant 0 : index
    %74 = vector.load %arg1[%73, %c0_68, %c0_69] : memref<10x1x128xf32, #tpu.memory_space<vmem>>, vector<1x1x128xf32>
    %75 = vector.shape_cast %74 : vector<1x1x128xf32> to vector<1x128xf32>
    %c56 = arith.constant 56 : index
    %c0_70 = arith.constant 0 : index
    %76 = vector.load %arg13[%c56, %c0_70] : memref<64x128xf32, #tpu.memory_space<vmem>>, vector<1x128xf32>
    tpu.vector_store %arg13[%c56, %c0_70], %75 {strides = array<i32>} : memref<64x128xf32, #tpu.memory_space<vmem>>, vector<1x128xf32>,
    %c1_71 = arith.constant 1 : index
    %c7_72 = arith.constant 7 : index
    %77 = memref.load %arg0[%c1_71, %c7_72] : memref<2x8xi32, #tpu.memory_space<smem>>
    %78 = arith.index_cast %77 : i32 to index
    %c0_73 = arith.constant 0 : index
    %c0_74 = arith.constant 0 : index
    %79 = vector.load %arg1[%78, %c0_73, %c0_74] : memref<10x1x128xf32, #tpu.memory_space<vmem>>, vector<1x1x128xf32>
    %80 = vector.shape_cast %79 : vector<1x1x128xf32> to vector<1x128xf32>
    %c57 = arith.constant 57 : index
    %c0_75 = arith.constant 0 : index
    %81 = vector.load %arg13[%c57, %c0_75] : memref<64x128xf32, #tpu.memory_space<vmem>>, vector<1x128xf32>
    tpu.vector_store %arg13[%c57, %c0_75], %80 {strides = array<i32>} : memref<64x128xf32, #tpu.memory_space<vmem>>, vector<1x128xf32>,
    %c0_76 = arith.constant 0 : index
    %c0_77 = arith.constant 0 : index
    %82 = vector.load %arg13[%c0_76, %c0_77] : memref<64x128xf32, #tpu.memory_space<vmem>>, vector<64x128xf32>
    %c0_78 = arith.constant 0 : index
    %c0_79 = arith.constant 0 : index
    %83 = vector.load %arg2[%c0_78, %c0_79] : memref<128x256xf32, #tpu.memory_space<vmem>>, vector<128x256xf32>
    %c0_80 = arith.constant 0 : index
    %c0_81 = arith.constant 0 : index
    %84 = vector.load %arg3[%c0_80, %c0_81] : memref<32x128xf32, #tpu.memory_space<vmem>>, vector<32x128xf32>
    %c0_82 = arith.constant 0 : index
    %c0_83 = arith.constant 0 : index
    %85 = vector.load %arg4[%c0_82, %c0_83] : memref<32x128xf32, #tpu.memory_space<vmem>>, vector<32x128xf32>
    %c0_84 = arith.constant 0 : index
    %c0_85 = arith.constant 0 : index
    %86 = vector.load %arg5[%c0_84, %c0_85] : memref<1x256xf32, #tpu.memory_space<vmem>>, vector<1x256xf32>
    %cst_86 = arith.constant dense<0.000000e+00> : vector<64x256xf32>
    %87 = tpu.matmul %82, %83, %cst_86 {dimension_numbers = #tpu.dot_dimension_numbers<[1], [0], [0], [1], [0, 0, 1, 1], [], []>} : vector<64x128xf32>, vector<128x256xf32>, vector<64x256xf32> -> vector<64x256xf32>
    %88 = vector.broadcast %86 : vector<1x256xf32> to vector<64x256xf32>
    %89 = arith.addf %87, %88 : vector<64x256xf32>
    %90 = vector.extract_strided_slice %89 {offsets = [0, 0], sizes = [64, 128], strides = [1, 1]} : vector<64x256xf32> to vector<64x128xf32>
    %91 = vector.extract_strided_slice %89 {offsets = [0, 128], sizes = [64, 128], strides = [1, 1]} : vector<64x256xf32> to vector<64x128xf32>
    %cst_87 = arith.constant 0.000000e+00 : f32
    %92 = vector.broadcast %cst_87 : f32 to vector<8x32xf32>
    %cst_88 = arith.constant 0.000000e+00 : f32
    %93 = vector.broadcast %cst_88 : f32 to vector<8x32xf32>
    %cst_89 = arith.constant 0.000000e+00 : f32
    %94 = vector.broadcast %cst_89 : f32 to vector<8x32xf32>
    %cst_90 = arith.constant 0.000000e+00 : f32
    %95 = vector.broadcast %cst_90 : f32 to vector<8x32xf32>
    %96 = vector.extract_strided_slice %90 {offsets = [0, 0], sizes = [8, 128], strides = [1, 1]} : vector<64x128xf32> to vector<8x128xf32>
    %cst_91 = arith.constant dense<0.000000e+00> : vector<8x128xf32>
    %97 = tpu.matmul %92, %84, %cst_91 {dimension_numbers = #tpu.dot_dimension_numbers<[1], [0], [0], [1], [0, 0, 1, 1], [], []>} : vector<8x32xf32>, vector<32x128xf32>, vector<8x128xf32> -> vector<8x128xf32>
    %98 = arith.addf %96, %97 : vector<8x128xf32>
    %99 = vector.extract_strided_slice %91 {offsets = [56, 0], sizes = [8, 128], strides = [1, 1]} : vector<64x128xf32> to vector<8x128xf32>
    %cst_92 = arith.constant dense<0.000000e+00> : vector<8x128xf32>
    %100 = tpu.matmul %94, %85, %cst_92 {dimension_numbers = #tpu.dot_dimension_numbers<[1], [0], [0], [1], [0, 0, 1, 1], [], []>} : vector<8x32xf32>, vector<32x128xf32>, vector<8x128xf32> -> vector<8x128xf32>
    %101 = arith.addf %99, %100 : vector<8x128xf32>
    %102 = vector.extract_strided_slice %98 {offsets = [0, 0], sizes = [8, 96], strides = [1, 1]} : vector<8x128xf32> to vector<8x96xf32>
    %103 = arith.negf %102 : vector<8x96xf32>
    %104 = math.exp %103 : vector<8x96xf32>
    %cst_93 = arith.constant 1.000000e+00 : f32
    %105 = vector.broadcast %cst_93 : f32 to vector<8x96xf32>
    %106 = arith.addf %105, %104 : vector<8x96xf32>
    %107 = arith.divf %105, %106 : vector<8x96xf32>
    %108 = vector.extract_strided_slice %101 {offsets = [0, 0], sizes = [8, 96], strides = [1, 1]} : vector<8x128xf32> to vector<8x96xf32>
    %109 = arith.negf %108 : vector<8x96xf32>
    %110 = math.exp %109 : vector<8x96xf32>
    %cst_94 = arith.constant 1.000000e+00 : f32
    %111 = vector.broadcast %cst_94 : f32 to vector<8x96xf32>
    %112 = arith.addf %111, %110 : vector<8x96xf32>
    %113 = arith.divf %111, %112 : vector<8x96xf32>
    %114 = vector.extract_strided_slice %98 {offsets = [0, 96], sizes = [8, 32], strides = [1, 1]} : vector<8x128xf32> to vector<8x32xf32>
    %115 = math.tanh %114 : vector<8x32xf32>
    %116 = vector.extract_strided_slice %101 {offsets = [0, 96], sizes = [8, 32], strides = [1, 1]} : vector<8x128xf32> to vector<8x32xf32>
    %117 = math.tanh %116 : vector<8x32xf32>
    %118 = vector.extract_strided_slice %107 {offsets = [0, 32], sizes = [8, 32], strides = [1, 1]} : vector<8x96xf32> to vector<8x32xf32>
    %119 = arith.mulf %118, %93 : vector<8x32xf32>
    %120 = vector.extract_strided_slice %107 {offsets = [0, 0], sizes = [8, 32], strides = [1, 1]} : vector<8x96xf32> to vector<8x32xf32>
    %121 = arith.mulf %120, %115 : vector<8x32xf32>
    %122 = arith.addf %119, %121 : vector<8x32xf32>
    %123 = vector.extract_strided_slice %113 {offsets = [0, 32], sizes = [8, 32], strides = [1, 1]} : vector<8x96xf32> to vector<8x32xf32>
    %124 = arith.mulf %123, %95 : vector<8x32xf32>
    %125 = vector.extract_strided_slice %113 {offsets = [0, 0], sizes = [8, 32], strides = [1, 1]} : vector<8x96xf32> to vector<8x32xf32>
    %126 = arith.mulf %125, %117 : vector<8x32xf32>
    %127 = arith.addf %124, %126 : vector<8x32xf32>
    %128 = vector.extract_strided_slice %107 {offsets = [0, 64], sizes = [8, 32], strides = [1, 1]} : vector<8x96xf32> to vector<8x32xf32>
    %129 = math.tanh %122 : vector<8x32xf32>
    %130 = arith.mulf %128, %129 : vector<8x32xf32>
    %131 = vector.extract_strided_slice %113 {offsets = [0, 64], sizes = [8, 32], strides = [1, 1]} : vector<8x96xf32> to vector<8x32xf32>
    %132 = math.tanh %127 : vector<8x32xf32>
    %133 = arith.mulf %131, %132 : vector<8x32xf32>
    %c0_95 = arith.constant 0 : index
    %c0_96 = arith.constant 0 : index
    %134 = vector.load %arg14[%c0_95, %c0_96] : memref<64x64xf32, #tpu.memory_space<vmem>>, vector<8x32xf32>
    tpu.vector_store %arg14[%c0_95, %c0_96], %130 {strides = array<i32>} : memref<64x64xf32, #tpu.memory_space<vmem>>, vector<8x32xf32>,
    %c56_97 = arith.constant 56 : index
    %c32_98 = arith.constant 32 : index
    %135 = vector.load %arg14[%c56_97, %c32_98] : memref<64x64xf32, #tpu.memory_space<vmem>>, vector<8x32xf32>
    tpu.vector_store %arg14[%c56_97, %c32_98], %133 {strides = array<i32>} : memref<64x64xf32, #tpu.memory_space<vmem>>, vector<8x32xf32>,
    %136 = vector.extract_strided_slice %90 {offsets = [8, 0], sizes = [8, 128], strides = [1, 1]} : vector<64x128xf32> to vector<8x128xf32>
    %cst_99 = arith.constant dense<0.000000e+00> : vector<8x128xf32>
    %137 = tpu.matmul %130, %84, %cst_99 {dimension_numbers = #tpu.dot_dimension_numbers<[1], [0], [0], [1], [0, 0, 1, 1], [], []>} : vector<8x32xf32>, vector<32x128xf32>, vector<8x128xf32> -> vector<8x128xf32>
    %138 = arith.addf %136, %137 : vector<8x128xf32>
    %139 = vector.extract_strided_slice %91 {offsets = [48, 0], sizes = [8, 128], strides = [1, 1]} : vector<64x128xf32> to vector<8x128xf32>
    %cst_100 = arith.constant dense<0.000000e+00> : vector<8x128xf32>
    %140 = tpu.matmul %133, %85, %cst_100 {dimension_numbers = #tpu.dot_dimension_numbers<[1], [0], [0], [1], [0, 0, 1, 1], [], []>} : vector<8x32xf32>, vector<32x128xf32>, vector<8x128xf32> -> vector<8x128xf32>
    %141 = arith.addf %139, %140 : vector<8x128xf32>
    %142 = vector.extract_strided_slice %138 {offsets = [0, 0], sizes = [8, 96], strides = [1, 1]} : vector<8x128xf32> to vector<8x96xf32>
    %143 = arith.negf %142 : vector<8x96xf32>
    %144 = math.exp %143 : vector<8x96xf32>
    %cst_101 = arith.constant 1.000000e+00 : f32
    %145 = vector.broadcast %cst_101 : f32 to vector<8x96xf32>
    %146 = arith.addf %145, %144 : vector<8x96xf32>
    %147 = arith.divf %145, %146 : vector<8x96xf32>
    %148 = vector.extract_strided_slice %141 {offsets = [0, 0], sizes = [8, 96], strides = [1, 1]} : vector<8x128xf32> to vector<8x96xf32>
    %149 = arith.negf %148 : vector<8x96xf32>
    %150 = math.exp %149 : vector<8x96xf32>
    %cst_102 = arith.constant 1.000000e+00 : f32
    %151 = vector.broadcast %cst_102 : f32 to vector<8x96xf32>
    %152 = arith.addf %151, %150 : vector<8x96xf32>
    %153 = arith.divf %151, %152 : vector<8x96xf32>
    %154 = vector.extract_strided_slice %138 {offsets = [0, 96], sizes = [8, 32], strides = [1, 1]} : vector<8x128xf32> to vector<8x32xf32>
    %155 = math.tanh %154 : vector<8x32xf32>
    %156 = vector.extract_strided_slice %141 {offsets = [0, 96], sizes = [8, 32], strides = [1, 1]} : vector<8x128xf32> to vector<8x32xf32>
    %157 = math.tanh %156 : vector<8x32xf32>
    %158 = vector.extract_strided_slice %147 {offsets = [0, 32], sizes = [8, 32], strides = [1, 1]} : vector<8x96xf32> to vector<8x32xf32>
    %159 = arith.mulf %158, %122 : vector<8x32xf32>
    %160 = vector.extract_strided_slice %147 {offsets = [0, 0], sizes = [8, 32], strides = [1, 1]} : vector<8x96xf32> to vector<8x32xf32>
    %161 = arith.mulf %160, %155 : vector<8x32xf32>
    %162 = arith.addf %159, %161 : vector<8x32xf32>
    %163 = vector.extract_strided_slice %153 {offsets = [0, 32], sizes = [8, 32], strides = [1, 1]} : vector<8x96xf32> to vector<8x32xf32>
    %164 = arith.mulf %163, %127 : vector<8x32xf32>
    %165 = vector.extract_strided_slice %153 {offsets = [0, 0], sizes = [8, 32], strides = [1, 1]} : vector<8x96xf32> to vector<8x32xf32>
    %166 = arith.mulf %165, %157 : vector<8x32xf32>
    %167 = arith.addf %164, %166 : vector<8x32xf32>
    %168 = vector.extract_strided_slice %147 {offsets = [0, 64], sizes = [8, 32], strides = [1, 1]} : vector<8x96xf32> to vector<8x32xf32>
    %169 = math.tanh %162 : vector<8x32xf32>
    %170 = arith.mulf %168, %169 : vector<8x32xf32>
    %171 = vector.extract_strided_slice %153 {offsets = [0, 64], sizes = [8, 32], strides = [1, 1]} : vector<8x96xf32> to vector<8x32xf32>
    %172 = math.tanh %167 : vector<8x32xf32>
    %173 = arith.mulf %171, %172 : vector<8x32xf32>
    %c8_103 = arith.constant 8 : index
    %c0_104 = arith.constant 0 : index
    %174 = vector.load %arg14[%c8_103, %c0_104] : memref<64x64xf32, #tpu.memory_space<vmem>>, vector<8x32xf32>
    tpu.vector_store %arg14[%c8_103, %c0_104], %170 {strides = array<i32>} : memref<64x64xf32, #tpu.memory_space<vmem>>, vector<8x32xf32>,
    %c48_105 = arith.constant 48 : index
    %c32_106 = arith.constant 32 : index
    %175 = vector.load %arg14[%c48_105, %c32_106] : memref<64x64xf32, #tpu.memory_space<vmem>>, vector<8x32xf32>
    tpu.vector_store %arg14[%c48_105, %c32_106], %173 {strides = array<i32>} : memref<64x64xf32, #tpu.memory_space<vmem>>, vector<8x32xf32>,
    %176 = vector.extract_strided_slice %90 {offsets = [16, 0], sizes = [8, 128], strides = [1, 1]} : vector<64x128xf32> to vector<8x128xf32>
    %cst_107 = arith.constant dense<0.000000e+00> : vector<8x128xf32>
    %177 = tpu.matmul %170, %84, %cst_107 {dimension_numbers = #tpu.dot_dimension_numbers<[1], [0], [0], [1], [0, 0, 1, 1], [], []>} : vector<8x32xf32>, vector<32x128xf32>, vector<8x128xf32> -> vector<8x128xf32>
    %178 = arith.addf %176, %177 : vector<8x128xf32>
    %179 = vector.extract_strided_slice %91 {offsets = [40, 0], sizes = [8, 128], strides = [1, 1]} : vector<64x128xf32> to vector<8x128xf32>
    %cst_108 = arith.constant dense<0.000000e+00> : vector<8x128xf32>
    %180 = tpu.matmul %173, %85, %cst_108 {dimension_numbers = #tpu.dot_dimension_numbers<[1], [0], [0], [1], [0, 0, 1, 1], [], []>} : vector<8x32xf32>, vector<32x128xf32>, vector<8x128xf32> -> vector<8x128xf32>
    %181 = arith.addf %179, %180 : vector<8x128xf32>
    %182 = vector.extract_strided_slice %178 {offsets = [0, 0], sizes = [8, 96], strides = [1, 1]} : vector<8x128xf32> to vector<8x96xf32>
    %183 = arith.negf %182 : vector<8x96xf32>
    %184 = math.exp %183 : vector<8x96xf32>
    %cst_109 = arith.constant 1.000000e+00 : f32
    %185 = vector.broadcast %cst_109 : f32 to vector<8x96xf32>
    %186 = arith.addf %185, %184 : vector<8x96xf32>
    %187 = arith.divf %185, %186 : vector<8x96xf32>
    %188 = vector.extract_strided_slice %181 {offsets = [0, 0], sizes = [8, 96], strides = [1, 1]} : vector<8x128xf32> to vector<8x96xf32>
    %189 = arith.negf %188 : vector<8x96xf32>
    %190 = math.exp %189 : vector<8x96xf32>
    %cst_110 = arith.constant 1.000000e+00 : f32
    %191 = vector.broadcast %cst_110 : f32 to vector<8x96xf32>
    %192 = arith.addf %191, %190 : vector<8x96xf32>
    %193 = arith.divf %191, %192 : vector<8x96xf32>
    %194 = vector.extract_strided_slice %178 {offsets = [0, 96], sizes = [8, 32], strides = [1, 1]} : vector<8x128xf32> to vector<8x32xf32>
    %195 = math.tanh %194 : vector<8x32xf32>
    %196 = vector.extract_strided_slice %181 {offsets = [0, 96], sizes = [8, 32], strides = [1, 1]} : vector<8x128xf32> to vector<8x32xf32>
    %197 = math.tanh %196 : vector<8x32xf32>
    %198 = vector.extract_strided_slice %187 {offsets = [0, 32], sizes = [8, 32], strides = [1, 1]} : vector<8x96xf32> to vector<8x32xf32>
    %199 = arith.mulf %198, %162 : vector<8x32xf32>
    %200 = vector.extract_strided_slice %187 {offsets = [0, 0], sizes = [8, 32], strides = [1, 1]} : vector<8x96xf32> to vector<8x32xf32>
    %201 = arith.mulf %200, %195 : vector<8x32xf32>
    %202 = arith.addf %199, %201 : vector<8x32xf32>
    %203 = vector.extract_strided_slice %193 {offsets = [0, 32], sizes = [8, 32], strides = [1, 1]} : vector<8x96xf32> to vector<8x32xf32>
    %204 = arith.mulf %203, %167 : vector<8x32xf32>
    %205 = vector.extract_strided_slice %193 {offsets = [0, 0], sizes = [8, 32], strides = [1, 1]} : vector<8x96xf32> to vector<8x32xf32>
    %206 = arith.mulf %205, %197 : vector<8x32xf32>
    %207 = arith.addf %204, %206 : vector<8x32xf32>
    %208 = vector.extract_strided_slice %187 {offsets = [0, 64], sizes = [8, 32], strides = [1, 1]} : vector<8x96xf32> to vector<8x32xf32>
    %209 = math.tanh %202 : vector<8x32xf32>
    %210 = arith.mulf %208, %209 : vector<8x32xf32>
    %211 = vector.extract_strided_slice %193 {offsets = [0, 64], sizes = [8, 32], strides = [1, 1]} : vector<8x96xf32> to vector<8x32xf32>
    %212 = math.tanh %207 : vector<8x32xf32>
    %213 = arith.mulf %211, %212 : vector<8x32xf32>
    %c16_111 = arith.constant 16 : index
    %c0_112 = arith.constant 0 : index
    %214 = vector.load %arg14[%c16_111, %c0_112] : memref<64x64xf32, #tpu.memory_space<vmem>>, vector<8x32xf32>
    tpu.vector_store %arg14[%c16_111, %c0_112], %210 {strides = array<i32>} : memref<64x64xf32, #tpu.memory_space<vmem>>, vector<8x32xf32>,
    %c40_113 = arith.constant 40 : index
    %c32_114 = arith.constant 32 : index
    %215 = vector.load %arg14[%c40_113, %c32_114] : memref<64x64xf32, #tpu.memory_space<vmem>>, vector<8x32xf32>
    tpu.vector_store %arg14[%c40_113, %c32_114], %213 {strides = array<i32>} : memref<64x64xf32, #tpu.memory_space<vmem>>, vector<8x32xf32>,
    %216 = vector.extract_strided_slice %90 {offsets = [24, 0], sizes = [8, 128], strides = [1, 1]} : vector<64x128xf32> to vector<8x128xf32>
    %cst_115 = arith.constant dense<0.000000e+00> : vector<8x128xf32>
    %217 = tpu.matmul %210, %84, %cst_115 {dimension_numbers = #tpu.dot_dimension_numbers<[1], [0], [0], [1], [0, 0, 1, 1], [], []>} : vector<8x32xf32>, vector<32x128xf32>, vector<8x128xf32> -> vector<8x128xf32>
    %218 = arith.addf %216, %217 : vector<8x128xf32>
    %219 = vector.extract_strided_slice %91 {offsets = [32, 0], sizes = [8, 128], strides = [1, 1]} : vector<64x128xf32> to vector<8x128xf32>
    %cst_116 = arith.constant dense<0.000000e+00> : vector<8x128xf32>
    %220 = tpu.matmul %213, %85, %cst_116 {dimension_numbers = #tpu.dot_dimension_numbers<[1], [0], [0], [1], [0, 0, 1, 1], [], []>} : vector<8x32xf32>, vector<32x128xf32>, vector<8x128xf32> -> vector<8x128xf32>
    %221 = arith.addf %219, %220 : vector<8x128xf32>
    %222 = vector.extract_strided_slice %218 {offsets = [0, 0], sizes = [8, 96], strides = [1, 1]} : vector<8x128xf32> to vector<8x96xf32>
    %223 = arith.negf %222 : vector<8x96xf32>
    %224 = math.exp %223 : vector<8x96xf32>
    %cst_117 = arith.constant 1.000000e+00 : f32
    %225 = vector.broadcast %cst_117 : f32 to vector<8x96xf32>
    %226 = arith.addf %225, %224 : vector<8x96xf32>
    %227 = arith.divf %225, %226 : vector<8x96xf32>
    %228 = vector.extract_strided_slice %221 {offsets = [0, 0], sizes = [8, 96], strides = [1, 1]} : vector<8x128xf32> to vector<8x96xf32>
    %229 = arith.negf %228 : vector<8x96xf32>
    %230 = math.exp %229 : vector<8x96xf32>
    %cst_118 = arith.constant 1.000000e+00 : f32
    %231 = vector.broadcast %cst_118 : f32 to vector<8x96xf32>
    %232 = arith.addf %231, %230 : vector<8x96xf32>
    %233 = arith.divf %231, %232 : vector<8x96xf32>
    %234 = vector.extract_strided_slice %218 {offsets = [0, 96], sizes = [8, 32], strides = [1, 1]} : vector<8x128xf32> to vector<8x32xf32>
    %235 = math.tanh %234 : vector<8x32xf32>
    %236 = vector.extract_strided_slice %221 {offsets = [0, 96], sizes = [8, 32], strides = [1, 1]} : vector<8x128xf32> to vector<8x32xf32>
    %237 = math.tanh %236 : vector<8x32xf32>
    %238 = vector.extract_strided_slice %227 {offsets = [0, 32], sizes = [8, 32], strides = [1, 1]} : vector<8x96xf32> to vector<8x32xf32>
    %239 = arith.mulf %238, %202 : vector<8x32xf32>
    %240 = vector.extract_strided_slice %227 {offsets = [0, 0], sizes = [8, 32], strides = [1, 1]} : vector<8x96xf32> to vector<8x32xf32>
    %241 = arith.mulf %240, %235 : vector<8x32xf32>
    %242 = arith.addf %239, %241 : vector<8x32xf32>
    %243 = vector.extract_strided_slice %233 {offsets = [0, 32], sizes = [8, 32], strides = [1, 1]} : vector<8x96xf32> to vector<8x32xf32>
    %244 = arith.mulf %243, %207 : vector<8x32xf32>
    %245 = vector.extract_strided_slice %233 {offsets = [0, 0], sizes = [8, 32], strides = [1, 1]} : vector<8x96xf32> to vector<8x32xf32>
    %246 = arith.mulf %245, %237 : vector<8x32xf32>
    %247 = arith.addf %244, %246 : vector<8x32xf32>
    %248 = vector.extract_strided_slice %227 {offsets = [0, 64], sizes = [8, 32], strides = [1, 1]} : vector<8x96xf32> to vector<8x32xf32>
    %249 = math.tanh %242 : vector<8x32xf32>
    %250 = arith.mulf %248, %249 : vector<8x32xf32>
    %251 = vector.extract_strided_slice %233 {offsets = [0, 64], sizes = [8, 32], strides = [1, 1]} : vector<8x96xf32> to vector<8x32xf32>
    %252 = math.tanh %247 : vector<8x32xf32>
    %253 = arith.mulf %251, %252 : vector<8x32xf32>
    %c24_119 = arith.constant 24 : index
    %c0_120 = arith.constant 0 : index
    %254 = vector.load %arg14[%c24_119, %c0_120] : memref<64x64xf32, #tpu.memory_space<vmem>>, vector<8x32xf32>
    tpu.vector_store %arg14[%c24_119, %c0_120], %250 {strides = array<i32>} : memref<64x64xf32, #tpu.memory_space<vmem>>, vector<8x32xf32>,
    %c32_121 = arith.constant 32 : index
    %c32_122 = arith.constant 32 : index
    %255 = vector.load %arg14[%c32_121, %c32_122] : memref<64x64xf32, #tpu.memory_space<vmem>>, vector<8x32xf32>
    tpu.vector_store %arg14[%c32_121, %c32_122], %253 {strides = array<i32>} : memref<64x64xf32, #tpu.memory_space<vmem>>, vector<8x32xf32>,
    %256 = vector.extract_strided_slice %90 {offsets = [32, 0], sizes = [8, 128], strides = [1, 1]} : vector<64x128xf32> to vector<8x128xf32>
    %cst_123 = arith.constant dense<0.000000e+00> : vector<8x128xf32>
    %257 = tpu.matmul %250, %84, %cst_123 {dimension_numbers = #tpu.dot_dimension_numbers<[1], [0], [0], [1], [0, 0, 1, 1], [], []>} : vector<8x32xf32>, vector<32x128xf32>, vector<8x128xf32> -> vector<8x128xf32>
    %258 = arith.addf %256, %257 : vector<8x128xf32>
    %259 = vector.extract_strided_slice %91 {offsets = [24, 0], sizes = [8, 128], strides = [1, 1]} : vector<64x128xf32> to vector<8x128xf32>
    %cst_124 = arith.constant dense<0.000000e+00> : vector<8x128xf32>
    %260 = tpu.matmul %253, %85, %cst_124 {dimension_numbers = #tpu.dot_dimension_numbers<[1], [0], [0], [1], [0, 0, 1, 1], [], []>} : vector<8x32xf32>, vector<32x128xf32>, vector<8x128xf32> -> vector<8x128xf32>
    %261 = arith.addf %259, %260 : vector<8x128xf32>
    %262 = vector.extract_strided_slice %258 {offsets = [0, 0], sizes = [8, 96], strides = [1, 1]} : vector<8x128xf32> to vector<8x96xf32>
    %263 = arith.negf %262 : vector<8x96xf32>
    %264 = math.exp %263 : vector<8x96xf32>
    %cst_125 = arith.constant 1.000000e+00 : f32
    %265 = vector.broadcast %cst_125 : f32 to vector<8x96xf32>
    %266 = arith.addf %265, %264 : vector<8x96xf32>
    %267 = arith.divf %265, %266 : vector<8x96xf32>
    %268 = vector.extract_strided_slice %261 {offsets = [0, 0], sizes = [8, 96], strides = [1, 1]} : vector<8x128xf32> to vector<8x96xf32>
    %269 = arith.negf %268 : vector<8x96xf32>
    %270 = math.exp %269 : vector<8x96xf32>
    %cst_126 = arith.constant 1.000000e+00 : f32
    %271 = vector.broadcast %cst_126 : f32 to vector<8x96xf32>
    %272 = arith.addf %271, %270 : vector<8x96xf32>
    %273 = arith.divf %271, %272 : vector<8x96xf32>
    %274 = vector.extract_strided_slice %258 {offsets = [0, 96], sizes = [8, 32], strides = [1, 1]} : vector<8x128xf32> to vector<8x32xf32>
    %275 = math.tanh %274 : vector<8x32xf32>
    %276 = vector.extract_strided_slice %261 {offsets = [0, 96], sizes = [8, 32], strides = [1, 1]} : vector<8x128xf32> to vector<8x32xf32>
    %277 = math.tanh %276 : vector<8x32xf32>
    %278 = vector.extract_strided_slice %267 {offsets = [0, 32], sizes = [8, 32], strides = [1, 1]} : vector<8x96xf32> to vector<8x32xf32>
    %279 = arith.mulf %278, %242 : vector<8x32xf32>
    %280 = vector.extract_strided_slice %267 {offsets = [0, 0], sizes = [8, 32], strides = [1, 1]} : vector<8x96xf32> to vector<8x32xf32>
    %281 = arith.mulf %280, %275 : vector<8x32xf32>
    %282 = arith.addf %279, %281 : vector<8x32xf32>
    %283 = vector.extract_strided_slice %273 {offsets = [0, 32], sizes = [8, 32], strides = [1, 1]} : vector<8x96xf32> to vector<8x32xf32>
    %284 = arith.mulf %283, %247 : vector<8x32xf32>
    %285 = vector.extract_strided_slice %273 {offsets = [0, 0], sizes = [8, 32], strides = [1, 1]} : vector<8x96xf32> to vector<8x32xf32>
    %286 = arith.mulf %285, %277 : vector<8x32xf32>
    %287 = arith.addf %284, %286 : vector<8x32xf32>
    %288 = vector.extract_strided_slice %267 {offsets = [0, 64], sizes = [8, 32], strides = [1, 1]} : vector<8x96xf32> to vector<8x32xf32>
    %289 = math.tanh %282 : vector<8x32xf32>
    %290 = arith.mulf %288, %289 : vector<8x32xf32>
    %291 = vector.extract_strided_slice %273 {offsets = [0, 64], sizes = [8, 32], strides = [1, 1]} : vector<8x96xf32> to vector<8x32xf32>
    %292 = math.tanh %287 : vector<8x32xf32>
    %293 = arith.mulf %291, %292 : vector<8x32xf32>
    %c32_127 = arith.constant 32 : index
    %c0_128 = arith.constant 0 : index
    %294 = vector.load %arg14[%c32_127, %c0_128] : memref<64x64xf32, #tpu.memory_space<vmem>>, vector<8x32xf32>
    tpu.vector_store %arg14[%c32_127, %c0_128], %290 {strides = array<i32>} : memref<64x64xf32, #tpu.memory_space<vmem>>, vector<8x32xf32>,
    %c24_129 = arith.constant 24 : index
    %c32_130 = arith.constant 32 : index
    %295 = vector.load %arg14[%c24_129, %c32_130] : memref<64x64xf32, #tpu.memory_space<vmem>>, vector<8x32xf32>
    tpu.vector_store %arg14[%c24_129, %c32_130], %293 {strides = array<i32>} : memref<64x64xf32, #tpu.memory_space<vmem>>, vector<8x32xf32>,
    %296 = vector.extract_strided_slice %90 {offsets = [40, 0], sizes = [8, 128], strides = [1, 1]} : vector<64x128xf32> to vector<8x128xf32>
    %cst_131 = arith.constant dense<0.000000e+00> : vector<8x128xf32>
    %297 = tpu.matmul %290, %84, %cst_131 {dimension_numbers = #tpu.dot_dimension_numbers<[1], [0], [0], [1], [0, 0, 1, 1], [], []>} : vector<8x32xf32>, vector<32x128xf32>, vector<8x128xf32> -> vector<8x128xf32>
    %298 = arith.addf %296, %297 : vector<8x128xf32>
    %299 = vector.extract_strided_slice %91 {offsets = [16, 0], sizes = [8, 128], strides = [1, 1]} : vector<64x128xf32> to vector<8x128xf32>
    %cst_132 = arith.constant dense<0.000000e+00> : vector<8x128xf32>
    %300 = tpu.matmul %293, %85, %cst_132 {dimension_numbers = #tpu.dot_dimension_numbers<[1], [0], [0], [1], [0, 0, 1, 1], [], []>} : vector<8x32xf32>, vector<32x128xf32>, vector<8x128xf32> -> vector<8x128xf32>
    %301 = arith.addf %299, %300 : vector<8x128xf32>
    %302 = vector.extract_strided_slice %298 {offsets = [0, 0], sizes = [8, 96], strides = [1, 1]} : vector<8x128xf32> to vector<8x96xf32>
    %303 = arith.negf %302 : vector<8x96xf32>
    %304 = math.exp %303 : vector<8x96xf32>
    %cst_133 = arith.constant 1.000000e+00 : f32
    %305 = vector.broadcast %cst_133 : f32 to vector<8x96xf32>
    %306 = arith.addf %305, %304 : vector<8x96xf32>
    %307 = arith.divf %305, %306 : vector<8x96xf32>
    %308 = vector.extract_strided_slice %301 {offsets = [0, 0], sizes = [8, 96], strides = [1, 1]} : vector<8x128xf32> to vector<8x96xf32>
    %309 = arith.negf %308 : vector<8x96xf32>
    %310 = math.exp %309 : vector<8x96xf32>
    %cst_134 = arith.constant 1.000000e+00 : f32
    %311 = vector.broadcast %cst_134 : f32 to vector<8x96xf32>
    %312 = arith.addf %311, %310 : vector<8x96xf32>
    %313 = arith.divf %311, %312 : vector<8x96xf32>
    %314 = vector.extract_strided_slice %298 {offsets = [0, 96], sizes = [8, 32], strides = [1, 1]} : vector<8x128xf32> to vector<8x32xf32>
    %315 = math.tanh %314 : vector<8x32xf32>
    %316 = vector.extract_strided_slice %301 {offsets = [0, 96], sizes = [8, 32], strides = [1, 1]} : vector<8x128xf32> to vector<8x32xf32>
    %317 = math.tanh %316 : vector<8x32xf32>
    %318 = vector.extract_strided_slice %307 {offsets = [0, 32], sizes = [8, 32], strides = [1, 1]} : vector<8x96xf32> to vector<8x32xf32>
    %319 = arith.mulf %318, %282 : vector<8x32xf32>
    %320 = vector.extract_strided_slice %307 {offsets = [0, 0], sizes = [8, 32], strides = [1, 1]} : vector<8x96xf32> to vector<8x32xf32>
    %321 = arith.mulf %320, %315 : vector<8x32xf32>
    %322 = arith.addf %319, %321 : vector<8x32xf32>
    %323 = vector.extract_strided_slice %313 {offsets = [0, 32], sizes = [8, 32], strides = [1, 1]} : vector<8x96xf32> to vector<8x32xf32>
    %324 = arith.mulf %323, %287 : vector<8x32xf32>
    %325 = vector.extract_strided_slice %313 {offsets = [0, 0], sizes = [8, 32], strides = [1, 1]} : vector<8x96xf32> to vector<8x32xf32>
    %326 = arith.mulf %325, %317 : vector<8x32xf32>
    %327 = arith.addf %324, %326 : vector<8x32xf32>
    %328 = vector.extract_strided_slice %307 {offsets = [0, 64], sizes = [8, 32], strides = [1, 1]} : vector<8x96xf32> to vector<8x32xf32>
    %329 = math.tanh %322 : vector<8x32xf32>
    %330 = arith.mulf %328, %329 : vector<8x32xf32>
    %331 = vector.extract_strided_slice %313 {offsets = [0, 64], sizes = [8, 32], strides = [1, 1]} : vector<8x96xf32> to vector<8x32xf32>
    %332 = math.tanh %327 : vector<8x32xf32>
    %333 = arith.mulf %331, %332 : vector<8x32xf32>
    %c40_135 = arith.constant 40 : index
    %c0_136 = arith.constant 0 : index
    %334 = vector.load %arg14[%c40_135, %c0_136] : memref<64x64xf32, #tpu.memory_space<vmem>>, vector<8x32xf32>
    tpu.vector_store %arg14[%c40_135, %c0_136], %330 {strides = array<i32>} : memref<64x64xf32, #tpu.memory_space<vmem>>, vector<8x32xf32>,
    %c16_137 = arith.constant 16 : index
    %c32_138 = arith.constant 32 : index
    %335 = vector.load %arg14[%c16_137, %c32_138] : memref<64x64xf32, #tpu.memory_space<vmem>>, vector<8x32xf32>
    tpu.vector_store %arg14[%c16_137, %c32_138], %333 {strides = array<i32>} : memref<64x64xf32, #tpu.memory_space<vmem>>, vector<8x32xf32>,
    %336 = vector.extract_strided_slice %90 {offsets = [48, 0], sizes = [8, 128], strides = [1, 1]} : vector<64x128xf32> to vector<8x128xf32>
    %cst_139 = arith.constant dense<0.000000e+00> : vector<8x128xf32>
    %337 = tpu.matmul %330, %84, %cst_139 {dimension_numbers = #tpu.dot_dimension_numbers<[1], [0], [0], [1], [0, 0, 1, 1], [], []>} : vector<8x32xf32>, vector<32x128xf32>, vector<8x128xf32> -> vector<8x128xf32>
    %338 = arith.addf %336, %337 : vector<8x128xf32>
    %339 = vector.extract_strided_slice %91 {offsets = [8, 0], sizes = [8, 128], strides = [1, 1]} : vector<64x128xf32> to vector<8x128xf32>
    %cst_140 = arith.constant dense<0.000000e+00> : vector<8x128xf32>
    %340 = tpu.matmul %333, %85, %cst_140 {dimension_numbers = #tpu.dot_dimension_numbers<[1], [0], [0], [1], [0, 0, 1, 1], [], []>} : vector<8x32xf32>, vector<32x128xf32>, vector<8x128xf32> -> vector<8x128xf32>
    %341 = arith.addf %339, %340 : vector<8x128xf32>
    %342 = vector.extract_strided_slice %338 {offsets = [0, 0], sizes = [8, 96], strides = [1, 1]} : vector<8x128xf32> to vector<8x96xf32>
    %343 = arith.negf %342 : vector<8x96xf32>
    %344 = math.exp %343 : vector<8x96xf32>
    %cst_141 = arith.constant 1.000000e+00 : f32
    %345 = vector.broadcast %cst_141 : f32 to vector<8x96xf32>
    %346 = arith.addf %345, %344 : vector<8x96xf32>
    %347 = arith.divf %345, %346 : vector<8x96xf32>
    %348 = vector.extract_strided_slice %341 {offsets = [0, 0], sizes = [8, 96], strides = [1, 1]} : vector<8x128xf32> to vector<8x96xf32>
    %349 = arith.negf %348 : vector<8x96xf32>
    %350 = math.exp %349 : vector<8x96xf32>
    %cst_142 = arith.constant 1.000000e+00 : f32
    %351 = vector.broadcast %cst_142 : f32 to vector<8x96xf32>
    %352 = arith.addf %351, %350 : vector<8x96xf32>
    %353 = arith.divf %351, %352 : vector<8x96xf32>
    %354 = vector.extract_strided_slice %338 {offsets = [0, 96], sizes = [8, 32], strides = [1, 1]} : vector<8x128xf32> to vector<8x32xf32>
    %355 = math.tanh %354 : vector<8x32xf32>
    %356 = vector.extract_strided_slice %341 {offsets = [0, 96], sizes = [8, 32], strides = [1, 1]} : vector<8x128xf32> to vector<8x32xf32>
    %357 = math.tanh %356 : vector<8x32xf32>
    %358 = vector.extract_strided_slice %347 {offsets = [0, 32], sizes = [8, 32], strides = [1, 1]} : vector<8x96xf32> to vector<8x32xf32>
    %359 = arith.mulf %358, %322 : vector<8x32xf32>
    %360 = vector.extract_strided_slice %347 {offsets = [0, 0], sizes = [8, 32], strides = [1, 1]} : vector<8x96xf32> to vector<8x32xf32>
    %361 = arith.mulf %360, %355 : vector<8x32xf32>
    %362 = arith.addf %359, %361 : vector<8x32xf32>
    %363 = vector.extract_strided_slice %353 {offsets = [0, 32], sizes = [8, 32], strides = [1, 1]} : vector<8x96xf32> to vector<8x32xf32>
    %364 = arith.mulf %363, %327 : vector<8x32xf32>
    %365 = vector.extract_strided_slice %353 {offsets = [0, 0], sizes = [8, 32], strides = [1, 1]} : vector<8x96xf32> to vector<8x32xf32>
    %366 = arith.mulf %365, %357 : vector<8x32xf32>
    %367 = arith.addf %364, %366 : vector<8x32xf32>
    %368 = vector.extract_strided_slice %347 {offsets = [0, 64], sizes = [8, 32], strides = [1, 1]} : vector<8x96xf32> to vector<8x32xf32>
    %369 = math.tanh %362 : vector<8x32xf32>
    %370 = arith.mulf %368, %369 : vector<8x32xf32>
    %371 = vector.extract_strided_slice %353 {offsets = [0, 64], sizes = [8, 32], strides = [1, 1]} : vector<8x96xf32> to vector<8x32xf32>
    %372 = math.tanh %367 : vector<8x32xf32>
    %373 = arith.mulf %371, %372 : vector<8x32xf32>
    %c48_143 = arith.constant 48 : index
    %c0_144 = arith.constant 0 : index
    %374 = vector.load %arg14[%c48_143, %c0_144] : memref<64x64xf32, #tpu.memory_space<vmem>>, vector<8x32xf32>
    tpu.vector_store %arg14[%c48_143, %c0_144], %370 {strides = array<i32>} : memref<64x64xf32, #tpu.memory_space<vmem>>, vector<8x32xf32>,
    %c8_145 = arith.constant 8 : index
    %c32_146 = arith.constant 32 : index
    %375 = vector.load %arg14[%c8_145, %c32_146] : memref<64x64xf32, #tpu.memory_space<vmem>>, vector<8x32xf32>
    tpu.vector_store %arg14[%c8_145, %c32_146], %373 {strides = array<i32>} : memref<64x64xf32, #tpu.memory_space<vmem>>, vector<8x32xf32>,
    %376 = vector.extract_strided_slice %90 {offsets = [56, 0], sizes = [8, 128], strides = [1, 1]} : vector<64x128xf32> to vector<8x128xf32>
    %cst_147 = arith.constant dense<0.000000e+00> : vector<8x128xf32>
    %377 = tpu.matmul %370, %84, %cst_147 {dimension_numbers = #tpu.dot_dimension_numbers<[1], [0], [0], [1], [0, 0, 1, 1], [], []>} : vector<8x32xf32>, vector<32x128xf32>, vector<8x128xf32> -> vector<8x128xf32>
    %378 = arith.addf %376, %377 : vector<8x128xf32>
    %379 = vector.extract_strided_slice %91 {offsets = [0, 0], sizes = [8, 128], strides = [1, 1]} : vector<64x128xf32> to vector<8x128xf32>
    %cst_148 = arith.constant dense<0.000000e+00> : vector<8x128xf32>
    %380 = tpu.matmul %373, %85, %cst_148 {dimension_numbers = #tpu.dot_dimension_numbers<[1], [0], [0], [1], [0, 0, 1, 1], [], []>} : vector<8x32xf32>, vector<32x128xf32>, vector<8x128xf32> -> vector<8x128xf32>
    %381 = arith.addf %379, %380 : vector<8x128xf32>
    %382 = vector.extract_strided_slice %378 {offsets = [0, 0], sizes = [8, 96], strides = [1, 1]} : vector<8x128xf32> to vector<8x96xf32>
    %383 = arith.negf %382 : vector<8x96xf32>
    %384 = math.exp %383 : vector<8x96xf32>
    %cst_149 = arith.constant 1.000000e+00 : f32
    %385 = vector.broadcast %cst_149 : f32 to vector<8x96xf32>
    %386 = arith.addf %385, %384 : vector<8x96xf32>
    %387 = arith.divf %385, %386 : vector<8x96xf32>
    %388 = vector.extract_strided_slice %381 {offsets = [0, 0], sizes = [8, 96], strides = [1, 1]} : vector<8x128xf32> to vector<8x96xf32>
    %389 = arith.negf %388 : vector<8x96xf32>
    %390 = math.exp %389 : vector<8x96xf32>
    %cst_150 = arith.constant 1.000000e+00 : f32
    %391 = vector.broadcast %cst_150 : f32 to vector<8x96xf32>
    %392 = arith.addf %391, %390 : vector<8x96xf32>
    %393 = arith.divf %391, %392 : vector<8x96xf32>
    %394 = vector.extract_strided_slice %378 {offsets = [0, 96], sizes = [8, 32], strides = [1, 1]} : vector<8x128xf32> to vector<8x32xf32>
    %395 = math.tanh %394 : vector<8x32xf32>
    %396 = vector.extract_strided_slice %381 {offsets = [0, 96], sizes = [8, 32], strides = [1, 1]} : vector<8x128xf32> to vector<8x32xf32>
    %397 = math.tanh %396 : vector<8x32xf32>
    %398 = vector.extract_strided_slice %387 {offsets = [0, 32], sizes = [8, 32], strides = [1, 1]} : vector<8x96xf32> to vector<8x32xf32>
    %399 = arith.mulf %398, %362 : vector<8x32xf32>
    %400 = vector.extract_strided_slice %387 {offsets = [0, 0], sizes = [8, 32], strides = [1, 1]} : vector<8x96xf32> to vector<8x32xf32>
    %401 = arith.mulf %400, %395 : vector<8x32xf32>
    %402 = arith.addf %399, %401 : vector<8x32xf32>
    %403 = vector.extract_strided_slice %393 {offsets = [0, 32], sizes = [8, 32], strides = [1, 1]} : vector<8x96xf32> to vector<8x32xf32>
    %404 = arith.mulf %403, %367 : vector<8x32xf32>
    %405 = vector.extract_strided_slice %393 {offsets = [0, 0], sizes = [8, 32], strides = [1, 1]} : vector<8x96xf32> to vector<8x32xf32>
    %406 = arith.mulf %405, %397 : vector<8x32xf32>
    %407 = arith.addf %404, %406 : vector<8x32xf32>
    %408 = vector.extract_strided_slice %387 {offsets = [0, 64], sizes = [8, 32], strides = [1, 1]} : vector<8x96xf32> to vector<8x32xf32>
    %409 = math.tanh %402 : vector<8x32xf32>
    %410 = arith.mulf %408, %409 : vector<8x32xf32>
    %411 = vector.extract_strided_slice %393 {offsets = [0, 64], sizes = [8, 32], strides = [1, 1]} : vector<8x96xf32> to vector<8x32xf32>
    %412 = math.tanh %407 : vector<8x32xf32>
    %413 = arith.mulf %411, %412 : vector<8x32xf32>
    %c56_151 = arith.constant 56 : index
    %c0_152 = arith.constant 0 : index
    %414 = vector.load %arg14[%c56_151, %c0_152] : memref<64x64xf32, #tpu.memory_space<vmem>>, vector<8x32xf32>
    tpu.vector_store %arg14[%c56_151, %c0_152], %410 {strides = array<i32>} : memref<64x64xf32, #tpu.memory_space<vmem>>, vector<8x32xf32>,
    %c0_153 = arith.constant 0 : index
    %c32_154 = arith.constant 32 : index
    %415 = vector.load %arg14[%c0_153, %c32_154] : memref<64x64xf32, #tpu.memory_space<vmem>>, vector<8x32xf32>
    tpu.vector_store %arg14[%c0_153, %c32_154], %413 {strides = array<i32>} : memref<64x64xf32, #tpu.memory_space<vmem>>, vector<8x32xf32>,
    %c0_155 = arith.constant 0 : index
    %c0_156 = arith.constant 0 : index
    %416 = vector.load %arg14[%c0_155, %c0_156] : memref<64x64xf32, #tpu.memory_space<vmem>>, vector<64x64xf32>
    %c0_157 = arith.constant 0 : index
    %c0_158 = arith.constant 0 : index
    %417 = vector.load %arg6[%c0_157, %c0_158] : memref<64x256xf32, #tpu.memory_space<vmem>>, vector<64x256xf32>
    %c0_159 = arith.constant 0 : index
    %c0_160 = arith.constant 0 : index
    %418 = vector.load %arg7[%c0_159, %c0_160] : memref<32x128xf32, #tpu.memory_space<vmem>>, vector<32x128xf32>
    %c0_161 = arith.constant 0 : index
    %c0_162 = arith.constant 0 : index
    %419 = vector.load %arg8[%c0_161, %c0_162] : memref<32x128xf32, #tpu.memory_space<vmem>>, vector<32x128xf32>
    %c0_163 = arith.constant 0 : index
    %c0_164 = arith.constant 0 : index
    %420 = vector.load %arg9[%c0_163, %c0_164] : memref<1x256xf32, #tpu.memory_space<vmem>>, vector<1x256xf32>
    %cst_165 = arith.constant dense<0.000000e+00> : vector<64x256xf32>
    %421 = tpu.matmul %416, %417, %cst_165 {dimension_numbers = #tpu.dot_dimension_numbers<[1], [0], [0], [1], [0, 0, 1, 1], [], []>} : vector<64x64xf32>, vector<64x256xf32>, vector<64x256xf32> -> vector<64x256xf32>
    %422 = vector.broadcast %420 : vector<1x256xf32> to vector<64x256xf32>
    %423 = arith.addf %421, %422 : vector<64x256xf32>
    %424 = vector.extract_strided_slice %423 {offsets = [0, 0], sizes = [64, 128], strides = [1, 1]} : vector<64x256xf32> to vector<64x128xf32>
    %425 = vector.extract_strided_slice %423 {offsets = [0, 128], sizes = [64, 128], strides = [1, 1]} : vector<64x256xf32> to vector<64x128xf32>
    %cst_166 = arith.constant 0.000000e+00 : f32
    %426 = vector.broadcast %cst_166 : f32 to vector<8x32xf32>
    %cst_167 = arith.constant 0.000000e+00 : f32
    %427 = vector.broadcast %cst_167 : f32 to vector<8x32xf32>
    %cst_168 = arith.constant 0.000000e+00 : f32
    %428 = vector.broadcast %cst_168 : f32 to vector<8x32xf32>
    %cst_169 = arith.constant 0.000000e+00 : f32
    %429 = vector.broadcast %cst_169 : f32 to vector<8x32xf32>
    %430 = vector.extract_strided_slice %424 {offsets = [0, 0], sizes = [8, 128], strides = [1, 1]} : vector<64x128xf32> to vector<8x128xf32>
    %cst_170 = arith.constant dense<0.000000e+00> : vector<8x128xf32>
    %431 = tpu.matmul %426, %418, %cst_170 {dimension_numbers = #tpu.dot_dimension_numbers<[1], [0], [0], [1], [0, 0, 1, 1], [], []>} : vector<8x32xf32>, vector<32x128xf32>, vector<8x128xf32> -> vector<8x128xf32>
    %432 = arith.addf %430, %431 : vector<8x128xf32>
    %433 = vector.extract_strided_slice %425 {offsets = [56, 0], sizes = [8, 128], strides = [1, 1]} : vector<64x128xf32> to vector<8x128xf32>
    %cst_171 = arith.constant dense<0.000000e+00> : vector<8x128xf32>
    %434 = tpu.matmul %428, %419, %cst_171 {dimension_numbers = #tpu.dot_dimension_numbers<[1], [0], [0], [1], [0, 0, 1, 1], [], []>} : vector<8x32xf32>, vector<32x128xf32>, vector<8x128xf32> -> vector<8x128xf32>
    %435 = arith.addf %433, %434 : vector<8x128xf32>
    %436 = vector.extract_strided_slice %432 {offsets = [0, 0], sizes = [8, 96], strides = [1, 1]} : vector<8x128xf32> to vector<8x96xf32>
    %437 = arith.negf %436 : vector<8x96xf32>
    %438 = math.exp %437 : vector<8x96xf32>
    %cst_172 = arith.constant 1.000000e+00 : f32
    %439 = vector.broadcast %cst_172 : f32 to vector<8x96xf32>
    %440 = arith.addf %439, %438 : vector<8x96xf32>
    %441 = arith.divf %439, %440 : vector<8x96xf32>
    %442 = vector.extract_strided_slice %435 {offsets = [0, 0], sizes = [8, 96], strides = [1, 1]} : vector<8x128xf32> to vector<8x96xf32>
    %443 = arith.negf %442 : vector<8x96xf32>
    %444 = math.exp %443 : vector<8x96xf32>
    %cst_173 = arith.constant 1.000000e+00 : f32
    %445 = vector.broadcast %cst_173 : f32 to vector<8x96xf32>
    %446 = arith.addf %445, %444 : vector<8x96xf32>
    %447 = arith.divf %445, %446 : vector<8x96xf32>
    %448 = vector.extract_strided_slice %432 {offsets = [0, 96], sizes = [8, 32], strides = [1, 1]} : vector<8x128xf32> to vector<8x32xf32>
    %449 = math.tanh %448 : vector<8x32xf32>
    %450 = vector.extract_strided_slice %435 {offsets = [0, 96], sizes = [8, 32], strides = [1, 1]} : vector<8x128xf32> to vector<8x32xf32>
    %451 = math.tanh %450 : vector<8x32xf32>
    %452 = vector.extract_strided_slice %441 {offsets = [0, 32], sizes = [8, 32], strides = [1, 1]} : vector<8x96xf32> to vector<8x32xf32>
    %453 = arith.mulf %452, %427 : vector<8x32xf32>
    %454 = vector.extract_strided_slice %441 {offsets = [0, 0], sizes = [8, 32], strides = [1, 1]} : vector<8x96xf32> to vector<8x32xf32>
    %455 = arith.mulf %454, %449 : vector<8x32xf32>
    %456 = arith.addf %453, %455 : vector<8x32xf32>
    %457 = vector.extract_strided_slice %447 {offsets = [0, 32], sizes = [8, 32], strides = [1, 1]} : vector<8x96xf32> to vector<8x32xf32>
    %458 = arith.mulf %457, %429 : vector<8x32xf32>
    %459 = vector.extract_strided_slice %447 {offsets = [0, 0], sizes = [8, 32], strides = [1, 1]} : vector<8x96xf32> to vector<8x32xf32>
    %460 = arith.mulf %459, %451 : vector<8x32xf32>
    %461 = arith.addf %458, %460 : vector<8x32xf32>
    %462 = vector.extract_strided_slice %441 {offsets = [0, 64], sizes = [8, 32], strides = [1, 1]} : vector<8x96xf32> to vector<8x32xf32>
    %463 = math.tanh %456 : vector<8x32xf32>
    %464 = arith.mulf %462, %463 : vector<8x32xf32>
    %465 = vector.extract_strided_slice %447 {offsets = [0, 64], sizes = [8, 32], strides = [1, 1]} : vector<8x96xf32> to vector<8x32xf32>
    %466 = math.tanh %461 : vector<8x32xf32>
    %467 = arith.mulf %465, %466 : vector<8x32xf32>
    %468 = vector.extract_strided_slice %424 {offsets = [8, 0], sizes = [8, 128], strides = [1, 1]} : vector<64x128xf32> to vector<8x128xf32>
    %cst_174 = arith.constant dense<0.000000e+00> : vector<8x128xf32>
    %469 = tpu.matmul %464, %418, %cst_174 {dimension_numbers = #tpu.dot_dimension_numbers<[1], [0], [0], [1], [0, 0, 1, 1], [], []>} : vector<8x32xf32>, vector<32x128xf32>, vector<8x128xf32> -> vector<8x128xf32>
    %470 = arith.addf %468, %469 : vector<8x128xf32>
    %471 = vector.extract_strided_slice %425 {offsets = [48, 0], sizes = [8, 128], strides = [1, 1]} : vector<64x128xf32> to vector<8x128xf32>
    %cst_175 = arith.constant dense<0.000000e+00> : vector<8x128xf32>
    %472 = tpu.matmul %467, %419, %cst_175 {dimension_numbers = #tpu.dot_dimension_numbers<[1], [0], [0], [1], [0, 0, 1, 1], [], []>} : vector<8x32xf32>, vector<32x128xf32>, vector<8x128xf32> -> vector<8x128xf32>
    %473 = arith.addf %471, %472 : vector<8x128xf32>
    %474 = vector.extract_strided_slice %470 {offsets = [0, 0], sizes = [8, 96], strides = [1, 1]} : vector<8x128xf32> to vector<8x96xf32>
    %475 = arith.negf %474 : vector<8x96xf32>
    %476 = math.exp %475 : vector<8x96xf32>
    %cst_176 = arith.constant 1.000000e+00 : f32
    %477 = vector.broadcast %cst_176 : f32 to vector<8x96xf32>
    %478 = arith.addf %477, %476 : vector<8x96xf32>
    %479 = arith.divf %477, %478 : vector<8x96xf32>
    %480 = vector.extract_strided_slice %473 {offsets = [0, 0], sizes = [8, 96], strides = [1, 1]} : vector<8x128xf32> to vector<8x96xf32>
    %481 = arith.negf %480 : vector<8x96xf32>
    %482 = math.exp %481 : vector<8x96xf32>
    %cst_177 = arith.constant 1.000000e+00 : f32
    %483 = vector.broadcast %cst_177 : f32 to vector<8x96xf32>
    %484 = arith.addf %483, %482 : vector<8x96xf32>
    %485 = arith.divf %483, %484 : vector<8x96xf32>
    %486 = vector.extract_strided_slice %470 {offsets = [0, 96], sizes = [8, 32], strides = [1, 1]} : vector<8x128xf32> to vector<8x32xf32>
    %487 = math.tanh %486 : vector<8x32xf32>
    %488 = vector.extract_strided_slice %473 {offsets = [0, 96], sizes = [8, 32], strides = [1, 1]} : vector<8x128xf32> to vector<8x32xf32>
    %489 = math.tanh %488 : vector<8x32xf32>
    %490 = vector.extract_strided_slice %479 {offsets = [0, 32], sizes = [8, 32], strides = [1, 1]} : vector<8x96xf32> to vector<8x32xf32>
    %491 = arith.mulf %490, %456 : vector<8x32xf32>
    %492 = vector.extract_strided_slice %479 {offsets = [0, 0], sizes = [8, 32], strides = [1, 1]} : vector<8x96xf32> to vector<8x32xf32>
    %493 = arith.mulf %492, %487 : vector<8x32xf32>
    %494 = arith.addf %491, %493 : vector<8x32xf32>
    %495 = vector.extract_strided_slice %485 {offsets = [0, 32], sizes = [8, 32], strides = [1, 1]} : vector<8x96xf32> to vector<8x32xf32>
    %496 = arith.mulf %495, %461 : vector<8x32xf32>
    %497 = vector.extract_strided_slice %485 {offsets = [0, 0], sizes = [8, 32], strides = [1, 1]} : vector<8x96xf32> to vector<8x32xf32>
    %498 = arith.mulf %497, %489 : vector<8x32xf32>
    %499 = arith.addf %496, %498 : vector<8x32xf32>
    %500 = vector.extract_strided_slice %479 {offsets = [0, 64], sizes = [8, 32], strides = [1, 1]} : vector<8x96xf32> to vector<8x32xf32>
    %501 = math.tanh %494 : vector<8x32xf32>
    %502 = arith.mulf %500, %501 : vector<8x32xf32>
    %503 = vector.extract_strided_slice %485 {offsets = [0, 64], sizes = [8, 32], strides = [1, 1]} : vector<8x96xf32> to vector<8x32xf32>
    %504 = math.tanh %499 : vector<8x32xf32>
    %505 = arith.mulf %503, %504 : vector<8x32xf32>
    %506 = arith.maximumf %464, %502 : vector<8x32xf32>
    %507 = arith.maximumf %467, %505 : vector<8x32xf32>
    %508 = vector.extract_strided_slice %424 {offsets = [16, 0], sizes = [8, 128], strides = [1, 1]} : vector<64x128xf32> to vector<8x128xf32>
    %cst_178 = arith.constant dense<0.000000e+00> : vector<8x128xf32>
    %509 = tpu.matmul %502, %418, %cst_178 {dimension_numbers = #tpu.dot_dimension_numbers<[1], [0], [0], [1], [0, 0, 1, 1], [], []>} : vector<8x32xf32>, vector<32x128xf32>, vector<8x128xf32> -> vector<8x128xf32>
    %510 = arith.addf %508, %509 : vector<8x128xf32>
    %511 = vector.extract_strided_slice %425 {offsets = [40, 0], sizes = [8, 128], strides = [1, 1]} : vector<64x128xf32> to vector<8x128xf32>
    %cst_179 = arith.constant dense<0.000000e+00> : vector<8x128xf32>
    %512 = tpu.matmul %505, %419, %cst_179 {dimension_numbers = #tpu.dot_dimension_numbers<[1], [0], [0], [1], [0, 0, 1, 1], [], []>} : vector<8x32xf32>, vector<32x128xf32>, vector<8x128xf32> -> vector<8x128xf32>
    %513 = arith.addf %511, %512 : vector<8x128xf32>
    %514 = vector.extract_strided_slice %510 {offsets = [0, 0], sizes = [8, 96], strides = [1, 1]} : vector<8x128xf32> to vector<8x96xf32>
    %515 = arith.negf %514 : vector<8x96xf32>
    %516 = math.exp %515 : vector<8x96xf32>
    %cst_180 = arith.constant 1.000000e+00 : f32
    %517 = vector.broadcast %cst_180 : f32 to vector<8x96xf32>
    %518 = arith.addf %517, %516 : vector<8x96xf32>
    %519 = arith.divf %517, %518 : vector<8x96xf32>
    %520 = vector.extract_strided_slice %513 {offsets = [0, 0], sizes = [8, 96], strides = [1, 1]} : vector<8x128xf32> to vector<8x96xf32>
    %521 = arith.negf %520 : vector<8x96xf32>
    %522 = math.exp %521 : vector<8x96xf32>
    %cst_181 = arith.constant 1.000000e+00 : f32
    %523 = vector.broadcast %cst_181 : f32 to vector<8x96xf32>
    %524 = arith.addf %523, %522 : vector<8x96xf32>
    %525 = arith.divf %523, %524 : vector<8x96xf32>
    %526 = vector.extract_strided_slice %510 {offsets = [0, 96], sizes = [8, 32], strides = [1, 1]} : vector<8x128xf32> to vector<8x32xf32>
    %527 = math.tanh %526 : vector<8x32xf32>
    %528 = vector.extract_strided_slice %513 {offsets = [0, 96], sizes = [8, 32], strides = [1, 1]} : vector<8x128xf32> to vector<8x32xf32>
    %529 = math.tanh %528 : vector<8x32xf32>
    %530 = vector.extract_strided_slice %519 {offsets = [0, 32], sizes = [8, 32], strides = [1, 1]} : vector<8x96xf32> to vector<8x32xf32>
    %531 = arith.mulf %530, %494 : vector<8x32xf32>
    %532 = vector.extract_strided_slice %519 {offsets = [0, 0], sizes = [8, 32], strides = [1, 1]} : vector<8x96xf32> to vector<8x32xf32>
    %533 = arith.mulf %532, %527 : vector<8x32xf32>
    %534 = arith.addf %531, %533 : vector<8x32xf32>
    %535 = vector.extract_strided_slice %525 {offsets = [0, 32], sizes = [8, 32], strides = [1, 1]} : vector<8x96xf32> to vector<8x32xf32>
    %536 = arith.mulf %535, %499 : vector<8x32xf32>
    %537 = vector.extract_strided_slice %525 {offsets = [0, 0], sizes = [8, 32], strides = [1, 1]} : vector<8x96xf32> to vector<8x32xf32>
    %538 = arith.mulf %537, %529 : vector<8x32xf32>
    %539 = arith.addf %536, %538 : vector<8x32xf32>
    %540 = vector.extract_strided_slice %519 {offsets = [0, 64], sizes = [8, 32], strides = [1, 1]} : vector<8x96xf32> to vector<8x32xf32>
    %541 = math.tanh %534 : vector<8x32xf32>
    %542 = arith.mulf %540, %541 : vector<8x32xf32>
    %543 = vector.extract_strided_slice %525 {offsets = [0, 64], sizes = [8, 32], strides = [1, 1]} : vector<8x96xf32> to vector<8x32xf32>
    %544 = math.tanh %539 : vector<8x32xf32>
    %545 = arith.mulf %543, %544 : vector<8x32xf32>
    %546 = arith.maximumf %506, %542 : vector<8x32xf32>
    %547 = arith.maximumf %507, %545 : vector<8x32xf32>
    %548 = vector.extract_strided_slice %424 {offsets = [24, 0], sizes = [8, 128], strides = [1, 1]} : vector<64x128xf32> to vector<8x128xf32>
    %cst_182 = arith.constant dense<0.000000e+00> : vector<8x128xf32>
    %549 = tpu.matmul %542, %418, %cst_182 {dimension_numbers = #tpu.dot_dimension_numbers<[1], [0], [0], [1], [0, 0, 1, 1], [], []>} : vector<8x32xf32>, vector<32x128xf32>, vector<8x128xf32> -> vector<8x128xf32>
    %550 = arith.addf %548, %549 : vector<8x128xf32>
    %551 = vector.extract_strided_slice %425 {offsets = [32, 0], sizes = [8, 128], strides = [1, 1]} : vector<64x128xf32> to vector<8x128xf32>
    %cst_183 = arith.constant dense<0.000000e+00> : vector<8x128xf32>
    %552 = tpu.matmul %545, %419, %cst_183 {dimension_numbers = #tpu.dot_dimension_numbers<[1], [0], [0], [1], [0, 0, 1, 1], [], []>} : vector<8x32xf32>, vector<32x128xf32>, vector<8x128xf32> -> vector<8x128xf32>
    %553 = arith.addf %551, %552 : vector<8x128xf32>
    %554 = vector.extract_strided_slice %550 {offsets = [0, 0], sizes = [8, 96], strides = [1, 1]} : vector<8x128xf32> to vector<8x96xf32>
    %555 = arith.negf %554 : vector<8x96xf32>
    %556 = math.exp %555 : vector<8x96xf32>
    %cst_184 = arith.constant 1.000000e+00 : f32
    %557 = vector.broadcast %cst_184 : f32 to vector<8x96xf32>
    %558 = arith.addf %557, %556 : vector<8x96xf32>
    %559 = arith.divf %557, %558 : vector<8x96xf32>
    %560 = vector.extract_strided_slice %553 {offsets = [0, 0], sizes = [8, 96], strides = [1, 1]} : vector<8x128xf32> to vector<8x96xf32>
    %561 = arith.negf %560 : vector<8x96xf32>
    %562 = math.exp %561 : vector<8x96xf32>
    %cst_185 = arith.constant 1.000000e+00 : f32
    %563 = vector.broadcast %cst_185 : f32 to vector<8x96xf32>
    %564 = arith.addf %563, %562 : vector<8x96xf32>
    %565 = arith.divf %563, %564 : vector<8x96xf32>
    %566 = vector.extract_strided_slice %550 {offsets = [0, 96], sizes = [8, 32], strides = [1, 1]} : vector<8x128xf32> to vector<8x32xf32>
    %567 = math.tanh %566 : vector<8x32xf32>
    %568 = vector.extract_strided_slice %553 {offsets = [0, 96], sizes = [8, 32], strides = [1, 1]} : vector<8x128xf32> to vector<8x32xf32>
    %569 = math.tanh %568 : vector<8x32xf32>
    %570 = vector.extract_strided_slice %559 {offsets = [0, 32], sizes = [8, 32], strides = [1, 1]} : vector<8x96xf32> to vector<8x32xf32>
    %571 = arith.mulf %570, %534 : vector<8x32xf32>
    %572 = vector.extract_strided_slice %559 {offsets = [0, 0], sizes = [8, 32], strides = [1, 1]} : vector<8x96xf32> to vector<8x32xf32>
    %573 = arith.mulf %572, %567 : vector<8x32xf32>
    %574 = arith.addf %571, %573 : vector<8x32xf32>
    %575 = vector.extract_strided_slice %565 {offsets = [0, 32], sizes = [8, 32], strides = [1, 1]} : vector<8x96xf32> to vector<8x32xf32>
    %576 = arith.mulf %575, %539 : vector<8x32xf32>
    %577 = vector.extract_strided_slice %565 {offsets = [0, 0], sizes = [8, 32], strides = [1, 1]} : vector<8x96xf32> to vector<8x32xf32>
    %578 = arith.mulf %577, %569 : vector<8x32xf32>
    %579 = arith.addf %576, %578 : vector<8x32xf32>
    %580 = vector.extract_strided_slice %559 {offsets = [0, 64], sizes = [8, 32], strides = [1, 1]} : vector<8x96xf32> to vector<8x32xf32>
    %581 = math.tanh %574 : vector<8x32xf32>
    %582 = arith.mulf %580, %581 : vector<8x32xf32>
    %583 = vector.extract_strided_slice %565 {offsets = [0, 64], sizes = [8, 32], strides = [1, 1]} : vector<8x96xf32> to vector<8x32xf32>
    %584 = math.tanh %579 : vector<8x32xf32>
    %585 = arith.mulf %583, %584 : vector<8x32xf32>
    %586 = arith.maximumf %546, %582 : vector<8x32xf32>
    %587 = arith.maximumf %547, %585 : vector<8x32xf32>
    %588 = vector.extract_strided_slice %424 {offsets = [32, 0], sizes = [8, 128], strides = [1, 1]} : vector<64x128xf32> to vector<8x128xf32>
    %cst_186 = arith.constant dense<0.000000e+00> : vector<8x128xf32>
    %589 = tpu.matmul %582, %418, %cst_186 {dimension_numbers = #tpu.dot_dimension_numbers<[1], [0], [0], [1], [0, 0, 1, 1], [], []>} : vector<8x32xf32>, vector<32x128xf32>, vector<8x128xf32> -> vector<8x128xf32>
    %590 = arith.addf %588, %589 : vector<8x128xf32>
    %591 = vector.extract_strided_slice %425 {offsets = [24, 0], sizes = [8, 128], strides = [1, 1]} : vector<64x128xf32> to vector<8x128xf32>
    %cst_187 = arith.constant dense<0.000000e+00> : vector<8x128xf32>
    %592 = tpu.matmul %585, %419, %cst_187 {dimension_numbers = #tpu.dot_dimension_numbers<[1], [0], [0], [1], [0, 0, 1, 1], [], []>} : vector<8x32xf32>, vector<32x128xf32>, vector<8x128xf32> -> vector<8x128xf32>
    %593 = arith.addf %591, %592 : vector<8x128xf32>
    %594 = vector.extract_strided_slice %590 {offsets = [0, 0], sizes = [8, 96], strides = [1, 1]} : vector<8x128xf32> to vector<8x96xf32>
    %595 = arith.negf %594 : vector<8x96xf32>
    %596 = math.exp %595 : vector<8x96xf32>
    %cst_188 = arith.constant 1.000000e+00 : f32
    %597 = vector.broadcast %cst_188 : f32 to vector<8x96xf32>
    %598 = arith.addf %597, %596 : vector<8x96xf32>
    %599 = arith.divf %597, %598 : vector<8x96xf32>
    %600 = vector.extract_strided_slice %593 {offsets = [0, 0], sizes = [8, 96], strides = [1, 1]} : vector<8x128xf32> to vector<8x96xf32>
    %601 = arith.negf %600 : vector<8x96xf32>
    %602 = math.exp %601 : vector<8x96xf32>
    %cst_189 = arith.constant 1.000000e+00 : f32
    %603 = vector.broadcast %cst_189 : f32 to vector<8x96xf32>
    %604 = arith.addf %603, %602 : vector<8x96xf32>
    %605 = arith.divf %603, %604 : vector<8x96xf32>
    %606 = vector.extract_strided_slice %590 {offsets = [0, 96], sizes = [8, 32], strides = [1, 1]} : vector<8x128xf32> to vector<8x32xf32>
    %607 = math.tanh %606 : vector<8x32xf32>
    %608 = vector.extract_strided_slice %593 {offsets = [0, 96], sizes = [8, 32], strides = [1, 1]} : vector<8x128xf32> to vector<8x32xf32>
    %609 = math.tanh %608 : vector<8x32xf32>
    %610 = vector.extract_strided_slice %599 {offsets = [0, 32], sizes = [8, 32], strides = [1, 1]} : vector<8x96xf32> to vector<8x32xf32>
    %611 = arith.mulf %610, %574 : vector<8x32xf32>
    %612 = vector.extract_strided_slice %599 {offsets = [0, 0], sizes = [8, 32], strides = [1, 1]} : vector<8x96xf32> to vector<8x32xf32>
    %613 = arith.mulf %612, %607 : vector<8x32xf32>
    %614 = arith.addf %611, %613 : vector<8x32xf32>
    %615 = vector.extract_strided_slice %605 {offsets = [0, 32], sizes = [8, 32], strides = [1, 1]} : vector<8x96xf32> to vector<8x32xf32>
    %616 = arith.mulf %615, %579 : vector<8x32xf32>
    %617 = vector.extract_strided_slice %605 {offsets = [0, 0], sizes = [8, 32], strides = [1, 1]} : vector<8x96xf32> to vector<8x32xf32>
    %618 = arith.mulf %617, %609 : vector<8x32xf32>
    %619 = arith.addf %616, %618 : vector<8x32xf32>
    %620 = vector.extract_strided_slice %599 {offsets = [0, 64], sizes = [8, 32], strides = [1, 1]} : vector<8x96xf32> to vector<8x32xf32>
    %621 = math.tanh %614 : vector<8x32xf32>
    %622 = arith.mulf %620, %621 : vector<8x32xf32>
    %623 = vector.extract_strided_slice %605 {offsets = [0, 64], sizes = [8, 32], strides = [1, 1]} : vector<8x96xf32> to vector<8x32xf32>
    %624 = math.tanh %619 : vector<8x32xf32>
    %625 = arith.mulf %623, %624 : vector<8x32xf32>
    %626 = arith.maximumf %586, %622 : vector<8x32xf32>
    %627 = arith.maximumf %587, %625 : vector<8x32xf32>
    %628 = vector.extract_strided_slice %424 {offsets = [40, 0], sizes = [8, 128], strides = [1, 1]} : vector<64x128xf32> to vector<8x128xf32>
    %cst_190 = arith.constant dense<0.000000e+00> : vector<8x128xf32>
    %629 = tpu.matmul %622, %418, %cst_190 {dimension_numbers = #tpu.dot_dimension_numbers<[1], [0], [0], [1], [0, 0, 1, 1], [], []>} : vector<8x32xf32>, vector<32x128xf32>, vector<8x128xf32> -> vector<8x128xf32>
    %630 = arith.addf %628, %629 : vector<8x128xf32>
    %631 = vector.extract_strided_slice %425 {offsets = [16, 0], sizes = [8, 128], strides = [1, 1]} : vector<64x128xf32> to vector<8x128xf32>
    %cst_191 = arith.constant dense<0.000000e+00> : vector<8x128xf32>
    %632 = tpu.matmul %625, %419, %cst_191 {dimension_numbers = #tpu.dot_dimension_numbers<[1], [0], [0], [1], [0, 0, 1, 1], [], []>} : vector<8x32xf32>, vector<32x128xf32>, vector<8x128xf32> -> vector<8x128xf32>
    %633 = arith.addf %631, %632 : vector<8x128xf32>
    %634 = vector.extract_strided_slice %630 {offsets = [0, 0], sizes = [8, 96], strides = [1, 1]} : vector<8x128xf32> to vector<8x96xf32>
    %635 = arith.negf %634 : vector<8x96xf32>
    %636 = math.exp %635 : vector<8x96xf32>
    %cst_192 = arith.constant 1.000000e+00 : f32
    %637 = vector.broadcast %cst_192 : f32 to vector<8x96xf32>
    %638 = arith.addf %637, %636 : vector<8x96xf32>
    %639 = arith.divf %637, %638 : vector<8x96xf32>
    %640 = vector.extract_strided_slice %633 {offsets = [0, 0], sizes = [8, 96], strides = [1, 1]} : vector<8x128xf32> to vector<8x96xf32>
    %641 = arith.negf %640 : vector<8x96xf32>
    %642 = math.exp %641 : vector<8x96xf32>
    %cst_193 = arith.constant 1.000000e+00 : f32
    %643 = vector.broadcast %cst_193 : f32 to vector<8x96xf32>
    %644 = arith.addf %643, %642 : vector<8x96xf32>
    %645 = arith.divf %643, %644 : vector<8x96xf32>
    %646 = vector.extract_strided_slice %630 {offsets = [0, 96], sizes = [8, 32], strides = [1, 1]} : vector<8x128xf32> to vector<8x32xf32>
    %647 = math.tanh %646 : vector<8x32xf32>
    %648 = vector.extract_strided_slice %633 {offsets = [0, 96], sizes = [8, 32], strides = [1, 1]} : vector<8x128xf32> to vector<8x32xf32>
    %649 = math.tanh %648 : vector<8x32xf32>
    %650 = vector.extract_strided_slice %639 {offsets = [0, 32], sizes = [8, 32], strides = [1, 1]} : vector<8x96xf32> to vector<8x32xf32>
    %651 = arith.mulf %650, %614 : vector<8x32xf32>
    %652 = vector.extract_strided_slice %639 {offsets = [0, 0], sizes = [8, 32], strides = [1, 1]} : vector<8x96xf32> to vector<8x32xf32>
    %653 = arith.mulf %652, %647 : vector<8x32xf32>
    %654 = arith.addf %651, %653 : vector<8x32xf32>
    %655 = vector.extract_strided_slice %645 {offsets = [0, 32], sizes = [8, 32], strides = [1, 1]} : vector<8x96xf32> to vector<8x32xf32>
    %656 = arith.mulf %655, %619 : vector<8x32xf32>
    %657 = vector.extract_strided_slice %645 {offsets = [0, 0], sizes = [8, 32], strides = [1, 1]} : vector<8x96xf32> to vector<8x32xf32>
    %658 = arith.mulf %657, %649 : vector<8x32xf32>
    %659 = arith.addf %656, %658 : vector<8x32xf32>
    %660 = vector.extract_strided_slice %639 {offsets = [0, 64], sizes = [8, 32], strides = [1, 1]} : vector<8x96xf32> to vector<8x32xf32>
    %661 = math.tanh %654 : vector<8x32xf32>
    %662 = arith.mulf %660, %661 : vector<8x32xf32>
    %663 = vector.extract_strided_slice %645 {offsets = [0, 64], sizes = [8, 32], strides = [1, 1]} : vector<8x96xf32> to vector<8x32xf32>
    %664 = math.tanh %659 : vector<8x32xf32>
    %665 = arith.mulf %663, %664 : vector<8x32xf32>
    %666 = arith.maximumf %626, %662 : vector<8x32xf32>
    %667 = arith.maximumf %627, %665 : vector<8x32xf32>
    %668 = vector.extract_strided_slice %424 {offsets = [48, 0], sizes = [8, 128], strides = [1, 1]} : vector<64x128xf32> to vector<8x128xf32>
    %cst_194 = arith.constant dense<0.000000e+00> : vector<8x128xf32>
    %669 = tpu.matmul %662, %418, %cst_194 {dimension_numbers = #tpu.dot_dimension_numbers<[1], [0], [0], [1], [0, 0, 1, 1], [], []>} : vector<8x32xf32>, vector<32x128xf32>, vector<8x128xf32> -> vector<8x128xf32>
    %670 = arith.addf %668, %669 : vector<8x128xf32>
    %671 = vector.extract_strided_slice %425 {offsets = [8, 0], sizes = [8, 128], strides = [1, 1]} : vector<64x128xf32> to vector<8x128xf32>
    %cst_195 = arith.constant dense<0.000000e+00> : vector<8x128xf32>
    %672 = tpu.matmul %665, %419, %cst_195 {dimension_numbers = #tpu.dot_dimension_numbers<[1], [0], [0], [1], [0, 0, 1, 1], [], []>} : vector<8x32xf32>, vector<32x128xf32>, vector<8x128xf32> -> vector<8x128xf32>
    %673 = arith.addf %671, %672 : vector<8x128xf32>
    %674 = vector.extract_strided_slice %670 {offsets = [0, 0], sizes = [8, 96], strides = [1, 1]} : vector<8x128xf32> to vector<8x96xf32>
    %675 = arith.negf %674 : vector<8x96xf32>
    %676 = math.exp %675 : vector<8x96xf32>
    %cst_196 = arith.constant 1.000000e+00 : f32
    %677 = vector.broadcast %cst_196 : f32 to vector<8x96xf32>
    %678 = arith.addf %677, %676 : vector<8x96xf32>
    %679 = arith.divf %677, %678 : vector<8x96xf32>
    %680 = vector.extract_strided_slice %673 {offsets = [0, 0], sizes = [8, 96], strides = [1, 1]} : vector<8x128xf32> to vector<8x96xf32>
    %681 = arith.negf %680 : vector<8x96xf32>
    %682 = math.exp %681 : vector<8x96xf32>
    %cst_197 = arith.constant 1.000000e+00 : f32
    %683 = vector.broadcast %cst_197 : f32 to vector<8x96xf32>
    %684 = arith.addf %683, %682 : vector<8x96xf32>
    %685 = arith.divf %683, %684 : vector<8x96xf32>
    %686 = vector.extract_strided_slice %670 {offsets = [0, 96], sizes = [8, 32], strides = [1, 1]} : vector<8x128xf32> to vector<8x32xf32>
    %687 = math.tanh %686 : vector<8x32xf32>
    %688 = vector.extract_strided_slice %673 {offsets = [0, 96], sizes = [8, 32], strides = [1, 1]} : vector<8x128xf32> to vector<8x32xf32>
    %689 = math.tanh %688 : vector<8x32xf32>
    %690 = vector.extract_strided_slice %679 {offsets = [0, 32], sizes = [8, 32], strides = [1, 1]} : vector<8x96xf32> to vector<8x32xf32>
    %691 = arith.mulf %690, %654 : vector<8x32xf32>
    %692 = vector.extract_strided_slice %679 {offsets = [0, 0], sizes = [8, 32], strides = [1, 1]} : vector<8x96xf32> to vector<8x32xf32>
    %693 = arith.mulf %692, %687 : vector<8x32xf32>
    %694 = arith.addf %691, %693 : vector<8x32xf32>
    %695 = vector.extract_strided_slice %685 {offsets = [0, 32], sizes = [8, 32], strides = [1, 1]} : vector<8x96xf32> to vector<8x32xf32>
    %696 = arith.mulf %695, %659 : vector<8x32xf32>
    %697 = vector.extract_strided_slice %685 {offsets = [0, 0], sizes = [8, 32], strides = [1, 1]} : vector<8x96xf32> to vector<8x32xf32>
    %698 = arith.mulf %697, %689 : vector<8x32xf32>
    %699 = arith.addf %696, %698 : vector<8x32xf32>
    %700 = vector.extract_strided_slice %679 {offsets = [0, 64], sizes = [8, 32], strides = [1, 1]} : vector<8x96xf32> to vector<8x32xf32>
    %701 = math.tanh %694 : vector<8x32xf32>
    %702 = arith.mulf %700, %701 : vector<8x32xf32>
    %703 = vector.extract_strided_slice %685 {offsets = [0, 64], sizes = [8, 32], strides = [1, 1]} : vector<8x96xf32> to vector<8x32xf32>
    %704 = math.tanh %699 : vector<8x32xf32>
    %705 = arith.mulf %703, %704 : vector<8x32xf32>
    %706 = arith.maximumf %666, %702 : vector<8x32xf32>
    %707 = arith.maximumf %667, %705 : vector<8x32xf32>
    %708 = vector.extract_strided_slice %424 {offsets = [56, 0], sizes = [8, 128], strides = [1, 1]} : vector<64x128xf32> to vector<8x128xf32>
    %cst_198 = arith.constant dense<0.000000e+00> : vector<8x128xf32>
    %709 = tpu.matmul %702, %418, %cst_198 {dimension_numbers = #tpu.dot_dimension_numbers<[1], [0], [0], [1], [0, 0, 1, 1], [], []>} : vector<8x32xf32>, vector<32x128xf32>, vector<8x128xf32> -> vector<8x128xf32>
    %710 = arith.addf %708, %709 : vector<8x128xf32>
    %711 = vector.extract_strided_slice %425 {offsets = [0, 0], sizes = [8, 128], strides = [1, 1]} : vector<64x128xf32> to vector<8x128xf32>
    %cst_199 = arith.constant dense<0.000000e+00> : vector<8x128xf32>
    %712 = tpu.matmul %705, %419, %cst_199 {dimension_numbers = #tpu.dot_dimension_numbers<[1], [0], [0], [1], [0, 0, 1, 1], [], []>} : vector<8x32xf32>, vector<32x128xf32>, vector<8x128xf32> -> vector<8x128xf32>
    %713 = arith.addf %711, %712 : vector<8x128xf32>
    %714 = vector.extract_strided_slice %710 {offsets = [0, 0], sizes = [8, 96], strides = [1, 1]} : vector<8x128xf32> to vector<8x96xf32>
    %715 = arith.negf %714 : vector<8x96xf32>
    %716 = math.exp %715 : vector<8x96xf32>
    %cst_200 = arith.constant 1.000000e+00 : f32
    %717 = vector.broadcast %cst_200 : f32 to vector<8x96xf32>
    %718 = arith.addf %717, %716 : vector<8x96xf32>
    %719 = arith.divf %717, %718 : vector<8x96xf32>
    %720 = vector.extract_strided_slice %713 {offsets = [0, 0], sizes = [8, 96], strides = [1, 1]} : vector<8x128xf32> to vector<8x96xf32>
    %721 = arith.negf %720 : vector<8x96xf32>
    %722 = math.exp %721 : vector<8x96xf32>
    %cst_201 = arith.constant 1.000000e+00 : f32
    %723 = vector.broadcast %cst_201 : f32 to vector<8x96xf32>
    %724 = arith.addf %723, %722 : vector<8x96xf32>
    %725 = arith.divf %723, %724 : vector<8x96xf32>
    %726 = vector.extract_strided_slice %710 {offsets = [0, 96], sizes = [8, 32], strides = [1, 1]} : vector<8x128xf32> to vector<8x32xf32>
    %727 = math.tanh %726 : vector<8x32xf32>
    %728 = vector.extract_strided_slice %713 {offsets = [0, 96], sizes = [8, 32], strides = [1, 1]} : vector<8x128xf32> to vector<8x32xf32>
    %729 = math.tanh %728 : vector<8x32xf32>
    %730 = vector.extract_strided_slice %719 {offsets = [0, 32], sizes = [8, 32], strides = [1, 1]} : vector<8x96xf32> to vector<8x32xf32>
    %731 = arith.mulf %730, %694 : vector<8x32xf32>
    %732 = vector.extract_strided_slice %719 {offsets = [0, 0], sizes = [8, 32], strides = [1, 1]} : vector<8x96xf32> to vector<8x32xf32>
    %733 = arith.mulf %732, %727 : vector<8x32xf32>
    %734 = arith.addf %731, %733 : vector<8x32xf32>
    %735 = vector.extract_strided_slice %725 {offsets = [0, 32], sizes = [8, 32], strides = [1, 1]} : vector<8x96xf32> to vector<8x32xf32>
    %736 = arith.mulf %735, %699 : vector<8x32xf32>
    %737 = vector.extract_strided_slice %725 {offsets = [0, 0], sizes = [8, 32], strides = [1, 1]} : vector<8x96xf32> to vector<8x32xf32>
    %738 = arith.mulf %737, %729 : vector<8x32xf32>
    %739 = arith.addf %736, %738 : vector<8x32xf32>
    %740 = vector.extract_strided_slice %719 {offsets = [0, 64], sizes = [8, 32], strides = [1, 1]} : vector<8x96xf32> to vector<8x32xf32>
    %741 = math.tanh %734 : vector<8x32xf32>
    %742 = arith.mulf %740, %741 : vector<8x32xf32>
    %743 = vector.extract_strided_slice %725 {offsets = [0, 64], sizes = [8, 32], strides = [1, 1]} : vector<8x96xf32> to vector<8x32xf32>
    %744 = math.tanh %739 : vector<8x32xf32>
    %745 = arith.mulf %743, %744 : vector<8x32xf32>
    %746 = arith.maximumf %706, %742 : vector<8x32xf32>
    %747 = arith.maximumf %707, %745 : vector<8x32xf32>
    %748 = tpu.concatenate %746, %747 in 1 : vector<8x32xf32>, vector<8x32xf32> -> vector<8x64xf32>
    %c0_202 = arith.constant 0 : index
    %c0_203 = arith.constant 0 : index
    %749 = vector.load %arg10[%c0_202, %c0_203] : memref<64x32xf32, #tpu.memory_space<vmem>>, vector<64x32xf32>
    %cst_204 = arith.constant dense<0.000000e+00> : vector<8x32xf32>
    %750 = tpu.matmul %748, %749, %cst_204 {dimension_numbers = #tpu.dot_dimension_numbers<[1], [0], [0], [1], [0, 0, 1, 1], [], []>} : vector<8x64xf32>, vector<64x32xf32>, vector<8x32xf32> -> vector<8x32xf32>
    %c0_205 = arith.constant 0 : index
    %c0_206 = arith.constant 0 : index
    %751 = vector.load %arg11[%c0_205, %c0_206] : memref<1x32xf32, #tpu.memory_space<vmem>>, vector<1x32xf32>
    %752 = vector.broadcast %751 : vector<1x32xf32> to vector<8x32xf32>
    %753 = arith.addf %750, %752 : vector<8x32xf32>
    %c0_207 = arith.constant 0 : index
    %c0_208 = arith.constant 0 : index
    %754 = vector.load %arg12[%c0_207, %c0_208] : memref<8x32xf32, #tpu.memory_space<vmem>>, vector<8x32xf32>
    tpu.vector_store %arg12[%c0_207, %c0_208], %753 {strides = array<i32>} : memref<8x32xf32, #tpu.memory_space<vmem>>, vector<8x32xf32>,
    return
  }
}

</mosaic_0001>

<bundles_post_ra>
// kernel: bilstm_kmer_branch_forward.1
= control target key start
LH: loop header
LB: loop body
LE: loop exit
PB: predicated region body
PF: predicated region fallthrough
CT: control target
= control target key end

     0   :  { %17 = vsyncpa [#allocation6], 0  ;;  %s6259_s0 = inlined_call_operand.vmem [shape: s32[2,8], index: 0, kind: input, shape index: {}]   ;;  %s6260_s1 = inlined_call_operand.vmem [shape: f32[10,1,128], index: 1, kind: input, shape index: {}]   ;;  %s6261_s2 = inlined_call_operand.hbm [shape: f32[128,256], index: 2, kind: input, shape index: {}]   ;;  %s6262_s3 = inlined_call_operand.vmem [shape: f32[32,128], index: 3, kind: input, shape index: {}]   ;;  %s6263_s4 = inlined_call_operand.hbm [shape: f32[32,128], index: 4, kind: input, shape index: {}]   ;;  %s6264_s5 = inlined_call_operand.hbm [shape: f32[1,256], index: 5, kind: input, shape index: {}]   ;;  %s6265_s6 = inlined_call_operand.vmem [shape: f32[64,256], index: 6, kind: input, shape index: {}]   ;;  %s6266_s7 = inlined_call_operand.hbm [shape: f32[32,128], index: 7, kind: input, shape index: {}]   ;;  %s6267_s8 = inlined_call_operand.hbm [shape: f32[32,128], index: 8, kind: input, shape index: {}]   ;;  %s6268_s9 = inlined_call_operand.hbm [shape: f32[1,256], index: 9, kind: input, shape index: {}]   ;;  %s6269_s10 = inlined_call_operand.vmem [shape: f32[64,32], index: 10, kind: input, shape index: {}]   ;;  %s6270_s11 = inlined_call_operand.vmem [shape: f32[1,32], index: 11, kind: input, shape index: {}]   ;;  %s6271_s12 = inlined_call_operand.vmem [shape: f32[8,32], index: 12, kind: output, shape index: {}]  }
   0x1   :  { %18 = vsyncpa [#allocation5], 0 }
   0x2   :  { %19 = vsyncpa [#allocation9], 0 }
   0x3   :  { %20 = vsyncpa [#allocation12], 0 }
   0x4   :  { %21 = vsyncpa [#allocation15], 0  ;;  %s5237_s21 = smov [#allocation8]   ;;  %s5083_s25 = scalar_lea.hbm %s6263_s4, 512 }
   0x5   :  { %s53_s22 = sshll.u32 %s5237_s21, 4  ;;  %p5084_p0 = scmp.ne.s32.totalorder %s6263_s4, %s5083_s25  ;;  %s54_s22 = int_to_ptr.vmem [resolvable:$true] %s53_s22 }
   0x6   :  { %p5087_p1 = scmp.lt.u32.totalorder %s5083_s25, %s6263_s4 }
   0x8   :  { %p5089_p2 = pnand %p5087_p1, %p5084_p0 }
   0xa   :  { %5092 = shalt.err (!%p5089_p2)
}
   0xb   :  { %s5093_s30 = scalar_lea.vmem %s54_s22, 512  ;;  %p5098_p4 = scmp.lt.s32.totalorder %s54_s22, %s54_s22 }
   0xc   :  { %p5094_p3 = scmp.ne.s32.totalorder %s54_s22, %s5093_s30  ;;  %p5099_p5 = scmp.lt.s32.totalorder %s5093_s30, %s5093_s30 }
   0xe   :  { %p5100_p6 = por %p5099_p5, %p5098_p4 }
  0x10   :  { %p5101_p7 = pnand %p5100_p6, %p5094_p3 }
  0x12   :  { %5104 = shalt.err (!%p5101_p7)
}
  0x13   :  { %s5238_s13 = smov 128   ;;  %s5239_s14 = smov 8  }
  0x14   :  { %59 = dma.hbm_to_vmem [thread:$0]  %s6263_s4, 512, %s54_s22, [#allocation9], %s5238_s13, %s5238_s13, %s5239_s14  }
  0x15   :  { %s5240_s17 = smov [#allocation11]   ;;  %s28_s21 = sshll.u32 %s6259_s0, 4  ;;  %s29_s21 = int_to_ptr.vmem [resolvable:$true] %s28_s21 }
  0x16   :  { %s77_s18 = sshll.u32 %s5240_s17, 4  ;;  %s5105_s25 = scalar_lea.hbm %s6266_s7, 512  ;;  %s78_s18 = int_to_ptr.vmem [resolvable:$true] %s77_s18 }
  0x17   :  { %p5106_p8 = scmp.ne.s32.totalorder %s6266_s7, %s5105_s25  ;;  %p5109_p9 = scmp.lt.u32.totalorder %s5105_s25, %s6266_s7 }
  0x19   :  { %p5111_p10 = pnand %p5109_p9, %p5106_p8 }
  0x1b   :  { %5114 = shalt.err (!%p5111_p10)
}
  0x1c   :  { %s5115_s4 = scalar_lea.vmem %s78_s18, 512  ;;  %p5120_p12 = scmp.lt.s32.totalorder %s78_s18, %s78_s18 }
  0x1d   :  { %p5116_p11 = scmp.ne.s32.totalorder %s78_s18, %s5115_s4  ;;  %p5121_p13 = scmp.lt.s32.totalorder %s5115_s4, %s5115_s4 }
  0x1f   :  { %p5122_p0 = por %p5121_p13, %p5120_p12 }
  0x21   :  { %p5123_p1 = pnand %p5122_p0, %p5116_p11 }
  0x23   :  { %5126 = shalt.err (!%p5123_p1)
}
  0x24   :  { %83 = dma.hbm_to_vmem [thread:$0]  %s6266_s7, 512, %s78_s18, [#allocation12], %s5238_s13, %s5238_s13, %s5239_s14  }
  0x25   :  { %s5127_s30 = scalar_lea.vmem %s29_s21, 32  ;;  %p5132_p3 = scmp.lt.s32.totalorder %s29_s21, %s29_s21 }
  0x26   :  { %p5128_p2 = scmp.ne.s32.totalorder %s29_s21, %s5127_s30  ;;  %p5133_p4 = scmp.lt.s32.totalorder %s5127_s30, %s5127_s30 }
  0x28   :  { %p5134_p5 = por %p5133_p4, %p5132_p3 }
  0x2a   :  { %p5135_p6 = pnand %p5134_p5, %p5128_p2 }
  0x2c   :  { %5138 = shalt.err (!%p5135_p6)
}
  0x2d   :  { %s5241_s15 = smov [#allocation4]   ;;  %s5242_s16 = smov [#allocation7]  }
  0x2e   :  { %31 = dma.vmem_to_smem %s29_s21, 32, %s5241_s15, [#allocation6]  }
  0x2f   :  { %s39_s17 = sshll.u32 %s5242_s16, 4  ;;  %s5139_s23 = scalar_lea.hbm %s6261_s2, 4096  ;;  %s40_s17 = int_to_ptr.vmem [resolvable:$true] %s39_s17 }
  0x30   :  { %p5140_p7 = scmp.ne.s32.totalorder %s6261_s2, %s5139_s23  ;;  %p5143_p8 = scmp.lt.u32.totalorder %s5139_s23, %s6261_s2 }
  0x32   :  { %p5145_p9 = pnand %p5143_p8, %p5140_p7 }
  0x34   :  { %5148 = shalt.err (!%p5145_p9)
}
  0x35   :  { %s5149_s26 = scalar_lea.vmem %s40_s17, 4096  ;;  %p5154_p11 = scmp.lt.s32.totalorder %s40_s17, %s40_s17 }
  0x36   :  { %p5150_p10 = scmp.ne.s32.totalorder %s40_s17, %s5149_s26  ;;  %p5155_p12 = scmp.lt.s32.totalorder %s5149_s26, %s5149_s26 }
  0x38   :  { %p5156_p13 = por %p5155_p12, %p5154_p11 }
  0x3a   :  { %p5157_p0 = pnand %p5156_p13, %p5150_p10 }
  0x3c   :  { %5160 = shalt.err (!%p5157_p0)
}
  0x3d   :  { %s5243_s21 = smov 256   ;;  %s5244_s27 = smov 16  }
  0x3e   :  { %45 = dma.hbm_to_vmem [thread:$0]  %s6261_s2, 4096, %s40_s17, [#allocation5], %s5243_s21, %s5243_s21, %s5244_s27  }
  0x3f   :  { %s5245_s4 = smov [#allocation10]   ;;  %s5246_s22 = smov [#allocation13]  }
  0x40   :  { %s66_s0 = sshll.u32 %s5245_s4, 4  ;;  %s89_s30 = sshll.u32 %s5246_s22, 4  ;;  %s67_s0 = int_to_ptr.vmem [resolvable:$true] %s66_s0  ;;  %s5364_s30 = int_to_ptr.vmem [resolvable:$true] %s89_s30 }
  0x41   :  { %s5161_s19 = scalar_lea.hbm %s6264_s5, 32 }
  0x42   :  { %p5162_p1 = scmp.ne.s32.totalorder %s6264_s5, %s5161_s19  ;;  %p5165_p2 = scmp.lt.u32.totalorder %s5161_s19, %s6264_s5 }
  0x44   :  { %p5167_p3 = pnand %p5165_p2, %p5162_p1 }
  0x46   :  { %5170 = shalt.err (!%p5167_p3)
}
  0x47   :  { %s5171_s2 = scalar_lea.vmem %s67_s0, 32  ;;  %p5176_p5 = scmp.lt.s32.totalorder %s67_s0, %s67_s0 }
  0x48   :  { %p5172_p4 = scmp.ne.s32.totalorder %s67_s0, %s5171_s2  ;;  %p5177_p6 = scmp.lt.s32.totalorder %s5171_s2, %s5171_s2 }
  0x4a   :  { %p5178_p7 = por %p5177_p6, %p5176_p5 }
  0x4c   :  { %p5179_p8 = pnand %p5178_p7, %p5172_p4 }
  0x4e   :  { %5182 = shalt.err (!%p5179_p8)
}
  0x4f   :  { %69 = dma.hbm_to_vmem [thread:$0]  %s6264_s5, 32, %s67_s0, [#allocation9]  }
  0x50   :  { %s5183_s21 = scalar_lea.hbm %s6267_s8, 512 }
  0x51   :  { %p5184_p9 = scmp.ne.s32.totalorder %s6267_s8, %s5183_s21  ;;  %p5187_p10 = scmp.lt.u32.totalorder %s5183_s21, %s6267_s8 }
  0x53   :  { %p5189_p11 = pnand %p5187_p10, %p5184_p9 }
  0x55   :  { %5192 = shalt.err (!%p5189_p11)
}
  0x56   :  { %s5193_s22 = scalar_lea.vmem %s5364_s30, 512  ;;  %p5198_p13 = scmp.lt.s32.totalorder %s5364_s30, %s5364_s30 }
  0x57   :  { %p5194_p12 = scmp.ne.s32.totalorder %s5364_s30, %s5193_s22  ;;  %p5199_p0 = scmp.lt.s32.totalorder %s5193_s22, %s5193_s22 }
  0x59   :  { %p5200_p1 = por %p5199_p0, %p5198_p13 }
  0x5b   :  { %p5201_p2 = pnand %p5200_p1, %p5194_p12 }
  0x5d   :  { %5204 = shalt.err (!%p5201_p2)
}
  0x5e   :  { %95 = dma.hbm_to_vmem [thread:$0]  %s6267_s8, 512, %s5364_s30, [#allocation12], %s5238_s13, %s5238_s13, %s5239_s14  }
  0x5f   :  { %s5247_s15 = smov [#allocation14]   ;;  %s5205_s23 = scalar_lea.hbm %s6268_s9, 32 }
  0x60   :  { %s102_s16 = sshll.u32 %s5247_s15, 4  ;;  %p5206_p3 = scmp.ne.s32.totalorder %s6268_s9, %s5205_s23  ;;  %s103_s16 = int_to_ptr.vmem [resolvable:$true] %s102_s16 }
  0x61   :  { %p5209_p4 = scmp.lt.u32.totalorder %s5205_s23, %s6268_s9 }
  0x63   :  { %p5211_p5 = pnand %p5209_p4, %p5206_p3 }
  0x65   :  { %5214 = shalt.err (!%p5211_p5)
}
  0x66   :  { %s5215_s7 = scalar_lea.vmem %s103_s16, 32  ;;  %p5220_p7 = scmp.lt.s32.totalorder %s103_s16, %s103_s16 }
  0x67   :  { %p5216_p6 = scmp.ne.s32.totalorder %s103_s16, %s5215_s7  ;;  %p5221_p8 = scmp.lt.s32.totalorder %s5215_s7, %s5215_s7 }
  0x69   :  { %p5222_p9 = por %p5221_p8, %p5220_p7 }
  0x6b   :  { %p5223_p10 = pnand %p5222_p9, %p5216_p6 }
  0x6d   :  { %5226 = shalt.err (!%p5223_p10)
}
  0x6e   :  { %105 = dma.hbm_to_vmem [thread:$0]  %s6268_s9, 32, %s103_s16, [#allocation15]  }
  0x6f   :  { %5227 = dma.done.wait [#allocation6], 32  }
  0x70   :  { %5228 = vsyncadd [#allocation6], 4294967264 }
  0x71   :  { %5229 = dma.done.wait [#allocation5], 4096  }
  0x72   :  { %5230 = vsyncadd [#allocation5], 4294963200 }
  0x73   :  { %5231 = dma.done.wait [#allocation9], 544  }
  0x74   :  { %5232 = vsyncadd [#allocation9], 4294966752 }
  0x75   :  { %5233 = dma.done.wait [#allocation12], 1024  }
  0x76   :  { %5234 = vsyncadd [#allocation12], 4294966272 }
  0x77   :  { %5235 = dma.done.wait [#allocation15], 32  }
  0x78   :  { %5236 = vsyncadd [#allocation15], 4294967264 }
  0x79   :  { %131 = sfence }
  0x7a   :  { %v213_v0 = vld [vmem:[#allocation7 + $0x8] sm:$0xff]  ;;  %v215_v1 = vld [vmem:[#allocation7 + $0x18] sm:$0xff]  ;;  %v212_v2 = vld [vmem:[#allocation7] sm:$0xff]  ;;  %v5248_v7 = vmov 0.0|0.0   ;;  %v5249_v8 = vmov 0.0   ;;  %s5420_s9 = sld [smem:[#allocation4]] }
  0x7b   :  { %v4558_v3 = vpack.c.bf16 %v215_v1, %v213_v0  ;;  %v214_v4 = vld [vmem:[#allocation7 + $0x10] sm:$0xff]  ;;  %v217_v5 = vld [vmem:[#allocation7 + $0x28] sm:$0xff]  ;;  %v219_v6 = vld [vmem:[#allocation7 + $0x38] sm:$0xff]  ;;  %4590 = vmatprep.subr.bf16.mxu1 %v5248_v7  ;;  %328 = vmatprep.mubr.f32.mxu0 %v5249_v8  ;;  %132 = vst [vmem:[#allocation2] sm:$0xff] %v5249_v8  ;;  %s5422_s14 = sld [smem:[#allocation4 + $0x80]]  ;;  %vm5250_vm0 = vmmov 0  }
  0x7c   :  { %133 = vst [vmem:[#allocation2 + $0x8] sm:$0xff] %v5249_v8  ;;  %134 = vst [vmem:[#allocation2 + $0x10] sm:$0xff] %v5249_v8  ;;  %v4560_v9 = vpack.c.bf16 %v214_v4, %v212_v2  ;;  %v4562_v10 = vpack.c.bf16 %v219_v6, %v217_v5  ;;  %v216_v11 = vld [vmem:[#allocation7 + $0x20] sm:$0xff]  ;;  %v218_v12 = vld [vmem:[#allocation7 + $0x30] sm:$0xff]  ;;  %4195 = vmatprep.mubr.msk.f32.mxu1 %vm5250_vm0, %v5249_v8  ;;  %s5426_s30 = sld [smem:[#allocation4 + $0x1]]  ;;  %s5430_s26 = sld [smem:[#allocation4 + $0x2]] }
  0x7d   :  { %135 = vst [vmem:[#allocation2 + $0x18] sm:$0xff] %v5249_v8  ;;  %136 = vst [vmem:[#allocation2 + $0x20] sm:$0xff] %v5249_v8  ;;  %v221_v13 = vld [vmem:[#allocation7 + $0x48] sm:$0xff]  ;;  %4559 = vmatprep.subr.bf16.mxu0 %v4558_v3  ;;  %v223_v14 = vld [vmem:[#allocation7 + $0x58] sm:$0xff]  ;;  %v4564_v15 = vpack.c.bf16 %v218_v12, %v216_v11  ;;  %s5428_s18 = sld [smem:[#allocation4 + $0x81]]  ;;  %s5432_s21 = sld [smem:[#allocation4 + $0x82]] }
  0x7e   :  { %137 = vst [vmem:[#allocation2 + $0x28] sm:$0xff] %v5249_v8  ;;  %138 = vst [vmem:[#allocation2 + $0x30] sm:$0xff] %v5249_v8  ;;  %4561 = vmatpush1.bf16.msra.mxu0 %v4560_v9  ;;  %v4566_v16 = vpack.c.bf16 %v223_v14, %v221_v13  ;;  %v220_v17 = vld [vmem:[#allocation7 + $0x40] sm:$0xff]  ;;  %v222_v18 = vld [vmem:[#allocation7 + $0x50] sm:$0xff]  ;;  %s5438_s4 = sld [smem:[#allocation4 + $0x3]]  ;;  %s5456_s17 = sld [smem:[#allocation4 + $0x4]] }
  0x7f   :  { %139 = vst [vmem:[#allocation2 + $0x38] sm:$0xff] %v5249_v8  ;;  %4563 = vmatprep.subr.bf16.mxu0 %v4562_v10  ;;  %v225_v19 = vld [vmem:[#allocation7 + $0x68] sm:$0xff]  ;;  %v227_v20 = vld [vmem:[#allocation7 + $0x78] sm:$0xff]  ;;  %v4568_v21 = vpack.c.bf16 %v222_v18, %v220_v17  ;;  %v224_v22 = vld [vmem:[#allocation7 + $0x60] sm:$0xff]  ;;  %s5444_s15 = sld [smem:[#allocation4 + $0x83]]  ;;  %s5503_s7 = sld [smem:[#allocation4 + $0x85]] }
  0x80   :  { %s141_s29 = scalar_lea.vmem %s6260_s1, %s5420_s9  ;;  %v4570_v23 = vpack.c.bf16 %v227_v20, %v225_v19  ;;  %v226_v24 = vld [vmem:[#allocation7 + $0x70] sm:$0xff]  ;;  %v244_v25 = vld [vmem:[%s6262_s3] sm:$0xff]  ;;  %v245_v26 = vld [vmem:[%s6262_s3 + $0x8] sm:$0xff]  ;;  %vm377_vm1 = vcmask 261120   ;;  %vm580_vm2 = vcmask 523520   ;;  %vm2068_vm3 = vcmask 523264  }
  0x81   :  { %s145_s0 = scalar_lea.vmem %s6260_s1, %s5422_s14  ;;  %v229_v27 = vld [vmem:[#allocation7 + $0x88] sm:$0xff]  ;;  %v231_v28 = vld [vmem:[#allocation7 + $0x98] sm:$0xff]  ;;  %v5458_v29 = vpack.c.bf16 %v245_v26, %v244_v25  ;;  %s5464_s14 = sld [smem:[#allocation4 + $0x84]]  ;;  %v5466_v30 = vld [vmem:[#allocation7 + $0x80] sm:$0xff]  ;;  %v4572_v34 = vpack.c.bf16 %v226_v24, %v224_v22  ;;  %v254_v25 = vlaneseq }
  0x82   :  { %4565 = vmatpush1.bf16.msra.mxu0 %v4564_v15  ;;  %s149_s2 = scalar_lea.vmem %s6260_s1, %s5426_s30  ;;  %v5468_v31 = vld [vmem:[#allocation7 + $0x90] sm:$0xff]  ;;  %v247_v33 = vld [vmem:[%s6262_s3 + $0x18] sm:$0xff]  ;;  %s157_s19 = scalar_lea.vmem %s6260_s1, %s5430_s26  ;;  %v233_v35 = vld [vmem:[#allocation7 + $0xa8] sm:$0xff]  ;;  %v4574_v41 = vpack.c.bf16 %v231_v28, %v229_v27 }
  0x83   :  { %4567 = vmatprep.subr.bf16.mxu0 %v4566_v16  ;;  %s153_s13 = scalar_lea.vmem %s6260_s1, %s5428_s18  ;;  %v246_v32 = vld [vmem:[%s6262_s3 + $0x10] sm:$0xff]  ;;  %s5480_s18 = sld [smem:[#allocation4 + $0x5]]  ;;  %v235_v36 = vld [vmem:[#allocation7 + $0xb8] sm:$0xff]  ;;  %4592 = vmatpush3.bf16.msra.mxu1 %v5458_v29  ;;  %v142_v38 = vld [vmem:[%s141_s29] sm:$0x1]  ;;  %v4576_v49 = vpack.c.bf16 %v5468_v31, %v5466_v30  ;;  %v5581_v27 = vshrl.u32 %v254_v25, 7 }
  0x84   :  { %v5483_v37 = vpack.c.bf16 %v247_v33, %v246_v32  ;;  %v146_v39 = vld [vmem:[%s145_s0] sm:$0x1]  ;;  %s161_s24 = scalar_lea.vmem %s6260_s1, %s5432_s21  ;;  %4593 = vmatprep.subr.bf16.mxu1 %v5248_v7  ;;  %143 = vst [vmem:[#allocation2] sm:$0x1] %v142_v38  ;;  %s165_s0 = scalar_lea.vmem %s6260_s1, %s5438_s4  ;;  %v249_v47 = vld [vmem:[#allocation8 + $0x8] sm:$0xff]  ;;  %v234_v51 = vld [vmem:[#allocation7 + $0xb0] sm:$0xff]  ;;  %v4578_v54 = vpack.c.bf16 %v235_v36, %v233_v35 }
  0x85   :  { %v150_v40 = vld [vmem:[%s149_s2] sm:$0x1]  ;;  %147 = vst [vmem:[#allocation2 + $0x1] sm:$0x1] %v146_v39  ;;  %s169_s2 = scalar_lea.vmem %s6260_s1, %s5444_s15  ;;  %s173_s27 = scalar_lea.vmem %s6260_s1, %s5456_s17  ;;  %v250_v56 = vld [vmem:[#allocation8 + $0x10] sm:$0xff]  ;;  %v251_v57 = vld [vmem:[#allocation8 + $0x18] sm:$0xff] }
  0x86   :  { %4569 = vmatpush1.bf16.msra.mxu0 %v4568_v21  ;;  %151 = vst [vmem:[#allocation2 + $0x8] sm:$0x1] %v150_v40  ;;  %v154_v42 = vld [vmem:[%s153_s13] sm:$0x1]  ;;  %s5509_s4 = sld [smem:[#allocation4 + $0x6]]  ;;  %v237_v58 = vld [vmem:[#allocation7 + $0xc8] sm:$0xff]  ;;  %s185_s23 = scalar_lea.vmem %s6260_s1, %s5503_s7  ;;  %v5537_v62 = vpack.c.bf16 %v251_v57, %v250_v56 }
  0x87   :  { %4571 = vmatprep.subr.bf16.mxu0 %v4570_v23  ;;  %v158_v43 = vld [vmem:[%s157_s19] sm:$0x1]  ;;  %155 = vst [vmem:[#allocation2 + $0x9] sm:$0x1] %v154_v42  ;;  %4595 = vmatpush3.bf16.msra.mxu1 %v5483_v37  ;;  %s177_s28 = scalar_lea.vmem %s6260_s1, %s5464_s14  ;;  %s5520_s17 = sld [smem:[#allocation4 + $0x86]]  ;;  %v239_v59 = vld [vmem:[#allocation7 + $0xd8] sm:$0xff] }
  0x88   :  { %v162_v44 = vld [vmem:[%s161_s24] sm:$0x1]  ;;  %159 = vst [vmem:[#allocation2 + $0x10] sm:$0x1] %v158_v43  ;;  %4596 = vmatprep.subr.bf16.mxu1 %v5248_v7  ;;  %s5527_s19 = sld [smem:[#allocation4 + $0x7]]  ;;  %v4582_v63 = vpack.c.bf16 %v239_v59, %v237_v58  ;;  %v238_v1 = vld [vmem:[#allocation7 + $0xd0] sm:$0xff] }
  0x89   :  { %163 = vst [vmem:[#allocation2 + $0x11] sm:$0x1] %v162_v44  ;;  %v166_v45 = vld [vmem:[%s165_s0] sm:$0x1]  ;;  %s181_s16 = scalar_lea.vmem %s6260_s1, %s5480_s18  ;;  %s5529_s14 = sld [smem:[#allocation4 + $0x87]]  ;;  %v241_v3 = vld [vmem:[#allocation7 + $0xe8] sm:$0xff] }
  0x8a   :  { %v248_v46 = vld [vmem:[#allocation8] sm:$0xff]  ;;  %167 = vst [vmem:[#allocation2 + $0x18] sm:$0x1] %v166_v45  ;;  %4573 = vmatpush1.bf16.msra.mxu0 %v4572_v34  ;;  %4196 = vmatmul.mubr.f32.vlgmr.msra.gmra.mrb[0].mxu1 %v5249_v8  ;;  %v243_v4 = vld [vmem:[#allocation7 + $0xf8] sm:$0xff]  ;;  %v242_v13 = vld [vmem:[#allocation7 + $0xf0] sm:$0xff]  ;;  %v256_v30 = vsub.s32 0, %v5581_v27 }
  0x8b   :  { %v170_v48 = vld [vmem:[%s169_s2] sm:$0x1]  ;;  %v5518_v53 = vpack.c.bf16 %v249_v47, %v248_v46  ;;  %4575 = vmatprep.subr.bf16.mxu0 %v4574_v41  ;;  %4206 = vmatprep.mubr.msk.f32.mxu1 %vm5250_vm0, %v5249_v8  ;;  %v4586_v11 = vpack.c.bf16 %v243_v4, %v241_v3  ;;  %v260_v33 = vsub.s32 1, %v5581_v27 }
  0x8c   :  { %v232_v50 = vld [vmem:[#allocation7 + $0xa0] sm:$0xff]  ;;  %171 = vst [vmem:[#allocation2 + $0x19] sm:$0x1] %v170_v48  ;;  %s189_s24 = scalar_lea.vmem %s6260_s1, %s5509_s4  ;;  %s5253_s4 = smov 96  }
  0x8d   :  { %v174_v52 = vld [vmem:[%s173_s27] sm:$0x1]  ;;  %v4580_v61 = vpack.c.bf16 %v234_v51, %v232_v50  ;;  %4598 = vmatpush3.bf16.msra.mxu1 %v5518_v53  ;;  %s193_s0 = scalar_lea.vmem %s6260_s1, %s5520_s17  ;;  %s5252_s27 = smov 64  }
  0x8e   :  { %175 = vst [vmem:[#allocation2 + $0x20] sm:$0x1] %v174_v52  ;;  %v178_v55 = vld [vmem:[%s177_s28] sm:$0x1]  ;;  %4577 = vmatpush1.bf16.msra.mxu0 %v4576_v49  ;;  %4599 = vmatprep.subr.bf16.mxu1 %v5248_v7  ;;  %s197_s2 = scalar_lea.vmem %s6260_s1, %s5527_s19  ;;  %v205_v17 = vld [vmem:[#allocation2 + $0x8] sm:$0xff] }
  0x8f   :  { %179 = vst [vmem:[#allocation2 + $0x21] sm:$0x1] %v178_v55  ;;  %v182_v60 = vld [vmem:[%s181_s16] sm:$0x1]  ;;  %4579 = vmatprep.subr.bf16.mxu0 %v4578_v54  ;;  %s201_s13 = scalar_lea.vmem %s6260_s1, %s5529_s14  ;;  %s5251_s1 = smov 32  }
  0x90   :  { %183 = vst [vmem:[#allocation2 + $0x28] sm:$0x1] %v182_v60  ;;  %v236_v0 = vld [vmem:[#allocation7 + $0xc0] sm:$0xff]  ;;  %v206_v18 = vld [vmem:[#allocation2 + $0x10] sm:$0xff] }
  0x91   :  { %v186_v2 = vld [vmem:[%s185_s23] sm:$0x1]  ;;  %v4584_v9 = vpack.c.bf16 %v238_v1, %v236_v0  ;;  %4601 = vmatpush3.bf16.msra.mxu1 %v5537_v62 }
  0x92   :  { %187 = vst [vmem:[#allocation2 + $0x29] sm:$0x1] %v186_v2  ;;  %v190_v5 = vld [vmem:[%s189_s24] sm:$0x1]  ;;  %4581 = vmatpush1.bf16.msra.mxu0 %v4580_v61  ;;  %4602 = vmatprep.subr.bf16.mxu1 %v5248_v7 }
  0x93   :  { %191 = vst [vmem:[#allocation2 + $0x30] sm:$0x1] %v190_v5  ;;  %v194_v6 = vld [vmem:[%s193_s0] sm:$0x1]  ;;  %4583 = vmatprep.subr.bf16.mxu0 %v4582_v63  ;;  %v207_v19 = vld [vmem:[#allocation2 + $0x18] sm:$0xff] }
  0x94   :  { %195 = vst [vmem:[#allocation2 + $0x31] sm:$0x1] %v194_v6  ;;  %v198_v10 = vld [vmem:[%s197_s2] sm:$0x1]  ;;  %4207 = vmatmul.mubr.f32.vlgmr.msra.gmra.mrb[2].mxu1 %v5249_v8 }
  0x95   :  { %v240_v12 = vld [vmem:[#allocation7 + $0xe0] sm:$0xff]  ;;  %199 = vst [vmem:[#allocation2 + $0x38] sm:$0x1] %v198_v10  ;;  %4604 = vmatpush3.bf16.msra.mxu1 %v5458_v29  ;;  %4217 = vmatprep.mubr.msk.f32.mxu1 %vm5250_vm0, %v5249_v8 }
  0x96   :  { %v202_v14 = vld [vmem:[%s201_s13] sm:$0x1]  ;;  %4585 = vmatpush1.bf16.msra.mxu0 %v4584_v9  ;;  %v4588_v15 = vpack.c.bf16 %v242_v13, %v240_v12  ;;  %4605 = vmatprep.subr.bf16.mxu1 %v5248_v7 }
  0x97   :  { %203 = vst [vmem:[#allocation2 + $0x39] sm:$0x1] %v202_v14  ;;  %4587 = vmatprep.subr.bf16.mxu0 %v4586_v11  ;;  %v204_v16 = vld [vmem:[#allocation2] sm:$0xff] }
  0x98   :  { %v208_v20 = vld [vmem:[#allocation2 + $0x20] sm:$0xff] }
  0x99   :  { %4607 = vmatpush3.bf16.msra.mxu1 %v5483_v37  ;;  %v209_v21 = vld [vmem:[#allocation2 + $0x28] sm:$0xff]  ;;  %v252_v32 = vld [vmem:[#allocation10] sm:$0x3] }
  0x9a   :  { %4589 = vmatpush1.bf16.msra.mxu0 %v4588_v15  ;;  %4608 = vmatprep.subr.bf16.mxu1 %v5248_v7  ;;  %v257_v34 = vrot.slane %v252_v32, %v256_v30  ;;  %v261_v35 = vrot.slane %v252_v32, %v260_v33 }
  0x9b   :  { %4644 = vmatprep.subr.bf16.mxu0 %v5248_v7  ;;  %v210_v22 = vld [vmem:[#allocation2 + $0x30] sm:$0xff] }
  0x9d   :  { %329 = vmatmul.mubr.f32.vlgmr.msra.gmra.mrb[0].mxu0 %v204_v16 }
  0x9e   :  { %334 = vmatprep.mubr.f32.mxu0 %v5249_v8  ;;  %4646 = vmatpush3.bf16.msra.mxu0 %v5518_v53  ;;  %v211_v23 = vld [vmem:[#allocation2 + $0x38] sm:$0xff] }
  0x9f   :  { %4647 = vmatprep.subr.bf16.mxu0 %v5248_v7 }
  0xa1   :  { %335 = vmatmul.mubr.f32.gmra.mrb[2].mxu0 %v205_v17 }
  0xa2   :  { %340 = vmatprep.mubr.f32.mxu0 %v5249_v8  ;;  %4649 = vmatpush3.bf16.msra.mxu0 %v5537_v62 }
  0xa3   :  { %4656 = vmatprep.subr.bf16.mxu0 %v5248_v7 }
  0xa5   :  { %341 = vmatmul.mubr.f32.gmra.mrb[4].mxu0 %v206_v18 }
  0xa6   :  { %346 = vmatprep.mubr.f32.mxu0 %v5249_v8 }
  0xa9   :  { %347 = vmatmul.mubr.f32.gmra.mrb[6].mxu0 %v207_v19 }
  0xaa   :  { %352 = vmatprep.mubr.f32.mxu0 %v5249_v8 }
  0xad   :  { %353 = vmatmul.mubr.f32.gmra.mrb[8].mxu0 %v208_v20 }
  0xae   :  { %358 = vmatprep.mubr.f32.mxu0 %v5249_v8 }
  0xb1   :  { %359 = vmatmul.mubr.f32.gmra.mrb[10].mxu0 %v209_v21 }
  0xb2   :  { %364 = vmatprep.mubr.f32.mxu0 %v5249_v8 }
  0xb5   :  { %365 = vmatmul.mubr.f32.gmra.mrb[12].mxu0 %v210_v22 }
  0xb6   :  { %370 = vmatprep.mubr.f32.mxu0 %v5249_v8 }
  0xb9   :  { %371 = vmatmul.mubr.f32.gmra.mrb[14].mxu0 %v211_v23 }
  0xba   :  { %4294 = vmatprep.mubr.msk.f32.mxu0 %vm5250_vm0, %v5249_v8 }
 0x15d   :  { %v447_v24 = vpop.f32.mrb[0].mxu1 }
 0x15e   :  { %v4197_v26 = vpop.f32.mrb[1].mxu1 }
 0x167   :  { %v518_v28 = vpop.f32.mrb[2].mxu1 }
 0x168   :  { %v4208_v31 = vpop.f32.mrb[3].mxu1 }
 0x170   :  { %v330_v36 = vpop.f32.mrb[0].mxu0 }
 0x171   :  { %v331_v38 = vadd.f32 %v330_v36, %v257_v34  ;;  %v332_v39 = vpop.f32.mrb[1].mxu0 }
 0x172   :  { %v5589_v40 = vadd.f32 %v332_v39, %v261_v35 }
 0x173   :  { %v451_v41 = vadd.f32 %v447_v24, %v331_v38 }
 0x174   :  { %v336_v42 = vpop.f32.mrb[2].mxu0 }
 0x175   :  { %4827 = vtanh.f32 %v451_v41  ;;  %v5591_v43 = vadd.f32 %v336_v42, %v257_v34  ;;  %v338_v44 = vpop.f32.mrb[3].mxu0  ;;  %v3948_v13 = vmul.f32 -1.442695, %v451_v41 }
 0x176   :  { %v5593_v45 = vadd.f32 %v338_v44, %v261_v35 }
 0x178   :  { %v342_v46 = vpop.f32.mrb[4].mxu0 }
 0x179   :  { %v5595_v47 = vadd.f32 %v342_v46, %v257_v34  ;;  %v344_v48 = vpop.f32.mrb[5].mxu0 }
 0x17a   :  { %v5597_v49 = vadd.f32 %v344_v48, %v261_v35 }
 0x17c   :  { %v348_v50 = vpop.f32.mrb[6].mxu0 }
 0x17d   :  { %v5599_v51 = vadd.f32 %v348_v50, %v257_v34  ;;  %v350_v52 = vpop.f32.mrb[7].mxu0 }
 0x17e   :  { %v5601_v54 = vadd.f32 %v350_v52, %v261_v35 }
 0x17f   :  { %v4828_v55 = vpop.eup %4827 }
 0x180   :  { %v354_v56 = vpop.f32.mrb[8].mxu0  ;;  %539 = vrot.lane.b32.xlu0 %v4828_v55, %s5251_s1 }
 0x181   :  { %v5604_v57 = vadd.f32 %v354_v56, %v257_v34  ;;  %v356_v58 = vpop.f32.mrb[9].mxu0 }
 0x182   :  { %v5606_v59 = vadd.f32 %v356_v58, %v261_v35 }
 0x184   :  { %v360_v60 = vpop.f32.mrb[10].mxu0 }
 0x185   :  { %v5608_v61 = vadd.f32 %v360_v60, %v257_v34  ;;  %v362_v63 = vpop.f32.mrb[11].mxu0 }
 0x186   :  { %v5610_v0 = vadd.f32 %v362_v63, %v261_v35 }
 0x188   :  { %v366_v1 = vpop.f32.mrb[12].mxu0 }
 0x189   :  { %v5612_v2 = vadd.f32 %v366_v1, %v257_v34  ;;  %v368_v3 = vpop.f32.mrb[13].mxu0 }
 0x18a   :  { %v5614_v4 = vadd.f32 %v368_v3, %v261_v35 }
 0x18c   :  { %v372_v5 = vpop.f32.mrb[14].mxu0 }
 0x18d   :  { %v5616_v6 = vadd.f32 %v372_v5, %v257_v34  ;;  %v374_v9 = vpop.f32.mrb[15].mxu0 }
 0x18e   :  { %v375_v10 = vadd.f32 %v374_v9, %v261_v35 }
 0x190   :  { %v522_v11 = vadd.f32 %v518_v28, %v375_v10 }
 0x192   :  { %4829 = vtanh.f32 %v522_v11  ;;  %v3949_v16 = vmul.f32 -1.442695, %v522_v11 }
 0x193   :  { %4831 = vpow2.f32 %v3948_v13 }
 0x19c   :  { %v4830_v12 = vpop.eup %4829 }
 0x19d   :  { %550 = vrot.lane.b32.xlu0 %v4830_v12, %s5251_s1  ;;  %v4832_v14 = vpop.eup %4831 }
 0x19e   :  { %v526_v15 = vadd.f32 1.0, %v4832_v14 }
 0x1a0   :  { %4833 = vrcp.f32 %v526_v15 }
 0x1a1   :  { %4835 = vpow2.f32 %v3949_v16 }
 0x1aa   :  { %v4834_v17 = vpop.eup %4833 }
 0x1ab   :  { %v4836_v20 = vpop.eup %4835  ;;  %v537_v25 = vmul.f32 0.0, %v4834_v17 }
 0x1ac   :  { %v532_v21 = vadd.f32 1.0, %v4836_v20 }
 0x1ae   :  { %4837 = vrcp.f32 %v532_v21 }
 0x1b8   :  { %v4838_v22 = vpop.eup %4837 }
 0x1b9   :  { %v548_v32 = vmul.f32 0.0, %v4838_v22 }
 0x1f2   :  { %v540_v18 = vpop.permute.xlu0 %539 }
 0x1f3   :  { %v542_v19 = vmul.f32 %v4834_v17, %v540_v18 }
 0x1f5   :  { %544 = vrot.lane.b32.xlu1 %v542_v19, %s5251_s1 }
 0x20f   :  { %v551_v23 = vpop.permute.xlu0 %550 }
 0x210   :  { %v553_v24 = vmul.f32 %v4838_v22, %v551_v23 }
 0x212   :  { %555 = vrot.lane.b32.xlu1 %v553_v24, %s5251_s1 }
 0x267   :  { %v545_v26 = vpop.permute.xlu1 %544 }
 0x268   :  { %v5621_v28 = vadd.f32 %v545_v26, %v537_v25 }
 0x26a   :  { %4839 = vtanh.f32 %v5621_v28 }
 0x274   :  { %v4840_v31 = vpop.eup %4839 }
 0x275   :  { %561 = vrot.lane.b32.xlu0 %v4840_v31, %s5251_s1 }
 0x284   :  { %v556_v34 = vpop.permute.xlu1 %555 }
 0x285   :  { %v5625_v35 = vadd.f32 %v556_v34, %v548_v32 }
 0x287   :  { %4841 = vtanh.f32 %v5625_v35 }
 0x291   :  { %v4842_v36 = vpop.eup %4841 }
 0x292   :  { %567 = vrot.lane.b32.xlu1 %v4842_v36, %s5251_s1 }
 0x2e7   :  { %v562_v38 = vpop.permute.xlu0 %561 }
 0x2e8   :  { %v564_v39 = vmul.f32 %v4834_v17, %v562_v38 }
 0x2ea   :  { %572 = vrot.lane.b32.xlu0 %v564_v39, %s5252_s27 }
 0x304   :  { %v568_v41 = vpop.permute.xlu1 %567 }
 0x305   :  { %v5630_v42 = vmul.f32 %v4838_v22, %v568_v41 }
 0x307   :  { %655 = vrot.lane.b32.xlu1 %v5630_v42, %s5252_s27 }
 0x35c   :  { %v573_v44 = vpop.permute.xlu0 %572 }
 0x35d   :  { %575 = vst.msk [vmem:[#allocation3] sm:$0xff] %vm377_vm1, %v573_v44  ;;  %4218 = vmatmul.mubr.msk.f32.vlgmr.msra.gmra.mrb[4].mxu1 %vm377_vm1, %v573_v44 }
 0x35e   :  { %4610 = vmatpush3.bf16.msra.mxu1 %v5518_v53  ;;  %4228 = vmatprep.mubr.msk.f32.mxu1 %vm5250_vm0, %v5249_v8 }
 0x35f   :  { %4611 = vmatprep.subr.bf16.mxu1 %v5248_v7 }
 0x362   :  { %4613 = vmatpush3.bf16.msra.mxu1 %v5537_v62 }
 0x363   :  { %4614 = vmatprep.subr.bf16.mxu1 %v5248_v7 }
 0x379   :  { %v656_v46 = vpop.permute.xlu1 %655 }
 0x37a   :  { %4229 = vmatmul.mubr.msk.f32.vlgmr.msra.gmra.mrb[6].mxu1 %vm377_vm1, %v656_v46 }
 0x37b   :  { %4616 = vmatpush3.bf16.msra.mxu1 %v5458_v29  ;;  %4239 = vmatprep.mubr.msk.f32.mxu1 %vm5250_vm0, %v5249_v8 }
 0x37c   :  { %4617 = vmatprep.subr.bf16.mxu1 %v5248_v7 }
 0x37f   :  { %4619 = vmatpush3.bf16.msra.mxu1 %v5483_v37 }
 0x380   :  { %4620 = vmatprep.subr.bf16.mxu1 %v5248_v7 }
 0x430   :  { %v650_v48 = vpop.f32.mrb[4].mxu1 }
 0x431   :  { %v654_v50 = vadd.f32 %v650_v48, %v5591_v43  ;;  %v4219_v52 = vpop.f32.mrb[5].mxu1 }
 0x433   :  { %4843 = vtanh.f32 %v654_v50  ;;  %v3952_v1 = vmul.f32 -1.442695, %v654_v50 }
 0x43d   :  { %v4844_v55 = vpop.eup %4843 }
 0x43e   :  { %746 = vrot.lane.b32.xlu0 %v4844_v55, %s5251_s1 }
 0x44d   :  { %v725_v56 = vpop.f32.mrb[6].mxu1 }
 0x44e   :  { %v729_v58 = vadd.f32 %v725_v56, %v5614_v4  ;;  %v4230_v60 = vpop.f32.mrb[7].mxu1 }
 0x450   :  { %4845 = vtanh.f32 %v729_v58  ;;  %v3953_v9 = vmul.f32 -1.442695, %v729_v58 }
 0x451   :  { %4847 = vpow2.f32 %v3952_v1 }
 0x45a   :  { %v4846_v63 = vpop.eup %4845 }
 0x45b   :  { %757 = vrot.lane.b32.xlu1 %v4846_v63, %s5251_s1  ;;  %v4848_v3 = vpop.eup %4847 }
 0x45c   :  { %v733_v5 = vadd.f32 1.0, %v4848_v3 }
 0x45e   :  { %4849 = vrcp.f32 %v733_v5 }
 0x45f   :  { %4851 = vpow2.f32 %v3953_v9 }
 0x468   :  { %v4850_v43 = vpop.eup %4849 }
 0x469   :  { %v4852_v12 = vpop.eup %4851  ;;  %v744_v16 = vmul.f32 %v4850_v43, %v5621_v28 }
 0x46a   :  { %v739_v13 = vadd.f32 1.0, %v4852_v12 }
 0x46c   :  { %4853 = vrcp.f32 %v739_v13 }
 0x476   :  { %v4854_v4 = vpop.eup %4853 }
 0x477   :  { %v755_v20 = vmul.f32 %v4854_v4, %v5625_v35 }
 0x4b0   :  { %v747_v10 = vpop.permute.xlu0 %746 }
 0x4b1   :  { %v749_v11 = vmul.f32 %v4850_v43, %v747_v10 }
 0x4b3   :  { %751 = vrot.lane.b32.xlu0 %v749_v11, %s5251_s1 }
 0x4cd   :  { %v758_v14 = vpop.permute.xlu1 %757 }
 0x4ce   :  { %v760_v15 = vmul.f32 %v4854_v4, %v758_v14 }
 0x4d0   :  { %762 = vrot.lane.b32.xlu1 %v760_v15, %s5251_s1 }
 0x525   :  { %v752_v17 = vpop.permute.xlu0 %751 }
 0x526   :  { %v754_v18 = vadd.f32 %v752_v17, %v744_v16 }
 0x528   :  { %4855 = vtanh.f32 %v754_v18 }
 0x532   :  { %v4856_v19 = vpop.eup %4855 }
 0x533   :  { %768 = vrot.lane.b32.xlu0 %v4856_v19, %s5251_s1 }
 0x542   :  { %v763_v21 = vpop.permute.xlu1 %762 }
 0x543   :  { %v765_v22 = vadd.f32 %v763_v21, %v755_v20 }
 0x545   :  { %4857 = vtanh.f32 %v765_v22 }
 0x54f   :  { %v4858_v23 = vpop.eup %4857 }
 0x550   :  { %774 = vrot.lane.b32.xlu1 %v4858_v23, %s5251_s1 }
 0x5a5   :  { %v769_v24 = vpop.permute.xlu0 %768 }
 0x5a6   :  { %v771_v25 = vmul.f32 %v4850_v43, %v769_v24 }
 0x5a8   :  { %779 = vrot.lane.b32.xlu0 %v771_v25, %s5252_s27 }
 0x5c2   :  { %v775_v26 = vpop.permute.xlu1 %774 }
 0x5c3   :  { %v5660_v28 = vmul.f32 %v4854_v4, %v775_v26 }
 0x5c5   :  { %861 = vrot.lane.b32.xlu1 %v5660_v28, %s5252_s27 }
 0x61a   :  { %v780_v31 = vpop.permute.xlu0 %779 }
 0x61b   :  { %782 = vst.msk [vmem:[#allocation3 + $0x8] sm:$0xff] %vm377_vm1, %v780_v31  ;;  %4240 = vmatmul.mubr.msk.f32.vlgmr.msra.gmra.mrb[8].mxu1 %vm377_vm1, %v780_v31 }
 0x61c   :  { %4622 = vmatpush3.bf16.msra.mxu1 %v5518_v53  ;;  %4250 = vmatprep.mubr.msk.f32.mxu1 %vm5250_vm0, %v5249_v8 }
 0x61d   :  { %4623 = vmatprep.subr.bf16.mxu1 %v5248_v7 }
 0x620   :  { %4625 = vmatpush3.bf16.msra.mxu1 %v5537_v62 }
 0x621   :  { %4626 = vmatprep.subr.bf16.mxu1 %v5248_v7 }
 0x637   :  { %v862_v32 = vpop.permute.xlu1 %861 }
 0x638   :  { %4251 = vmatmul.mubr.msk.f32.vlgmr.msra.gmra.mrb[10].mxu1 %vm377_vm1, %v862_v32 }
 0x639   :  { %4628 = vmatpush3.bf16.msra.mxu1 %v5458_v29  ;;  %4261 = vmatprep.mubr.msk.f32.mxu1 %vm5250_vm0, %v5249_v8 }
 0x63a   :  { %4629 = vmatprep.subr.bf16.mxu1 %v5248_v7 }
 0x63d   :  { %4631 = vmatpush3.bf16.msra.mxu1 %v5483_v37 }
 0x63e   :  { %4632 = vmatprep.subr.bf16.mxu1 %v5248_v7 }
 0x6ee   :  { %v856_v34 = vpop.f32.mrb[8].mxu1 }
 0x6ef   :  { %v860_v35 = vadd.f32 %v856_v34, %v5595_v47  ;;  %v4241_v36 = vpop.f32.mrb[9].mxu1 }
 0x6f1   :  { %4859 = vtanh.f32 %v860_v35  ;;  %v3956_v48 = vmul.f32 -1.442695, %v860_v35 }
 0x6fb   :  { %v4860_v38 = vpop.eup %4859 }
 0x6fc   :  { %952 = vrot.lane.b32.xlu0 %v4860_v38, %s5251_s1 }
 0x70b   :  { %v931_v39 = vpop.f32.mrb[10].mxu1 }
 0x70c   :  { %v935_v41 = vadd.f32 %v931_v39, %v5610_v0  ;;  %v4252_v44 = vpop.f32.mrb[11].mxu1 }
 0x70e   :  { %4861 = vtanh.f32 %v935_v41  ;;  %v3957_v55 = vmul.f32 -1.442695, %v935_v41 }
 0x70f   :  { %4863 = vpow2.f32 %v3956_v48 }
 0x718   :  { %v4862_v46 = vpop.eup %4861 }
 0x719   :  { %963 = vrot.lane.b32.xlu1 %v4862_v46, %s5251_s1  ;;  %v4864_v50 = vpop.eup %4863 }
 0x71a   :  { %v939_v52 = vadd.f32 1.0, %v4864_v50 }
 0x71c   :  { %4865 = vrcp.f32 %v939_v52 }
 0x71d   :  { %4867 = vpow2.f32 %v3957_v55 }
 0x726   :  { %v4866_v47 = vpop.eup %4865 }
 0x727   :  { %v4868_v60 = vpop.eup %4867  ;;  %v950_v5 = vmul.f32 %v4866_v47, %v754_v18 }
 0x728   :  { %v945_v63 = vadd.f32 1.0, %v4868_v60 }
 0x72a   :  { %4869 = vrcp.f32 %v945_v63 }
 0x734   :  { %v4870_v0 = vpop.eup %4869 }
 0x735   :  { %v961_v11 = vmul.f32 %v4870_v0, %v765_v22 }
 0x76e   :  { %v953_v56 = vpop.permute.xlu0 %952 }
 0x76f   :  { %v955_v58 = vmul.f32 %v4866_v47, %v953_v56 }
 0x771   :  { %957 = vrot.lane.b32.xlu0 %v955_v58, %s5251_s1 }
 0x78b   :  { %v964_v1 = vpop.permute.xlu1 %963 }
 0x78c   :  { %v966_v3 = vmul.f32 %v4870_v0, %v964_v1 }
 0x78e   :  { %968 = vrot.lane.b32.xlu1 %v966_v3, %s5251_s1 }
 0x7e3   :  { %v958_v9 = vpop.permute.xlu0 %957 }
 0x7e4   :  { %v960_v43 = vadd.f32 %v958_v9, %v950_v5 }
 0x7e6   :  { %4871 = vtanh.f32 %v960_v43 }
 0x7f0   :  { %v4872_v10 = vpop.eup %4871 }
 0x7f1   :  { %974 = vrot.lane.b32.xlu0 %v4872_v10, %s5251_s1 }
 0x800   :  { %v969_v12 = vpop.permute.xlu1 %968 }
 0x801   :  { %v971_v13 = vadd.f32 %v969_v12, %v961_v11 }
 0x803   :  { %4873 = vtanh.f32 %v971_v13 }
 0x80d   :  { %v4874_v4 = vpop.eup %4873 }
 0x80e   :  { %980 = vrot.lane.b32.xlu1 %v4874_v4, %s5251_s1 }
 0x863   :  { %v975_v14 = vpop.permute.xlu0 %974 }
 0x864   :  { %v977_v15 = vmul.f32 %v4866_v47, %v975_v14 }
 0x866   :  { %985 = vrot.lane.b32.xlu0 %v977_v15, %s5252_s27 }
 0x880   :  { %v981_v16 = vpop.permute.xlu1 %980 }
 0x881   :  { %v5688_v17 = vmul.f32 %v4870_v0, %v981_v16 }
 0x883   :  { %1067 = vrot.lane.b32.xlu1 %v5688_v17, %s5252_s27 }
 0x8d8   :  { %v986_v18 = vpop.permute.xlu0 %985 }
 0x8d9   :  { %988 = vst.msk [vmem:[#allocation3 + $0x10] sm:$0xff] %vm377_vm1, %v986_v18  ;;  %4262 = vmatmul.mubr.msk.f32.vlgmr.msra.gmra.mrb[12].mxu1 %vm377_vm1, %v986_v18 }
 0x8da   :  { %4634 = vmatpush3.bf16.msra.mxu1 %v5518_v53  ;;  %4272 = vmatprep.mubr.msk.f32.mxu1 %vm5250_vm0, %v5249_v8 }
 0x8db   :  { %4635 = vmatprep.subr.bf16.mxu1 %v5248_v7 }
 0x8de   :  { %4637 = vmatpush3.bf16.msra.mxu1 %v5537_v62 }
 0x8df   :  { %4638 = vmatprep.subr.bf16.mxu1 %v5248_v7 }
 0x8f5   :  { %v1068_v19 = vpop.permute.xlu1 %1067 }
 0x8f6   :  { %4273 = vmatmul.mubr.msk.f32.vlgmr.msra.gmra.mrb[14].mxu1 %vm377_vm1, %v1068_v19 }
 0x8f7   :  { %4640 = vmatpush3.bf16.msra.mxu1 %v5458_v29  ;;  %4283 = vmatprep.mubr.msk.f32.mxu1 %vm5250_vm0, %v5249_v8 }
 0x8f8   :  { %4641 = vmatprep.subr.bf16.mxu1 %v5248_v7 }
 0x8fb   :  { %4643 = vmatpush3.bf16.msra.mxu1 %v5483_v37 }
 0x8fc   :  { %4650 = vmatprep.subr.bf16.mxu1 %v5248_v7 }
 0x9ac   :  { %v1062_v20 = vpop.f32.mrb[12].mxu1 }
 0x9ad   :  { %v1066_v21 = vadd.f32 %v1062_v20, %v5599_v51  ;;  %v4263_v22 = vpop.f32.mrb[13].mxu1 }
 0x9af   :  { %4875 = vtanh.f32 %v1066_v21  ;;  %v3960_v32 = vmul.f32 -1.442695, %v1066_v21 }
 0x9b9   :  { %v4876_v23 = vpop.eup %4875 }
 0x9ba   :  { %1158 = vrot.lane.b32.xlu1 %v4876_v23, %s5251_s1 }
 0x9c9   :  { %v1137_v24 = vpop.f32.mrb[14].mxu1 }
 0x9ca   :  { %v1141_v25 = vadd.f32 %v1137_v24, %v5606_v59  ;;  %v4274_v26 = vpop.f32.mrb[15].mxu1 }
 0x9cc   :  { %4877 = vtanh.f32 %v1141_v25  ;;  %v3961_v36 = vmul.f32 -1.442695, %v1141_v25 }
 0x9cd   :  { %4879 = vpow2.f32 %v3960_v32 }
 0x9d6   :  { %v4878_v31 = vpop.eup %4877 }
 0x9d7   :  { %1169 = vrot.lane.b32.xlu0 %v4878_v31, %s5251_s1  ;;  %v4880_v34 = vpop.eup %4879 }
 0x9d8   :  { %v1145_v35 = vadd.f32 1.0, %v4880_v34 }
 0x9da   :  { %4881 = vrcp.f32 %v1145_v35 }
 0x9db   :  { %4883 = vpow2.f32 %v3961_v36 }
 0x9e4   :  { %v4882_v51 = vpop.eup %4881 }
 0x9e5   :  { %v4884_v41 = vpop.eup %4883  ;;  %v1156_v50 = vmul.f32 %v4882_v51, %v960_v43 }
 0x9e6   :  { %v1151_v44 = vadd.f32 1.0, %v4884_v41 }
 0x9e8   :  { %4885 = vrcp.f32 %v1151_v44 }
 0x9f2   :  { %v4886_v59 = vpop.eup %4885 }
 0x9f3   :  { %v1167_v56 = vmul.f32 %v4886_v59, %v971_v13 }
 0xa2c   :  { %v1159_v38 = vpop.permute.xlu1 %1158 }
 0xa2d   :  { %v1161_v39 = vmul.f32 %v4882_v51, %v1159_v38 }
 0xa2f   :  { %1163 = vrot.lane.b32.xlu1 %v1161_v39, %s5251_s1 }
 0xa49   :  { %v1170_v46 = vpop.permute.xlu0 %1169 }
 0xa4a   :  { %v1172_v48 = vmul.f32 %v4886_v59, %v1170_v46 }
 0xa4c   :  { %1174 = vrot.lane.b32.xlu0 %v1172_v48, %s5251_s1 }
 0xaa1   :  { %v1164_v52 = vpop.permute.xlu1 %1163 }
 0xaa2   :  { %v1166_v55 = vadd.f32 %v1164_v52, %v1156_v50 }
 0xaa4   :  { %4887 = vtanh.f32 %v1166_v55 }
 0xaae   :  { %v4888_v47 = vpop.eup %4887 }
 0xaaf   :  { %1180 = vrot.lane.b32.xlu1 %v4888_v47, %s5251_s1 }
 0xabe   :  { %v1175_v58 = vpop.permute.xlu0 %1174 }
 0xabf   :  { %v1177_v60 = vadd.f32 %v1175_v58, %v1167_v56 }
 0xac1   :  { %4889 = vtanh.f32 %v1177_v60 }
 0xacb   :  { %v4890_v63 = vpop.eup %4889 }
 0xacc   :  { %1186 = vrot.lane.b32.xlu0 %v4890_v63, %s5251_s1 }
 0xb21   :  { %v1181_v0 = vpop.permute.xlu1 %1180 }
 0xb22   :  { %v1183_v1 = vmul.f32 %v4882_v51, %v1181_v0 }
 0xb24   :  { %1191 = vrot.lane.b32.xlu1 %v1183_v1, %s5252_s27 }
 0xb3e   :  { %v1187_v3 = vpop.permute.xlu0 %1186 }
 0xb3f   :  { %v5716_v5 = vmul.f32 %v4886_v59, %v1187_v3 }
 0xb41   :  { %1273 = vrot.lane.b32.xlu0 %v5716_v5, %s5252_s27 }
 0xb96   :  { %v1192_v9 = vpop.permute.xlu1 %1191 }
 0xb97   :  { %1194 = vst.msk [vmem:[#allocation3 + $0x18] sm:$0xff] %vm377_vm1, %v1192_v9  ;;  %4284 = vmatmul.mubr.msk.f32.vlgmr.msra.gmra.mrb[16].mxu1 %vm377_vm1, %v1192_v9 }
 0xb98   :  { %4652 = vmatpush3.bf16.msra.mxu1 %v5458_v29  ;;  %4305 = vmatprep.mubr.msk.f32.mxu1 %vm5250_vm0, %v5249_v8 }
 0xb99   :  { %4653 = vmatprep.subr.bf16.mxu1 %v5248_v7 }
 0xb9c   :  { %4655 = vmatpush3.bf16.msra.mxu1 %v5483_v37 }
 0xb9d   :  { %4662 = vmatprep.subr.bf16.mxu1 %v5248_v7 }
 0xbb3   :  { %v1274_v43 = vpop.permute.xlu0 %1273 }
 0xbb4   :  { %4295 = vmatmul.mubr.msk.f32.vlgmr.msra.gmra.mrb[16].mxu0 %vm377_vm1, %v1274_v43 }
 0xbb5   :  { %4658 = vmatpush3.bf16.msra.mxu0 %v5518_v53  ;;  %4316 = vmatprep.mubr.msk.f32.mxu0 %vm5250_vm0, %v5249_v8 }
 0xbb6   :  { %4659 = vmatprep.subr.bf16.mxu0 %v5248_v7 }
 0xbb9   :  { %4661 = vmatpush3.bf16.msra.mxu0 %v5537_v62 }
 0xbba   :  { %4668 = vmatprep.subr.bf16.mxu0 %v5248_v7 }
 0xc6a   :  { %v1268_v10 = vpop.f32.mrb[16].mxu1 }
 0xc6b   :  { %v1272_v11 = vadd.f32 %v1268_v10, %v5604_v57  ;;  %v4285_v12 = vpop.f32.mrb[17].mxu1 }
 0xc6d   :  { %4891 = vtanh.f32 %v1272_v11  ;;  %v3964_v18 = vmul.f32 -1.442695, %v1272_v11 }
 0xc77   :  { %v4892_v13 = vpop.eup %4891 }
 0xc78   :  { %1364 = vrot.lane.b32.xlu1 %v4892_v13, %s5251_s1 }
 0xc87   :  { %v1343_v4 = vpop.f32.mrb[16].mxu0 }
 0xc88   :  { %v1347_v14 = vadd.f32 %v1343_v4, %v5601_v54  ;;  %v4296_v15 = vpop.f32.mrb[17].mxu0 }
 0xc8a   :  { %4893 = vtanh.f32 %v1347_v14  ;;  %v3965_v21 = vmul.f32 -1.442695, %v1347_v14 }
 0xc8b   :  { %4895 = vpow2.f32 %v3964_v18 }
 0xc94   :  { %v4894_v16 = vpop.eup %4893 }
 0xc95   :  { %1375 = vrot.lane.b32.xlu0 %v4894_v16, %s5251_s1  ;;  %v4896_v19 = vpop.eup %4895 }
 0xc96   :  { %v1351_v20 = vadd.f32 1.0, %v4896_v19 }
 0xc98   :  { %4897 = vrcp.f32 %v1351_v20 }
 0xc99   :  { %4899 = vpow2.f32 %v3965_v21 }
 0xca2   :  { %v4898_v57 = vpop.eup %4897 }
 0xca3   :  { %v4900_v24 = vpop.eup %4899  ;;  %v1362_v32 = vmul.f32 %v4898_v57, %v1166_v55 }
 0xca4   :  { %v1357_v25 = vadd.f32 1.0, %v4900_v24 }
 0xca6   :  { %4901 = vrcp.f32 %v1357_v25 }
 0xcb0   :  { %v4902_v54 = vpop.eup %4901 }
 0xcb1   :  { %v1373_v51 = vmul.f32 %v4902_v54, %v1177_v60 }
 0xcea   :  { %v1365_v22 = vpop.permute.xlu1 %1364 }
 0xceb   :  { %v1367_v23 = vmul.f32 %v4898_v57, %v1365_v22 }
 0xced   :  { %1369 = vrot.lane.b32.xlu1 %v1367_v23, %s5251_s1 }
 0xd07   :  { %v1376_v26 = vpop.permute.xlu0 %1375 }
 0xd08   :  { %v1378_v31 = vmul.f32 %v4902_v54, %v1376_v26 }
 0xd0a   :  { %1380 = vrot.lane.b32.xlu0 %v1378_v31, %s5251_s1 }
 0xd5f   :  { %v1370_v34 = vpop.permute.xlu1 %1369 }
 0xd60   :  { %v1372_v35 = vadd.f32 %v1370_v34, %v1362_v32 }
 0xd62   :  { %4903 = vtanh.f32 %v1372_v35 }
 0xd6c   :  { %v4904_v36 = vpop.eup %4903 }
 0xd6d   :  { %1386 = vrot.lane.b32.xlu1 %v4904_v36, %s5251_s1 }
 0xd7c   :  { %v1381_v38 = vpop.permute.xlu0 %1380 }
 0xd7d   :  { %v1383_v39 = vadd.f32 %v1381_v38, %v1373_v51 }
 0xd7f   :  { %4905 = vtanh.f32 %v1383_v39 }
 0xd89   :  { %v4906_v41 = vpop.eup %4905 }
 0xd8a   :  { %1392 = vrot.lane.b32.xlu0 %v4906_v41, %s5251_s1 }
 0xddf   :  { %v1387_v44 = vpop.permute.xlu1 %1386 }
 0xde0   :  { %v1389_v59 = vmul.f32 %v4898_v57, %v1387_v44 }
 0xde2   :  { %1397 = vrot.lane.b32.xlu1 %v1389_v59, %s5252_s27 }
 0xdfc   :  { %v1393_v46 = vpop.permute.xlu0 %1392 }
 0xdfd   :  { %v5744_v48 = vmul.f32 %v4902_v54, %v1393_v46 }
 0xdff   :  { %1479 = vrot.lane.b32.xlu0 %v5744_v48, %s5252_s27 }
 0xe54   :  { %v5748_v50 = vpop.permute.xlu1 %1397 }
 0xe55   :  { %4306 = vmatmul.mubr.msk.f32.vlgmr.msra.gmra.mrb[18].mxu1 %vm377_vm1, %v5748_v50 }
 0xe56   :  { %4664 = vmatpush3.bf16.msra.mxu1 %v5458_v29  ;;  %4327 = vmatprep.mubr.msk.f32.mxu1 %vm5250_vm0, %v5249_v8 }
 0xe57   :  { %4665 = vmatprep.subr.bf16.mxu1 %v5248_v7 }
 0xe5a   :  { %4667 = vmatpush3.bf16.msra.mxu1 %v5483_v37 }
 0xe5b   :  { %4674 = vmatprep.subr.bf16.mxu1 %v5248_v7 }
 0xe71   :  { %v1480_v52 = vpop.permute.xlu0 %1479 }
 0xe72   :  { %4317 = vmatmul.mubr.msk.f32.vlgmr.msra.gmra.mrb[18].mxu0 %vm377_vm1, %v1480_v52 }
 0xe73   :  { %4670 = vmatpush3.bf16.msra.mxu0 %v5518_v53  ;;  %4338 = vmatprep.mubr.msk.f32.mxu0 %vm5250_vm0, %v5249_v8 }
 0xe74   :  { %4671 = vmatprep.subr.bf16.mxu0 %v5248_v7 }
 0xe77   :  { %4673 = vmatpush3.bf16.msra.mxu0 %v5537_v62 }
 0xe78   :  { %4680 = vmatprep.subr.bf16.mxu0 %v5248_v7 }
 0xf28   :  { %v1474_v55 = vpop.f32.mrb[18].mxu1 }
 0xf29   :  { %v1478_v47 = vadd.f32 %v1474_v55, %v5608_v61  ;;  %v4307_v56 = vpop.f32.mrb[19].mxu1 }
 0xf2b   :  { %4907 = vtanh.f32 %v1478_v47  ;;  %v3968_v3 = vmul.f32 -1.442695, %v1478_v47 }
 0xf35   :  { %v4908_v58 = vpop.eup %4907 }
 0xf36   :  { %1570 = vrot.lane.b32.xlu1 %v4908_v58, %s5251_s1 }
 0xf45   :  { %v1549_v60 = vpop.f32.mrb[18].mxu0 }
 0xf46   :  { %v1553_v63 = vadd.f32 %v1549_v60, %v5597_v49  ;;  %v4318_v0 = vpop.f32.mrb[19].mxu0 }
 0xf48   :  { %4909 = vtanh.f32 %v1553_v63  ;;  %v3969_v10 = vmul.f32 -1.442695, %v1553_v63 }
 0xf49   :  { %4911 = vpow2.f32 %v3968_v3 }
 0xf52   :  { %v4910_v1 = vpop.eup %4909 }
 0xf53   :  { %1581 = vrot.lane.b32.xlu0 %v4910_v1, %s5251_s1  ;;  %v4912_v9 = vpop.eup %4911 }
 0xf54   :  { %v1557_v43 = vadd.f32 1.0, %v4912_v9 }
 0xf56   :  { %4913 = vrcp.f32 %v1557_v43 }
 0xf57   :  { %4915 = vpow2.f32 %v3969_v10 }
 0xf60   :  { %v4914_v61 = vpop.eup %4913 }
 0xf61   :  { %v4916_v13 = vpop.eup %4915  ;;  %v1568_v16 = vmul.f32 %v4914_v61, %v1372_v35 }
 0xf62   :  { %v1563_v4 = vadd.f32 1.0, %v4916_v13 }
 0xf64   :  { %4917 = vrcp.f32 %v1563_v4 }
 0xf6e   :  { %v4918_v49 = vpop.eup %4917 }
 0xf6f   :  { %v1579_v21 = vmul.f32 %v4918_v49, %v1383_v39 }
 0xfa8   :  { %v1571_v11 = vpop.permute.xlu1 %1570 }
 0xfa9   :  { %v1573_v12 = vmul.f32 %v4914_v61, %v1571_v11 }
 0xfab   :  { %1575 = vrot.lane.b32.xlu1 %v1573_v12, %s5251_s1 }
 0xfc5   :  { %v1582_v14 = vpop.permute.xlu0 %1581 }
 0xfc6   :  { %v1584_v15 = vmul.f32 %v4918_v49, %v1582_v14 }
 0xfc8   :  { %1586 = vrot.lane.b32.xlu0 %v1584_v15, %s5251_s1 }
0x101d   :  { %v1576_v18 = vpop.permute.xlu1 %1575 }
0x101e   :  { %v1578_v19 = vadd.f32 %v1576_v18, %v1568_v16 }
0x1020   :  { %4919 = vtanh.f32 %v1578_v19 }
0x102a   :  { %v4920_v20 = vpop.eup %4919 }
0x102b   :  { %1592 = vrot.lane.b32.xlu1 %v4920_v20, %s5251_s1 }
0x103a   :  { %v1587_v57 = vpop.permute.xlu0 %1586 }
0x103b   :  { %v1589_v22 = vadd.f32 %v1587_v57, %v1579_v21 }
0x103d   :  { %4921 = vtanh.f32 %v1589_v22 }
0x1047   :  { %v4922_v23 = vpop.eup %4921 }
0x1048   :  { %1598 = vrot.lane.b32.xlu0 %v4922_v23, %s5251_s1 }
0x109d   :  { %v1593_v24 = vpop.permute.xlu1 %1592 }
0x109e   :  { %v1595_v25 = vmul.f32 %v4914_v61, %v1593_v24 }
0x10a0   :  { %1603 = vrot.lane.b32.xlu1 %v1595_v25, %s5252_s27 }
0x10ba   :  { %v1599_v54 = vpop.permute.xlu0 %1598 }
0x10bb   :  { %v5774_v26 = vmul.f32 %v4918_v49, %v1599_v54 }
0x10bd   :  { %1685 = vrot.lane.b32.xlu0 %v5774_v26, %s5252_s27 }
0x1112   :  { %v5778_v31 = vpop.permute.xlu1 %1603 }
0x1113   :  { %4328 = vmatmul.mubr.msk.f32.vlgmr.msra.gmra.mrb[20].mxu1 %vm377_vm1, %v5778_v31 }
0x1114   :  { %4676 = vmatpush3.bf16.msra.mxu1 %v5458_v29  ;;  %4349 = vmatprep.mubr.msk.f32.mxu1 %vm5250_vm0, %v5249_v8 }
0x1115   :  { %4677 = vmatprep.subr.bf16.mxu1 %v5248_v7 }
0x1118   :  { %4679 = vmatpush3.bf16.msra.mxu1 %v5483_v37 }
0x112f   :  { %v1686_v32 = vpop.permute.xlu0 %1685 }
0x1130   :  { %4339 = vmatmul.mubr.msk.f32.vlgmr.msra.gmra.mrb[20].mxu0 %vm377_vm1, %v1686_v32 }
0x1131   :  { %4682 = vmatpush3.bf16.msra.mxu0 %v5518_v53  ;;  %4360 = vmatprep.mubr.msk.f32.mxu0 %vm5250_vm0, %v5249_v8 }
0x1132   :  { %4683 = vmatprep.subr.bf16.mxu0 %v5248_v7 }
0x1135   :  { %4685 = vmatpush3.bf16.msra.mxu0 %v5537_v62 }
0x1136   :  { %4702 = vmatprep.subr.bf16.mxu0 %v5248_v7 }
0x11e6   :  { %v1680_v29 = vpop.f32.mrb[20].mxu1 }
0x11e7   :  { %v1684_v34 = vadd.f32 %v1680_v29, %v5612_v2  ;;  %v4329_v35 = vpop.f32.mrb[21].mxu1 }
0x11e9   :  { %4923 = vtanh.f32 %v1684_v34  ;;  %v3972_v39 = vmul.f32 -1.442695, %v1684_v34 }
0x11f3   :  { %v4924_v37 = vpop.eup %4923 }
0x11f4   :  { %1776 = vrot.lane.b32.xlu1 %v4924_v37, %s5251_s1 }
0x1203   :  { %v1755_v36 = vpop.f32.mrb[20].mxu0 }
0x1204   :  { %v1759_v53 = vadd.f32 %v1755_v36, %v5593_v45  ;;  %v4340_v51 = vpop.f32.mrb[21].mxu0 }
0x1206   :  { %4925 = vtanh.f32 %v1759_v53  ;;  %v3973_v44 = vmul.f32 -1.442695, %v1759_v53 }
0x1207   :  { %4927 = vpow2.f32 %v3972_v39 }
0x1210   :  { %v4926_v38 = vpop.eup %4925 }
0x1211   :  { %1787 = vrot.lane.b32.xlu0 %v4926_v38, %s5251_s1  ;;  %v4928_v62 = vpop.eup %4927 }
0x1212   :  { %v1763_v41 = vadd.f32 1.0, %v4928_v62 }
0x1214   :  { %4929 = vrcp.f32 %v1763_v41 }
0x1215   :  { %4931 = vpow2.f32 %v3973_v44  ;;  %v2033_v44 = vld [vmem:[%s6265_s6 + $0x8] sm:$0xff] }
0x121e   :  { %v4930_v2 = vpop.eup %4929 }
0x121f   :  { %v4932_v52 = vpop.eup %4931  ;;  %v1774_v58 = vmul.f32 %v4930_v2, %v1578_v19 }
0x1220   :  { %v1769_v55 = vadd.f32 1.0, %v4932_v52 }
0x1222   :  { %4933 = vrcp.f32 %v1769_v55 }
0x122c   :  { %v4934_v45 = vpop.eup %4933 }
0x122d   :  { %v1785_v1 = vmul.f32 %v4934_v45, %v1589_v22 }
0x1266   :  { %v1777_v59 = vpop.permute.xlu1 %1776 }
0x1267   :  { %v1779_v46 = vmul.f32 %v4930_v2, %v1777_v59  ;;  %v2037_v59 = vld [vmem:[%s6265_s6 + $0x28] sm:$0xff] }
0x1269   :  { %1781 = vrot.lane.b32.xlu1 %v1779_v46, %s5251_s1  ;;  %v2039_v46 = vld [vmem:[%s6265_s6 + $0x38] sm:$0xff] }
0x126a   :  { %v4690_v55 = vpack.c.bf16 %v2039_v46, %v2037_v59 }
0x1283   :  { %v1788_v47 = vpop.permute.xlu0 %1787 }
0x1284   :  { %v1790_v56 = vmul.f32 %v4934_v45, %v1788_v47  ;;  %v2038_v47 = vld [vmem:[%s6265_s6 + $0x30] sm:$0xff] }
0x1286   :  { %1792 = vrot.lane.b32.xlu0 %v1790_v56, %s5251_s1 }
0x12db   :  { %v1782_v60 = vpop.permute.xlu1 %1781 }
0x12dc   :  { %v1784_v63 = vadd.f32 %v1782_v60, %v1774_v58 }
0x12de   :  { %4935 = vtanh.f32 %v1784_v63 }
0x12e8   :  { %v4936_v0 = vpop.eup %4935 }
0x12e9   :  { %1798 = vrot.lane.b32.xlu1 %v4936_v0, %s5251_s1 }
0x12f8   :  { %v1793_v3 = vpop.permute.xlu0 %1792 }
0x12f9   :  { %v1795_v9 = vadd.f32 %v1793_v3, %v1785_v1  ;;  %v2041_v3 = vld [vmem:[%s6265_s6 + $0x48] sm:$0xff] }
0x12fb   :  { %4937 = vtanh.f32 %v1795_v9 }
0x1305   :  { %v4938_v43 = vpop.eup %4937 }
0x1306   :  { %1804 = vrot.lane.b32.xlu0 %v4938_v43, %s5251_s1 }
0x135b   :  { %v1799_v10 = vpop.permute.xlu1 %1798 }
0x135c   :  { %v1801_v61 = vmul.f32 %v4930_v2, %v1799_v10  ;;  %v2040_v10 = vld [vmem:[%s6265_s6 + $0x40] sm:$0xff] }
0x135e   :  { %1809 = vrot.lane.b32.xlu1 %v1801_v61, %s5252_s27 }
0x1378   :  { %v1805_v11 = vpop.permute.xlu0 %1804 }
0x1379   :  { %v1807_v12 = vmul.f32 %v4934_v45, %v1805_v11  ;;  %v2036_v45 = vld [vmem:[%s6265_s6 + $0x20] sm:$0xff] }
0x137a   :  { %v4692_v56 = vpack.c.bf16 %v2038_v47, %v2036_v45  ;;  %v2048_v11 = vld [vmem:[#allocation11] sm:$0xff] }
0x137b   :  { %1891 = vrot.lane.b32.xlu0 %v1807_v12, %s5252_s27 }
0x13d0   :  { %v5804_v13 = vpop.permute.xlu1 %1809 }
0x13d1   :  { %4350 = vmatmul.mubr.msk.f32.vlgmr.msra.gmra.mrb[22].mxu1 %vm377_vm1, %v5804_v13 }
0x13d2   :  { %2157 = vmatprep.mubr.f32.mxu1 %v5249_v8 }
0x13ed   :  { %v1892_v4 = vpop.permute.xlu0 %1891 }
0x13ee   :  { %4361 = vmatmul.mubr.msk.f32.vlgmr.msra.gmra.mrb[22].mxu0 %vm377_vm1, %v1892_v4 }
0x13ef   :  { %4371 = vmatprep.mubr.msk.f32.mxu0 %vm5250_vm0, %v5249_v8 }
0x14a4   :  { %v1886_v49 = vpop.f32.mrb[22].mxu1 }
0x14a5   :  { %v1890_v14 = vadd.f32 %v1886_v49, %v5616_v6  ;;  %v4351_v15 = vpop.f32.mrb[23].mxu1  ;;  %v2045_v49 = vld [vmem:[%s6265_s6 + $0x68] sm:$0xff] }
0x14a7   :  { %4939 = vtanh.f32 %v1890_v14  ;;  %v3976_v57 = vmul.f32 -1.442695, %v1890_v14  ;;  %v2047_v14 = vld [vmem:[%s6265_s6 + $0x78] sm:$0xff] }
0x14a8   :  { %v4698_v15 = vpack.c.bf16 %v2047_v14, %v2045_v49 }
0x14b1   :  { %v4940_v16 = vpop.eup %4939 }
0x14b2   :  { %1982 = vrot.lane.b32.xlu1 %v4940_v16, %s5251_s1  ;;  %v2044_v16 = vld [vmem:[%s6265_s6 + $0x60] sm:$0xff] }
0x14c1   :  { %v1961_v18 = vpop.f32.mrb[22].mxu0 }
0x14c2   :  { %v1965_v19 = vadd.f32 %v1961_v18, %v5589_v40  ;;  %v4362_v20 = vpop.f32.mrb[23].mxu0  ;;  %v2046_v18 = vld [vmem:[%s6265_s6 + $0x70] sm:$0xff] }
0x14c3   :  { %v2050_v20 = vld [vmem:[#allocation11 + $0x10] sm:$0xff] }
0x14c4   :  { %4941 = vtanh.f32 %v1965_v19  ;;  %v3977_v24 = vmul.f32 -1.442695, %v1965_v19  ;;  %v4700_v19 = vpack.c.bf16 %v2046_v18, %v2044_v16 }
0x14c5   :  { %4943 = vpow2.f32 %v3976_v57 }
0x14ce   :  { %v4942_v21 = vpop.eup %4941 }
0x14cf   :  { %1993 = vrot.lane.b32.xlu0 %v4942_v21, %s5251_s1  ;;  %v4944_v22 = vpop.eup %4943  ;;  %v2051_v21 = vld [vmem:[#allocation11 + $0x18] sm:$0xff] }
0x14d0   :  { %v1969_v23 = vadd.f32 1.0, %v4944_v22  ;;  %v5893_v57 = vpack.c.bf16 %v2051_v21, %v2050_v20 }
0x14d2   :  { %4945 = vrcp.f32 %v1969_v23 }
0x14d3   :  { %4947 = vpow2.f32 %v3977_v24 }
0x14dc   :  { %v5816_v6 = vpop.eup %4945 }
0x14dd   :  { %v4948_v40 = vpop.eup %4947  ;;  %v1980_v37 = vmul.f32 %v5816_v6, %v1784_v63 }
0x14de   :  { %v1975_v32 = vadd.f32 1.0, %v4948_v40 }
0x14e0   :  { %4949 = vrcp.f32 %v1975_v32  ;;  %v2054_v32 = vld [vmem:[#allocation13 + $0x10] sm:$0xff] }
0x14ea   :  { %v5820_v29 = vpop.eup %4949 }
0x14eb   :  { %v1991_v38 = vmul.f32 %v5820_v29, %v1795_v9  ;;  %v2043_v9 = vld [vmem:[%s6265_s6 + $0x58] sm:$0xff] }
0x14ec   :  { %v4694_v43 = vpack.c.bf16 %v2043_v9, %v2041_v3 }
0x1524   :  { %v1983_v25 = vpop.permute.xlu1 %1982 }
0x1525   :  { %v1985_v54 = vmul.f32 %v5816_v6, %v1983_v25  ;;  %v2052_v25 = vld [vmem:[#allocation13] sm:$0xff] }
0x1527   :  { %1987 = vrot.lane.b32.xlu1 %v1985_v54, %s5251_s1  ;;  %v2053_v54 = vld [vmem:[#allocation13 + $0x8] sm:$0xff] }
0x1528   :  { %v5911_v40 = vpack.c.bf16 %v2053_v54, %v2052_v25 }
0x1541   :  { %v1994_v34 = vpop.permute.xlu0 %1993 }
0x1542   :  { %v1996_v35 = vmul.f32 %v5820_v29, %v1994_v34 }
0x1544   :  { %1998 = vrot.lane.b32.xlu0 %v1996_v35, %s5251_s1 }
0x1599   :  { %v1988_v36 = vpop.permute.xlu1 %1987 }
0x159a   :  { %v1990_v53 = vadd.f32 %v1988_v36, %v1980_v37 }
0x159c   :  { %4951 = vtanh.f32 %v1990_v53 }
0x15a6   :  { %v4952_v51 = vpop.eup %4951 }
0x15a7   :  { %2004 = vrot.lane.b32.xlu1 %v4952_v51, %s5251_s1 }
0x15ab   :  { %1814 = vrot.lane.b32.xlu1 %v1807_v12, %s5253_s4  ;;  %v2049_v12 = vld [vmem:[#allocation11 + $0x8] sm:$0xff] }
0x15ac   :  { %v5877_v4 = vpack.c.bf16 %v2049_v12, %v2048_v11 }
0x15ae   :  { %4704 = vmatpush3.bf16.msra.mxu0 %v5877_v4 }
0x15af   :  { %1402 = vrot.lane.b32.xlu1 %v5744_v48, %s5253_s4  ;;  %v2035_v48 = vld [vmem:[%s6265_s6 + $0x18] sm:$0xff]  ;;  %4705 = vmatprep.subr.bf16.mxu0 %v5248_v7 }
0x15b0   :  { %v4686_v2 = vpack.c.bf16 %v2035_v48, %v2033_v44 }
0x15b2   :  { %4687 = vmatprep.subr.bf16.mxu1 %v4686_v2  ;;  %4707 = vmatpush3.bf16.msra.mxu0 %v5893_v57 }
0x15b3   :  { %990 = vrot.lane.b32.xlu1 %v5688_v17, %s5253_s4  ;;  %v2032_v17 = vld [vmem:[%s6265_s6] sm:$0xff]  ;;  %4708 = vmatprep.subr.bf16.mxu0 %v5248_v7 }
0x15b5   :  { %4372 = vmatmul.mubr.f32.vlgmr.msra.gmra.mrb[24].mxu0 %v5249_v8 }
0x15b6   :  { %v1999_v39 = vpop.permute.xlu0 %1998  ;;  %4382 = vmatprep.mubr.msk.f32.mxu0 %vm5250_vm0, %v5249_v8  ;;  %4710 = vmatpush3.bf16.msra.mxu0 %v5911_v40 }
0x15b7   :  { %v2001_v62 = vadd.f32 %v1999_v39, %v1991_v38  ;;  %577 = vrot.lane.b32.xlu1 %v5630_v42, %s5253_s4  ;;  %v2034_v42 = vld [vmem:[%s6265_s6 + $0x10] sm:$0xff]  ;;  %4711 = vmatprep.subr.bf16.mxu0 %v5248_v7 }
0x15b8   :  { %v4688_v52 = vpack.c.bf16 %v2034_v42, %v2032_v17  ;;  %v2056_v17 = vld [vmem:[#allocation14] sm:$0x3] }
0x15b9   :  { %4953 = vtanh.f32 %v2001_v62  ;;  %v2061_v2 = vrot.slane %v2056_v17, %v256_v30  ;;  %v2065_v42 = vrot.slane %v2056_v17, %v260_v33 }
0x15ba   :  { %4689 = vmatpush1.bf16.msra.mxu1 %v4688_v52 }
0x15bb   :  { %4691 = vmatprep.subr.bf16.mxu1 %v4690_v55 }
0x15be   :  { %4693 = vmatpush1.bf16.msra.mxu1 %v4692_v56 }
0x15bf   :  { %4695 = vmatprep.subr.bf16.mxu1 %v4694_v43 }
0x15c3   :  { %v4954_v41 = vpop.eup %4953 }
0x15c4   :  { %2010 = vrot.lane.b32.xlu0 %v4954_v41, %s5251_s1 }
0x1619   :  { %v2005_v58 = vpop.permute.xlu1 %2004 }
0x161a   :  { %v2007_v24 = vmul.f32 %v5816_v6, %v2005_v58 }
0x161d   :  { %v1815_v60 = vpop.permute.xlu1 %1814 }
0x161e   :  { %1817 = vst.msk [vmem:[#allocation3 + $0x8] sm:$0xff] %vm580_vm2, %v1815_v60 }
0x1621   :  { %v1403_v63 = vpop.permute.xlu1 %1402 }
0x1622   :  { %1405 = vst.msk [vmem:[#allocation3 + $0x18] sm:$0xff] %vm580_vm2, %v1403_v63 }
0x1625   :  { %v991_v0 = vpop.permute.xlu1 %990  ;;  %v2025_v37 = vld [vmem:[#allocation3 + $0x8] sm:$0xff] }
0x1626   :  { %993 = vst.msk [vmem:[#allocation3 + $0x28] sm:$0xff] %vm580_vm2, %v991_v0 }
0x1627   :  { %1606 = vst.msk [vmem:[#allocation3 + $0x28] sm:$0xff] %vm377_vm1, %v5778_v31  ;;  %v2042_v31 = vld [vmem:[%s6265_s6 + $0x50] sm:$0xff] }
0x1628   :  { %v4696_v61 = vpack.c.bf16 %v2042_v31, %v2040_v10 }
0x1629   :  { %v578_v1 = vpop.permute.xlu1 %577  ;;  %v2027_v53 = vld [vmem:[#allocation3 + $0x18] sm:$0xff] }
0x162a   :  { %581 = vst.msk [vmem:[#allocation3 + $0x38] sm:$0xff] %vm580_vm2, %v578_v1  ;;  %4697 = vmatpush1.bf16.msra.mxu1 %v4696_v61 }
0x162b   :  { %4699 = vmatprep.subr.bf16.mxu1 %v4698_v15 }
0x162e   :  { %4701 = vmatpush1.bf16.msra.mxu1 %v4700_v19  ;;  %v2029_v51 = vld [vmem:[#allocation3 + $0x28] sm:$0xff] }
0x162f   :  { %4732 = vmatprep.subr.bf16.mxu1 %v5248_v7 }
0x1636   :  { %v2011_v22 = vpop.permute.xlu0 %2010 }
0x1637   :  { %v2013_v23 = vmul.f32 %v5820_v29, %v2011_v22 }
0x1639   :  { %2020 = vrot.lane.b32.xlu0 %v2013_v23, %s5253_s4 }
0x163d   :  { %1608 = vrot.lane.b32.xlu0 %v5774_v26, %s5253_s4  ;;  %v2055_v26 = vld [vmem:[#allocation13 + $0x18] sm:$0xff] }
0x163e   :  { %v5915_v29 = vpack.c.bf16 %v2055_v26, %v2054_v32 }
0x1640   :  { %4713 = vmatpush3.bf16.msra.mxu0 %v5915_v29 }
0x1641   :  { %1196 = vrot.lane.b32.xlu0 %v5716_v5, %s5253_s4  ;;  %4714 = vmatprep.subr.bf16.mxu0 %v5248_v7 }
0x1643   :  { %4383 = vmatmul.mubr.f32.vlgmr.msra.gmra.mrb[26].mxu0 %v5249_v8 }
0x1644   :  { %4716 = vmatpush3.bf16.msra.mxu0 %v5877_v4  ;;  %4393 = vmatprep.mubr.msk.f32.mxu0 %vm5250_vm0, %v5249_v8 }
0x1645   :  { %784 = vrot.lane.b32.xlu0 %v5660_v28, %s5253_s4  ;;  %4717 = vmatprep.subr.bf16.mxu0 %v5248_v7 }
0x1648   :  { %4719 = vmatpush3.bf16.msra.mxu0 %v5893_v57 }
0x1649   :  { %2015 = vrot.lane.b32.xlu0 %v2007_v24, %s5252_s27  ;;  %4720 = vmatprep.subr.bf16.mxu0 %v5248_v7 }
0x1688   :  { %v2272_v62 = vpop.f32.mrb[24].mxu0 }
0x1689   :  { %v4373_v41 = vpop.f32.mrb[25].mxu0 }
0x16ab   :  { %v2021_v28 = vpop.permute.xlu0 %2020 }
0x16ac   :  { %2023 = vst.msk [vmem:[#allocation3] sm:$0xff] %vm580_vm2, %v2021_v28 }
0x16af   :  { %v1609_v5 = vpop.permute.xlu0 %1608 }
0x16b0   :  { %1611 = vst.msk [vmem:[#allocation3 + $0x10] sm:$0xff] %vm580_vm2, %v1609_v5 }
0x16b3   :  { %v1197_v6 = vpop.permute.xlu0 %1196  ;;  %v2024_v34 = vld [vmem:[#allocation3] sm:$0xff] }
0x16b4   :  { %1199 = vst.msk [vmem:[#allocation3 + $0x20] sm:$0xff] %vm580_vm2, %v1197_v6  ;;  %3978 = vmatmul.mubr.msk.f32.vlgmr.msra.gmra.mrb[24].mxu1 %vm2068_vm3, %v2024_v34 }
0x16b5   :  { %1400 = vst.msk [vmem:[#allocation3 + $0x20] sm:$0xff] %vm377_vm1, %v5748_v50  ;;  %2163 = vmatprep.mubr.f32.mxu1 %v5249_v8  ;;  %4734 = vmatpush3.bf16.msra.mxu1 %v5911_v40 }
0x16b6   :  { %4735 = vmatprep.subr.bf16.mxu1 %v5248_v7 }
0x16b7   :  { %v785_v35 = vpop.permute.xlu0 %784  ;;  %v2026_v36 = vld [vmem:[#allocation3 + $0x10] sm:$0xff] }
0x16b8   :  { %787 = vst.msk [vmem:[#allocation3 + $0x30] sm:$0xff] %vm580_vm2, %v785_v35  ;;  %3979 = vmatmul.mubr.msk.f32.gmra.mrb[26].mxu1 %vm2068_vm3, %v2025_v37 }
0x16b9   :  { %1812 = vst.msk [vmem:[#allocation3 + $0x30] sm:$0xff] %vm377_vm1, %v5804_v13  ;;  %2169 = vmatprep.mubr.f32.mxu1 %v5249_v8  ;;  %4737 = vmatpush3.bf16.msra.mxu1 %v5915_v29 }
0x16ba   :  { %4744 = vmatprep.subr.bf16.mxu1 %v5248_v7 }
0x16bb   :  { %v2016_v50 = vpop.permute.xlu0 %2015 }
0x16bc   :  { %2018 = vst.msk [vmem:[#allocation3 + $0x38] sm:$0xff] %vm377_vm1, %v2016_v50  ;;  %3980 = vmatmul.mubr.msk.f32.gmra.mrb[28].mxu1 %vm2068_vm3, %v2026_v36  ;;  %v2028_v13 = vld [vmem:[#allocation3 + $0x20] sm:$0xff] }
0x16bd   :  { %2175 = vmatprep.mubr.f32.mxu1 %v5249_v8 }
0x16c0   :  { %3981 = vmatmul.mubr.msk.f32.gmra.mrb[30].mxu1 %vm2068_vm3, %v2027_v53  ;;  %v2030_v38 = vld [vmem:[#allocation3 + $0x30] sm:$0xff] }
0x16c1   :  { %2181 = vmatprep.mubr.f32.mxu1 %v5249_v8 }
0x16c3   :  { %v2031_v39 = vld [vmem:[#allocation3 + $0x38] sm:$0xff] }
0x16c4   :  { %3982 = vmatmul.mubr.msk.f32.gmra.mrb[32].mxu1 %vm2068_vm3, %v2028_v13 }
0x16c5   :  { %2187 = vmatprep.mubr.f32.mxu1 %v5249_v8 }
0x16c8   :  { %3983 = vmatmul.mubr.msk.f32.gmra.mrb[34].mxu1 %vm2068_vm3, %v2029_v51 }
0x16c9   :  { %2193 = vmatprep.mubr.f32.mxu1 %v5249_v8 }
0x16cc   :  { %3984 = vmatmul.mubr.msk.f32.gmra.mrb[36].mxu1 %vm2068_vm3, %v2030_v38 }
0x16cd   :  { %2199 = vmatprep.mubr.f32.mxu1 %v5249_v8 }
0x16d0   :  { %3985 = vmatmul.mubr.msk.f32.gmra.mrb[38].mxu1 %vm2068_vm3, %v2031_v39 }
0x16d1   :  { %4426 = vmatprep.mubr.msk.f32.mxu1 %vm5250_vm0, %v5249_v8 }
0x1716   :  { %v2343_v44 = vpop.f32.mrb[26].mxu0 }
0x1717   :  { %v4384_v48 = vpop.f32.mrb[27].mxu0 }
0x1787   :  { %v2159_v59 = vpop.f32.mrb[24].mxu1 }
0x1788   :  { %v2160_v46 = vadd.f32 %v2159_v59, %v2061_v2  ;;  %v2161_v52 = vpop.f32.mrb[25].mxu1 }
0x1789   :  { %v5960_v55 = vadd.f32 %v2161_v52, %v2065_v42 }
0x178a   :  { %v2276_v45 = vadd.f32 %v2272_v62, %v2160_v46 }
0x178b   :  { %v2165_v47 = vpop.f32.mrb[26].mxu1 }
0x178c   :  { %4955 = vtanh.f32 %v2276_v45  ;;  %v5962_v56 = vadd.f32 %v2165_v47, %v2061_v2  ;;  %v2167_v58 = vpop.f32.mrb[27].mxu1  ;;  %v3986_v32 = vmul.f32 -1.442695, %v2276_v45 }
0x178d   :  { %v5964_v60 = vadd.f32 %v2167_v58, %v2065_v42 }
0x178f   :  { %v2171_v63 = vpop.f32.mrb[28].mxu1 }
0x1790   :  { %v5966_v0 = vadd.f32 %v2171_v63, %v2061_v2  ;;  %v2173_v30 = vpop.f32.mrb[29].mxu1 }
0x1791   :  { %v5968_v1 = vadd.f32 %v2173_v30, %v2065_v42 }
0x1793   :  { %v2177_v27 = vpop.f32.mrb[30].mxu1 }
0x1794   :  { %v5970_v33 = vadd.f32 %v2177_v27, %v2061_v2  ;;  %v2179_v3 = vpop.f32.mrb[31].mxu1 }
0x1795   :  { %v5972_v9 = vadd.f32 %v2179_v3, %v2065_v42 }
0x1796   :  { %v4956_v43 = vpop.eup %4955 }
0x1797   :  { %v2183_v10 = vpop.f32.mrb[32].mxu1  ;;  %2364 = vrot.lane.b32.xlu1 %v4956_v43, %s5251_s1 }
0x1798   :  { %v5975_v31 = vadd.f32 %v2183_v10, %v2061_v2  ;;  %v2185_v61 = vpop.f32.mrb[33].mxu1 }
0x1799   :  { %v5977_v11 = vadd.f32 %v2185_v61, %v2065_v42 }
0x179b   :  { %v2189_v12 = vpop.f32.mrb[34].mxu1 }
0x179c   :  { %v5979_v49 = vadd.f32 %v2189_v12, %v2061_v2  ;;  %v2191_v14 = vpop.f32.mrb[35].mxu1 }
0x179d   :  { %v5981_v15 = vadd.f32 %v2191_v14, %v2065_v42 }
0x179f   :  { %v2195_v16 = vpop.f32.mrb[36].mxu1 }
0x17a0   :  { %v5983_v18 = vadd.f32 %v2195_v16, %v2061_v2  ;;  %v2197_v19 = vpop.f32.mrb[37].mxu1 }
0x17a1   :  { %v5985_v20 = vadd.f32 %v2197_v19, %v2065_v42 }
0x17a3   :  { %v2201_v21 = vpop.f32.mrb[38].mxu1 }
0x17a4   :  { %v5987_v22 = vadd.f32 %v2201_v21, %v2061_v2  ;;  %v2203_v23 = vpop.f32.mrb[39].mxu1 }
0x17a5   :  { %v2204_v24 = vadd.f32 %v2203_v23, %v2065_v42 }
0x17a7   :  { %v2347_v25 = vadd.f32 %v2343_v44, %v2204_v24 }
0x17a9   :  { %4957 = vtanh.f32 %v2347_v25  ;;  %v3987_v5 = vmul.f32 -1.442695, %v2347_v25 }
0x17aa   :  { %4959 = vpow2.f32 %v3986_v32 }
0x17b3   :  { %v4958_v54 = vpop.eup %4957 }
0x17b4   :  { %2375 = vrot.lane.b32.xlu0 %v4958_v54, %s5251_s1  ;;  %v4960_v26 = vpop.eup %4959 }
0x17b5   :  { %v2351_v28 = vadd.f32 1.0, %v4960_v26 }
0x17b7   :  { %4961 = vrcp.f32 %v2351_v28 }
0x17b8   :  { %4963 = vpow2.f32 %v3987_v5 }
0x17c1   :  { %v4962_v6 = vpop.eup %4961 }
0x17c2   :  { %v4964_v37 = vpop.eup %4963  ;;  %v2362_v51 = vmul.f32 0.0, %v4962_v6 }
0x17c3   :  { %v2357_v50 = vadd.f32 1.0, %v4964_v37 }
0x17c5   :  { %4965 = vrcp.f32 %v2357_v50 }
0x17cf   :  { %v4966_v36 = vpop.eup %4965 }
0x17d0   :  { %v2373_v41 = vmul.f32 0.0, %v4966_v36 }
0x1809   :  { %v2365_v34 = vpop.permute.xlu1 %2364 }
0x180a   :  { %v2367_v35 = vmul.f32 %v4962_v6, %v2365_v34 }
0x180c   :  { %2369 = vrot.lane.b32.xlu1 %v2367_v35, %s5251_s1 }
0x1826   :  { %v2376_v53 = vpop.permute.xlu0 %2375 }
0x1827   :  { %v2378_v13 = vmul.f32 %v4966_v36, %v2376_v53 }
0x1829   :  { %2380 = vrot.lane.b32.xlu0 %v2378_v13, %s5251_s1 }
0x187e   :  { %v2370_v38 = vpop.permute.xlu1 %2369 }
0x187f   :  { %v2372_v39 = vadd.f32 %v2370_v38, %v2362_v51 }
0x1881   :  { %4967 = vtanh.f32 %v2372_v39 }
0x188b   :  { %v4968_v62 = vpop.eup %4967 }
0x188c   :  { %2386 = vrot.lane.b32.xlu1 %v4968_v62, %s5251_s1 }
0x189b   :  { %v2381_v44 = vpop.permute.xlu0 %2380 }
0x189c   :  { %v2383_v48 = vadd.f32 %v2381_v44, %v2373_v41 }
0x189e   :  { %4969 = vtanh.f32 %v2383_v48 }
0x18a8   :  { %v4970_v17 = vpop.eup %4969 }
0x18a9   :  { %2392 = vrot.lane.b32.xlu0 %v4970_v17, %s5251_s1 }
0x18fe   :  { %v2387_v2 = vpop.permute.xlu1 %2386 }
0x18ff   :  { %v5994_v42 = vmul.f32 %v4962_v6, %v2387_v2 }
0x1901   :  { %2397 = vrot.lane.b32.xlu1 %v5994_v42, %s5252_s27 }
0x191b   :  { %v2393_v59 = vpop.permute.xlu0 %2392 }
0x191c   :  { %v5998_v46 = vmul.f32 %v4966_v36, %v2393_v59 }
0x191e   :  { %2473 = vrot.lane.b32.xlu0 %v5998_v46, %s5252_s27 }
0x1973   :  { %v2398_v52 = vpop.permute.xlu1 %2397 }
0x1974   :  { %4394 = vmatmul.mubr.msk.f32.vlgmr.msra.gmra.mrb[28].mxu0 %vm377_vm1, %v2398_v52 }
0x1975   :  { %4722 = vmatpush3.bf16.msra.mxu0 %v5911_v40  ;;  %4404 = vmatprep.mubr.msk.f32.mxu0 %vm5250_vm0, %v5249_v8 }
0x1976   :  { %4723 = vmatprep.subr.bf16.mxu0 %v5248_v7 }
0x1979   :  { %4725 = vmatpush3.bf16.msra.mxu0 %v5915_v29 }
0x197a   :  { %4726 = vmatprep.subr.bf16.mxu0 %v5248_v7 }
0x1990   :  { %v2474_v45 = vpop.permute.xlu0 %2473 }
0x1991   :  { %4405 = vmatmul.mubr.msk.f32.vlgmr.msra.gmra.mrb[30].mxu0 %vm377_vm1, %v2474_v45 }
0x1992   :  { %4728 = vmatpush3.bf16.msra.mxu0 %v5877_v4  ;;  %4415 = vmatprep.mubr.msk.f32.mxu0 %vm5250_vm0, %v5249_v8 }
0x1993   :  { %4729 = vmatprep.subr.bf16.mxu0 %v5248_v7 }
0x1996   :  { %4731 = vmatpush3.bf16.msra.mxu0 %v5893_v57 }
0x1997   :  { %4738 = vmatprep.subr.bf16.mxu0 %v5248_v7 }
0x1a47   :  { %v2467_v47 = vpop.f32.mrb[28].mxu0 }
0x1a48   :  { %v2471_v58 = vadd.f32 %v2467_v47, %v5962_v56  ;;  %v4395_v63 = vpop.f32.mrb[29].mxu0 }
0x1a4a   :  { %4971 = vtanh.f32 %v2471_v58  ;;  %v3990_v61 = vmul.f32 -1.442695, %v2471_v58 }
0x1a54   :  { %v4972_v30 = vpop.eup %4971 }
0x1a55   :  { %2564 = vrot.lane.b32.xlu1 %v4972_v30, %s5251_s1 }
0x1a64   :  { %v2543_v27 = vpop.f32.mrb[30].mxu0 }
0x1a65   :  { %v2547_v3 = vadd.f32 %v2543_v27, %v5985_v20  ;;  %v4406_v43 = vpop.f32.mrb[31].mxu0 }
0x1a67   :  { %4973 = vtanh.f32 %v2547_v3  ;;  %v3991_v16 = vmul.f32 -1.442695, %v2547_v3 }
0x1a68   :  { %4975 = vpow2.f32 %v3990_v61 }
0x1a71   :  { %v4974_v10 = vpop.eup %4973 }
0x1a72   :  { %2575 = vrot.lane.b32.xlu0 %v4974_v10, %s5251_s1  ;;  %v4976_v12 = vpop.eup %4975 }
0x1a73   :  { %v2551_v14 = vadd.f32 1.0, %v4976_v12 }
0x1a75   :  { %4977 = vrcp.f32 %v2551_v14 }
0x1a76   :  { %4979 = vpow2.f32 %v3991_v16 }
0x1a7f   :  { %v4978_v56 = vpop.eup %4977 }
0x1a80   :  { %v4980_v23 = vpop.eup %4979  ;;  %v2562_v32 = vmul.f32 %v4978_v56, %v2372_v39 }
0x1a81   :  { %v2557_v24 = vadd.f32 1.0, %v4980_v23 }
0x1a83   :  { %4981 = vrcp.f32 %v2557_v24 }
0x1a8d   :  { %v4982_v20 = vpop.eup %4981 }
0x1a8e   :  { %v2573_v6 = vmul.f32 %v4982_v20, %v2383_v48 }
0x1ac7   :  { %v2565_v19 = vpop.permute.xlu1 %2564 }
0x1ac8   :  { %v2567_v21 = vmul.f32 %v4978_v56, %v2565_v19 }
0x1aca   :  { %2569 = vrot.lane.b32.xlu1 %v2567_v21, %s5251_s1 }
0x1ae4   :  { %v2576_v25 = vpop.permute.xlu0 %2575 }
0x1ae5   :  { %v2578_v54 = vmul.f32 %v4982_v20, %v2576_v25 }
0x1ae7   :  { %2580 = vrot.lane.b32.xlu0 %v2578_v54, %s5251_s1 }
0x1b3c   :  { %v2570_v26 = vpop.permute.xlu1 %2569 }
0x1b3d   :  { %v2572_v28 = vadd.f32 %v2570_v26, %v2562_v32 }
0x1b3f   :  { %4983 = vtanh.f32 %v2572_v28 }
0x1b49   :  { %v4984_v5 = vpop.eup %4983 }
0x1b4a   :  { %2586 = vrot.lane.b32.xlu1 %v4984_v5, %s5251_s1 }
0x1b59   :  { %v2581_v34 = vpop.permute.xlu0 %2580 }
0x1b5a   :  { %v2583_v35 = vadd.f32 %v2581_v34, %v2573_v6 }
0x1b5c   :  { %4985 = vtanh.f32 %v2583_v35 }
0x1b66   :  { %v4986_v37 = vpop.eup %4985 }
0x1b67   :  { %2592 = vrot.lane.b32.xlu0 %v4986_v37, %s5251_s1 }
0x1bbc   :  { %v2587_v50 = vpop.permute.xlu1 %2586 }
0x1bbd   :  { %v6024_v36 = vmul.f32 %v4978_v56, %v2587_v50 }
0x1bbf   :  { %2599 = vrot.lane.b32.xlu1 %v6024_v36, %s5252_s27 }
0x1bd9   :  { %v2593_v53 = vpop.permute.xlu0 %2592 }
0x1bda   :  { %v6028_v13 = vmul.f32 %v4982_v20, %v2593_v53  ;;  %v2596_v20 = vmax.f32 %v5994_v42, %v6024_v36 }
0x1bdc   :  { %2675 = vrot.lane.b32.xlu0 %v6028_v13, %s5252_s27  ;;  %v2597_v26 = vmax.f32 %v5998_v46, %v6028_v13 }
0x1c31   :  { %v2600_v51 = vpop.permute.xlu1 %2599 }
0x1c32   :  { %4416 = vmatmul.mubr.msk.f32.vlgmr.msra.gmra.mrb[32].mxu0 %vm377_vm1, %v2600_v51 }
0x1c33   :  { %4740 = vmatpush3.bf16.msra.mxu0 %v5877_v4  ;;  %4437 = vmatprep.mubr.msk.f32.mxu0 %vm5250_vm0, %v5249_v8 }
0x1c34   :  { %4741 = vmatprep.subr.bf16.mxu0 %v5248_v7 }
0x1c37   :  { %4743 = vmatpush3.bf16.msra.mxu0 %v5893_v57 }
0x1c38   :  { %4750 = vmatprep.subr.bf16.mxu0 %v5248_v7 }
0x1c4e   :  { %v2676_v38 = vpop.permute.xlu0 %2675 }
0x1c4f   :  { %4427 = vmatmul.mubr.msk.f32.vlgmr.msra.gmra.mrb[40].mxu1 %vm377_vm1, %v2676_v38 }
0x1c50   :  { %4746 = vmatpush3.bf16.msra.mxu1 %v5911_v40  ;;  %4448 = vmatprep.mubr.msk.f32.mxu1 %vm5250_vm0, %v5249_v8 }
0x1c51   :  { %4747 = vmatprep.subr.bf16.mxu1 %v5248_v7 }
0x1c54   :  { %4749 = vmatpush3.bf16.msra.mxu1 %v5915_v29 }
0x1c55   :  { %4756 = vmatprep.subr.bf16.mxu1 %v5248_v7 }
0x1d05   :  { %v2669_v39 = vpop.f32.mrb[32].mxu0 }
0x1d06   :  { %v2673_v62 = vadd.f32 %v2669_v39, %v5966_v0  ;;  %v4417_v41 = vpop.f32.mrb[33].mxu0 }
0x1d08   :  { %4987 = vtanh.f32 %v2673_v62  ;;  %v3994_v52 = vmul.f32 -1.442695, %v2673_v62 }
0x1d12   :  { %v4988_v44 = vpop.eup %4987 }
0x1d13   :  { %2766 = vrot.lane.b32.xlu1 %v4988_v44, %s5251_s1 }
0x1d22   :  { %v2745_v48 = vpop.f32.mrb[40].mxu1 }
0x1d23   :  { %v2749_v17 = vadd.f32 %v2745_v48, %v5981_v15  ;;  %v4428_v2 = vpop.f32.mrb[41].mxu1 }
0x1d25   :  { %4989 = vtanh.f32 %v2749_v17  ;;  %v3995_v58 = vmul.f32 -1.442695, %v2749_v17 }
0x1d26   :  { %4991 = vpow2.f32 %v3994_v52 }
0x1d2f   :  { %v4990_v59 = vpop.eup %4989 }
0x1d30   :  { %2777 = vrot.lane.b32.xlu0 %v4990_v59, %s5251_s1  ;;  %v4992_v45 = vpop.eup %4991 }
0x1d31   :  { %v2753_v47 = vadd.f32 1.0, %v4992_v45 }
0x1d33   :  { %4993 = vrcp.f32 %v2753_v47 }
0x1d34   :  { %4995 = vpow2.f32 %v3995_v58 }
0x1d3d   :  { %v4994_v0 = vpop.eup %4993 }
0x1d3e   :  { %v4996_v27 = vpop.eup %4995  ;;  %v2764_v61 = vmul.f32 %v4994_v0, %v2572_v28 }
0x1d3f   :  { %v2759_v3 = vadd.f32 1.0, %v4996_v27 }
0x1d41   :  { %4997 = vrcp.f32 %v2759_v3 }
0x1d4b   :  { %v4998_v15 = vpop.eup %4997 }
0x1d4c   :  { %v2775_v56 = vmul.f32 %v4998_v15, %v2583_v35 }
0x1d85   :  { %v2767_v63 = vpop.permute.xlu1 %2766 }
0x1d86   :  { %v2769_v30 = vmul.f32 %v4994_v0, %v2767_v63 }
0x1d88   :  { %2771 = vrot.lane.b32.xlu1 %v2769_v30, %s5251_s1 }
0x1da2   :  { %v2778_v43 = vpop.permute.xlu0 %2777 }
0x1da3   :  { %v2780_v10 = vmul.f32 %v4998_v15, %v2778_v43 }
0x1da5   :  { %2782 = vrot.lane.b32.xlu0 %v2780_v10, %s5251_s1 }
0x1dfa   :  { %v2772_v12 = vpop.permute.xlu1 %2771 }
0x1dfb   :  { %v6052_v14 = vadd.f32 %v2772_v12, %v2764_v61 }
0x1dfd   :  { %4999 = vtanh.f32 %v6052_v14 }
0x1e07   :  { %v5000_v16 = vpop.eup %4999 }
0x1e08   :  { %2788 = vrot.lane.b32.xlu1 %v5000_v16, %s5251_s1 }
0x1e17   :  { %v2783_v19 = vpop.permute.xlu0 %2782 }
0x1e18   :  { %v6056_v21 = vadd.f32 %v2783_v19, %v2775_v56 }
0x1e1a   :  { %5001 = vtanh.f32 %v6056_v21 }
0x1e24   :  { %v5002_v23 = vpop.eup %5001 }
0x1e25   :  { %2794 = vrot.lane.b32.xlu0 %v5002_v23, %s5251_s1 }
0x1e7a   :  { %v2789_v24 = vpop.permute.xlu1 %2788 }
0x1e7b   :  { %v2791_v25 = vmul.f32 %v4994_v0, %v2789_v24 }
0x1e7d   :  { %v6062_v54 = vmax.f32 %v2596_v20, %v2791_v25  ;;  %2801 = vrot.lane.b32.xlu1 %v2791_v25, %s5252_s27 }
0x1e97   :  { %v2795_v32 = vpop.permute.xlu0 %2794 }
0x1e98   :  { %v2797_v28 = vmul.f32 %v4998_v15, %v2795_v32 }
0x1e9a   :  { %v6067_v5 = vmax.f32 %v2597_v26, %v2797_v28  ;;  %2877 = vrot.lane.b32.xlu0 %v2797_v28, %s5252_s27 }
0x1eef   :  { %v2802_v6 = vpop.permute.xlu1 %2801 }
0x1ef0   :  { %4438 = vmatmul.mubr.msk.f32.vlgmr.msra.gmra.mrb[34].mxu0 %vm377_vm1, %v2802_v6 }
0x1ef1   :  { %4752 = vmatpush3.bf16.msra.mxu0 %v5877_v4  ;;  %4459 = vmatprep.mubr.msk.f32.mxu0 %vm5250_vm0, %v5249_v8 }
0x1ef2   :  { %4753 = vmatprep.subr.bf16.mxu0 %v5248_v7 }
0x1ef5   :  { %4755 = vmatpush3.bf16.msra.mxu0 %v5893_v57 }
0x1ef6   :  { %4762 = vmatprep.subr.bf16.mxu0 %v5248_v7 }
0x1f0c   :  { %v2878_v42 = vpop.permute.xlu0 %2877 }
0x1f0d   :  { %4449 = vmatmul.mubr.msk.f32.vlgmr.msra.gmra.mrb[42].mxu1 %vm377_vm1, %v2878_v42 }
0x1f0e   :  { %4758 = vmatpush3.bf16.msra.mxu1 %v5911_v40  ;;  %4470 = vmatprep.mubr.msk.f32.mxu1 %vm5250_vm0, %v5249_v8 }
0x1f0f   :  { %4759 = vmatprep.subr.bf16.mxu1 %v5248_v7 }
0x1f12   :  { %4761 = vmatpush3.bf16.msra.mxu1 %v5915_v29 }
0x1f13   :  { %4768 = vmatprep.subr.bf16.mxu1 %v5248_v7 }
0x1fc3   :  { %v2871_v46 = vpop.f32.mrb[34].mxu0 }
0x1fc4   :  { %v2875_v34 = vadd.f32 %v2871_v46, %v5970_v33  ;;  %v4439_v35 = vpop.f32.mrb[35].mxu0 }
0x1fc6   :  { %5003 = vtanh.f32 %v2875_v34  ;;  %v3998_v51 = vmul.f32 -1.442695, %v2875_v34 }
0x1fd0   :  { %v5004_v37 = vpop.eup %5003 }
0x1fd1   :  { %2968 = vrot.lane.b32.xlu1 %v5004_v37, %s5251_s1 }
0x1fe0   :  { %v2947_v50 = vpop.f32.mrb[42].mxu1 }
0x1fe1   :  { %v2951_v36 = vadd.f32 %v2947_v50, %v5977_v11  ;;  %v4450_v53 = vpop.f32.mrb[43].mxu1 }
0x1fe3   :  { %5005 = vtanh.f32 %v2951_v36  ;;  %v3999_v62 = vmul.f32 -1.442695, %v2951_v36 }
0x1fe4   :  { %5007 = vpow2.f32 %v3998_v51 }
0x1fed   :  { %v5006_v13 = vpop.eup %5005 }
0x1fee   :  { %2979 = vrot.lane.b32.xlu0 %v5006_v13, %s5251_s1  ;;  %v5008_v38 = vpop.eup %5007 }
0x1fef   :  { %v2955_v39 = vadd.f32 1.0, %v5008_v38 }
0x1ff1   :  { %5009 = vrcp.f32 %v2955_v39 }
0x1ff2   :  { %5011 = vpow2.f32 %v3999_v62 }
0x1ffb   :  { %v5010_v33 = vpop.eup %5009 }
0x1ffc   :  { %v5012_v48 = vpop.eup %5011  ;;  %v2966_v52 = vmul.f32 %v5010_v33, %v6052_v14 }
0x1ffd   :  { %v2961_v17 = vadd.f32 1.0, %v5012_v48 }
0x1fff   :  { %5013 = vrcp.f32 %v2961_v17 }
0x2009   :  { %v5014_v11 = vpop.eup %5013 }
0x200a   :  { %v2977_v0 = vmul.f32 %v5014_v11, %v6056_v21 }
0x2043   :  { %v2969_v41 = vpop.permute.xlu1 %2968 }
0x2044   :  { %v2971_v44 = vmul.f32 %v5010_v33, %v2969_v41 }
0x2046   :  { %2973 = vrot.lane.b32.xlu1 %v2971_v44, %s5251_s1 }
0x2060   :  { %v2980_v2 = vpop.permute.xlu0 %2979 }
0x2061   :  { %v2982_v59 = vmul.f32 %v5014_v11, %v2980_v2 }
0x2063   :  { %2984 = vrot.lane.b32.xlu0 %v2982_v59, %s5251_s1 }
0x20b8   :  { %v2974_v45 = vpop.permute.xlu1 %2973 }
0x20b9   :  { %v2976_v47 = vadd.f32 %v2974_v45, %v2966_v52 }
0x20bb   :  { %5015 = vtanh.f32 %v2976_v47 }
0x20c5   :  { %v5016_v58 = vpop.eup %5015 }
0x20c6   :  { %2990 = vrot.lane.b32.xlu1 %v5016_v58, %s5251_s1 }
0x20d5   :  { %v2985_v63 = vpop.permute.xlu0 %2984 }
0x20d6   :  { %v2987_v30 = vadd.f32 %v2985_v63, %v2977_v0 }
0x20d8   :  { %5017 = vtanh.f32 %v2987_v30 }
0x20e2   :  { %v5018_v27 = vpop.eup %5017 }
0x20e3   :  { %2996 = vrot.lane.b32.xlu0 %v5018_v27, %s5251_s1 }
0x2138   :  { %v2991_v3 = vpop.permute.xlu1 %2990 }
0x2139   :  { %v6094_v15 = vmul.f32 %v5010_v33, %v2991_v3 }
0x213b   :  { %v3000_v43 = vmax.f32 %v6062_v54, %v6094_v15  ;;  %3003 = vrot.lane.b32.xlu1 %v6094_v15, %s5252_s27 }
0x2155   :  { %v2997_v10 = vpop.permute.xlu0 %2996 }
0x2156   :  { %v6100_v61 = vmul.f32 %v5014_v11, %v2997_v10 }
0x2158   :  { %v3001_v12 = vmax.f32 %v6067_v5, %v6100_v61  ;;  %3079 = vrot.lane.b32.xlu0 %v6100_v61, %s5252_s27 }
0x21ad   :  { %v3004_v14 = vpop.permute.xlu1 %3003 }
0x21ae   :  { %4460 = vmatmul.mubr.msk.f32.vlgmr.msra.gmra.mrb[36].mxu0 %vm377_vm1, %v3004_v14 }
0x21af   :  { %4764 = vmatpush3.bf16.msra.mxu0 %v5877_v4  ;;  %4481 = vmatprep.mubr.msk.f32.mxu0 %vm5250_vm0, %v5249_v8 }
0x21b0   :  { %4765 = vmatprep.subr.bf16.mxu0 %v5248_v7 }
0x21b3   :  { %4767 = vmatpush3.bf16.msra.mxu0 %v5893_v57 }
0x21b4   :  { %4774 = vmatprep.subr.bf16.mxu0 %v5248_v7 }
0x21ca   :  { %v3080_v16 = vpop.permute.xlu0 %3079 }
0x21cb   :  { %4471 = vmatmul.mubr.msk.f32.vlgmr.msra.gmra.mrb[44].mxu1 %vm377_vm1, %v3080_v16 }
0x21cc   :  { %4770 = vmatpush3.bf16.msra.mxu1 %v5911_v40  ;;  %4492 = vmatprep.mubr.msk.f32.mxu1 %vm5250_vm0, %v5249_v8 }
0x21cd   :  { %4771 = vmatprep.subr.bf16.mxu1 %v5248_v7 }
0x21d0   :  { %4773 = vmatpush3.bf16.msra.mxu1 %v5915_v29 }
0x21d1   :  { %4780 = vmatprep.subr.bf16.mxu1 %v5248_v7 }
0x2281   :  { %v3073_v56 = vpop.f32.mrb[36].mxu0 }
0x2282   :  { %v3077_v19 = vadd.f32 %v3073_v56, %v5975_v31  ;;  %v4461_v21 = vpop.f32.mrb[37].mxu0 }
0x2284   :  { %5019 = vtanh.f32 %v3077_v19  ;;  %v4002_v26 = vmul.f32 -1.442695, %v3077_v19 }
0x228e   :  { %v5020_v23 = vpop.eup %5019 }
0x228f   :  { %3170 = vrot.lane.b32.xlu1 %v5020_v23, %s5251_s1 }
0x229e   :  { %v3149_v24 = vpop.f32.mrb[44].mxu1 }
0x229f   :  { %v3153_v20 = vadd.f32 %v3149_v24, %v5972_v9  ;;  %v4472_v25 = vpop.f32.mrb[45].mxu1 }
0x22a1   :  { %5021 = vtanh.f32 %v3153_v20  ;;  %v4003_v42 = vmul.f32 -1.442695, %v3153_v20 }
0x22a2   :  { %5023 = vpow2.f32 %v4002_v26 }
0x22ab   :  { %v5022_v32 = vpop.eup %5021 }
0x22ac   :  { %3181 = vrot.lane.b32.xlu0 %v5022_v32, %s5251_s1  ;;  %v5024_v28 = vpop.eup %5023 }
0x22ad   :  { %v3157_v6 = vadd.f32 1.0, %v5024_v28 }
0x22af   :  { %5025 = vrcp.f32 %v3157_v6 }
0x22b0   :  { %5027 = vpow2.f32 %v4003_v42 }
0x22b9   :  { %v5026_v31 = vpop.eup %5025 }
0x22ba   :  { %v5028_v35 = vpop.eup %5027  ;;  %v3168_v53 = vmul.f32 %v5026_v31, %v2976_v47 }
0x22bb   :  { %v3163_v37 = vadd.f32 1.0, %v5028_v35 }
0x22bd   :  { %5029 = vrcp.f32 %v3163_v37 }
0x22c7   :  { %v5030_v9 = vpop.eup %5029 }
0x22c8   :  { %v3179_v39 = vmul.f32 %v5030_v9, %v2987_v30 }
0x2301   :  { %v3171_v46 = vpop.permute.xlu1 %3170 }
0x2302   :  { %v3173_v34 = vmul.f32 %v5026_v31, %v3171_v46 }
0x2304   :  { %3175 = vrot.lane.b32.xlu1 %v3173_v34, %s5251_s1 }
0x231e   :  { %v3182_v50 = vpop.permute.xlu0 %3181 }
0x231f   :  { %v3184_v36 = vmul.f32 %v5030_v9, %v3182_v50 }
0x2321   :  { %3186 = vrot.lane.b32.xlu0 %v3184_v36, %s5251_s1 }
0x2376   :  { %v3176_v13 = vpop.permute.xlu1 %3175 }
0x2377   :  { %v3178_v51 = vadd.f32 %v3176_v13, %v3168_v53 }
0x2379   :  { %5031 = vtanh.f32 %v3178_v51 }
0x2383   :  { %v5032_v38 = vpop.eup %5031 }
0x2384   :  { %3192 = vrot.lane.b32.xlu1 %v5032_v38, %s5251_s1 }
0x2393   :  { %v3187_v62 = vpop.permute.xlu0 %3186 }
0x2394   :  { %v3189_v33 = vadd.f32 %v3187_v62, %v3179_v39 }
0x2396   :  { %5033 = vtanh.f32 %v3189_v33 }
0x23a0   :  { %v5034_v41 = vpop.eup %5033 }
0x23a1   :  { %3198 = vrot.lane.b32.xlu0 %v5034_v41, %s5251_s1 }
0x23f6   :  { %v3193_v44 = vpop.permute.xlu1 %3192 }
0x23f7   :  { %v3195_v48 = vmul.f32 %v5026_v31, %v3193_v44 }
0x23f9   :  { %v6131_v17 = vmax.f32 %v3000_v43, %v3195_v48  ;;  %3205 = vrot.lane.b32.xlu1 %v3195_v48, %s5252_s27 }
0x2413   :  { %v3199_v11 = vpop.permute.xlu0 %3198 }
0x2414   :  { %v3201_v2 = vmul.f32 %v5030_v9, %v3199_v11 }
0x2416   :  { %v6137_v59 = vmax.f32 %v3001_v12, %v3201_v2  ;;  %3281 = vrot.lane.b32.xlu0 %v3201_v2, %s5252_s27 }
0x246b   :  { %v3206_v52 = vpop.permute.xlu1 %3205 }
0x246c   :  { %4482 = vmatmul.mubr.msk.f32.vlgmr.msra.gmra.mrb[38].mxu0 %vm377_vm1, %v3206_v52 }
0x246d   :  { %4776 = vmatpush3.bf16.msra.mxu0 %v5877_v4  ;;  %4503 = vmatprep.mubr.msk.f32.mxu0 %vm5250_vm0, %v5249_v8 }
0x246e   :  { %4777 = vmatprep.subr.bf16.mxu0 %v5248_v7 }
0x2471   :  { %4779 = vmatpush3.bf16.msra.mxu0 %v5893_v57 }
0x2472   :  { %4786 = vmatprep.subr.bf16.mxu0 %v5248_v7 }
0x2488   :  { %v3282_v54 = vpop.permute.xlu0 %3281 }
0x2489   :  { %4493 = vmatmul.mubr.msk.f32.vlgmr.msra.gmra.mrb[46].mxu1 %vm377_vm1, %v3282_v54 }
0x248a   :  { %4782 = vmatpush3.bf16.msra.mxu1 %v5911_v40  ;;  %4514 = vmatprep.mubr.msk.f32.mxu1 %vm5250_vm0, %v5249_v8 }
0x248b   :  { %4783 = vmatprep.subr.bf16.mxu1 %v5248_v7 }
0x248e   :  { %4785 = vmatpush3.bf16.msra.mxu1 %v5915_v29 }
0x248f   :  { %4792 = vmatprep.subr.bf16.mxu1 %v5248_v7 }
0x253f   :  { %v3275_v5 = vpop.f32.mrb[38].mxu0 }
0x2540   :  { %v3279_v45 = vadd.f32 %v3275_v5, %v5979_v49  ;;  %v4483_v47 = vpop.f32.mrb[39].mxu0 }
0x2542   :  { %5035 = vtanh.f32 %v3279_v45  ;;  %v4006_v3 = vmul.f32 -1.442695, %v3279_v45 }
0x254c   :  { %v5036_v58 = vpop.eup %5035 }
0x254d   :  { %3372 = vrot.lane.b32.xlu1 %v5036_v58, %s5251_s1 }
0x255c   :  { %v3351_v0 = vpop.f32.mrb[46].mxu1 }
0x255d   :  { %v3355_v63 = vadd.f32 %v3351_v0, %v5968_v1  ;;  %v4494_v30 = vpop.f32.mrb[47].mxu1 }
0x255f   :  { %5037 = vtanh.f32 %v3355_v63  ;;  %v4007_v10 = vmul.f32 -1.442695, %v3355_v63 }
0x2560   :  { %5039 = vpow2.f32 %v4006_v3 }
0x2569   :  { %v5038_v27 = vpop.eup %5037 }
0x256a   :  { %3383 = vrot.lane.b32.xlu0 %v5038_v27, %s5251_s1  ;;  %v5040_v15 = vpop.eup %5039 }
0x256b   :  { %v3359_v43 = vadd.f32 1.0, %v5040_v15 }
0x256d   :  { %5041 = vrcp.f32 %v3359_v43 }
0x256e   :  { %5043 = vpow2.f32 %v4007_v10 }
0x2577   :  { %v5042_v49 = vpop.eup %5041 }
0x2578   :  { %v5044_v14 = vpop.eup %5043  ;;  %v3370_v21 = vmul.f32 %v5042_v49, %v3178_v51 }
0x2579   :  { %v3365_v16 = vadd.f32 1.0, %v5044_v14 }
0x257b   :  { %5045 = vrcp.f32 %v3365_v16 }
0x2585   :  { %v5046_v1 = vpop.eup %5045 }
0x2586   :  { %v3381_v25 = vmul.f32 %v5046_v1, %v3189_v33 }
0x25bf   :  { %v3373_v61 = vpop.permute.xlu1 %3372 }
0x25c0   :  { %v3375_v12 = vmul.f32 %v5042_v49, %v3373_v61 }
0x25c2   :  { %3377 = vrot.lane.b32.xlu1 %v3375_v12, %s5251_s1 }
0x25dc   :  { %v3384_v56 = vpop.permute.xlu0 %3383 }
0x25dd   :  { %v3386_v19 = vmul.f32 %v5046_v1, %v3384_v56 }
0x25df   :  { %3388 = vrot.lane.b32.xlu0 %v3386_v19, %s5251_s1 }
0x2634   :  { %v3378_v23 = vpop.permute.xlu1 %3377 }
0x2635   :  { %v3380_v24 = vadd.f32 %v3378_v23, %v3370_v21 }
0x2637   :  { %5047 = vtanh.f32 %v3380_v24 }
0x2641   :  { %v5048_v20 = vpop.eup %5047 }
0x2642   :  { %3394 = vrot.lane.b32.xlu1 %v5048_v20, %s5251_s1 }
0x2651   :  { %v3389_v32 = vpop.permute.xlu0 %3388 }
0x2652   :  { %v3391_v26 = vadd.f32 %v3389_v32, %v3381_v25 }
0x2654   :  { %5049 = vtanh.f32 %v3391_v26 }
0x265e   :  { %v5050_v28 = vpop.eup %5049 }
0x265f   :  { %3400 = vrot.lane.b32.xlu0 %v5050_v28, %s5251_s1 }
0x26b4   :  { %v3395_v6 = vpop.permute.xlu1 %3394 }
0x26b5   :  { %v6162_v42 = vmul.f32 %v5042_v49, %v3395_v6 }
0x26b7   :  { %v3404_v31 = vmax.f32 %v6131_v17, %v6162_v42  ;;  %3407 = vrot.lane.b32.xlu1 %v6162_v42, %s5252_s27 }
0x26d1   :  { %v3401_v46 = vpop.permute.xlu0 %3400 }
0x26d2   :  { %v6168_v34 = vmul.f32 %v5046_v1, %v3401_v46 }
0x26d4   :  { %v3405_v35 = vmax.f32 %v6137_v59, %v6168_v34  ;;  %3483 = vrot.lane.b32.xlu0 %v6168_v34, %s5252_s27 }
0x2729   :  { %v3408_v37 = vpop.permute.xlu1 %3407 }
0x272a   :  { %4504 = vmatmul.mubr.msk.f32.vlgmr.msra.gmra.mrb[40].mxu0 %vm377_vm1, %v3408_v37 }
0x272b   :  { %4788 = vmatpush3.bf16.msra.mxu0 %v5877_v4  ;;  %4525 = vmatprep.mubr.msk.f32.mxu0 %vm5250_vm0, %v5249_v8 }
0x272c   :  { %4789 = vmatprep.subr.bf16.mxu0 %v5248_v7 }
0x272f   :  { %4791 = vmatpush3.bf16.msra.mxu0 %v5893_v57 }
0x2730   :  { %4798 = vmatprep.subr.bf16.mxu0 %v5248_v7 }
0x2746   :  { %v3484_v9 = vpop.permute.xlu0 %3483 }
0x2747   :  { %4515 = vmatmul.mubr.msk.f32.vlgmr.msra.gmra.mrb[48].mxu1 %vm377_vm1, %v3484_v9 }
0x2748   :  { %4794 = vmatpush3.bf16.msra.mxu1 %v5911_v40  ;;  %4536 = vmatprep.mubr.msk.f32.mxu1 %vm5250_vm0, %v5249_v8 }
0x2749   :  { %4795 = vmatprep.subr.bf16.mxu1 %v5248_v7 }
0x274c   :  { %4797 = vmatpush3.bf16.msra.mxu1 %v5915_v29 }
0x27fd   :  { %v3477_v4 = vpop.f32.mrb[40].mxu0 }
0x27fe   :  { %v3481_v50 = vadd.f32 %v3477_v4, %v5983_v18  ;;  %v4505_v36 = vpop.f32.mrb[41].mxu0 }
0x27ff   :  { %v3820_v36 = vld [vmem:[%s6269_s10 + $0x8] sm:$0xff] }
0x2800   :  { %5051 = vtanh.f32 %v3481_v50  ;;  %v4010_v38 = vmul.f32 -1.442695, %v3481_v50  ;;  %v3819_v50 = vld [vmem:[%s6269_s10] sm:$0xff] }
0x280a   :  { %v5052_v57 = vpop.eup %5051 }
0x280b   :  { %3574 = vrot.lane.b32.xlu1 %v5052_v57, %s5251_s1  ;;  %v3821_v57 = vld [vmem:[%s6269_s10 + $0x10] sm:$0xff] }
0x281a   :  { %v3553_v53 = vpop.f32.mrb[48].mxu1 }
0x281b   :  { %v3557_v13 = vadd.f32 %v3553_v53, %v5964_v60  ;;  %v4516_v51 = vpop.f32.mrb[49].mxu1  ;;  %v4799_v53 = vpack.c.bf16 %v3820_v36, %v3819_v50 }
0x281d   :  { %5053 = vtanh.f32 %v3557_v13  ;;  %v4011_v62 = vmul.f32 -1.442695, %v3557_v13  ;;  %v3822_v13 = vld [vmem:[%s6269_s10 + $0x18] sm:$0xff] }
0x281e   :  { %5055 = vpow2.f32 %v4010_v38  ;;  %v4802_v51 = vpack.c.bf16 %v3822_v13, %v3821_v57  ;;  %v3824_v38 = vld [vmem:[%s6269_s10 + $0x28] sm:$0xff] }
0x2827   :  { %v5054_v40 = vpop.eup %5053 }
0x2828   :  { %3585 = vrot.lane.b32.xlu0 %v5054_v40, %s5251_s1  ;;  %v5056_v39 = vpop.eup %5055  ;;  %v3823_v40 = vld [vmem:[%s6269_s10 + $0x20] sm:$0xff] }
0x2829   :  { %v3561_v29 = vadd.f32 1.0, %v5056_v39  ;;  %v4805_v39 = vpack.c.bf16 %v3824_v38, %v3823_v40 }
0x282b   :  { %5057 = vrcp.f32 %v3561_v29  ;;  %v3825_v29 = vld [vmem:[%s6269_s10 + $0x30] sm:$0xff] }
0x282c   :  { %5059 = vpow2.f32 %v4011_v62  ;;  %v3826_v62 = vld [vmem:[%s6269_s10 + $0x38] sm:$0xff] }
0x2835   :  { %v5058_v18 = vpop.eup %5057 }
0x2836   :  { %v5060_v44 = vpop.eup %5059  ;;  %v3572_v52 = vmul.f32 %v5058_v18, %v3380_v24 }
0x2837   :  { %v3567_v48 = vadd.f32 1.0, %v5060_v44 }
0x2839   :  { %5061 = vrcp.f32 %v3567_v48 }
0x2843   :  { %v5062_v60 = vpop.eup %5061 }
0x2844   :  { %v3583_v47 = vmul.f32 %v5062_v60, %v3391_v26 }
0x287d   :  { %v3575_v33 = vpop.permute.xlu1 %3574 }
0x287e   :  { %v3577_v41 = vmul.f32 %v5058_v18, %v3575_v33 }
0x2880   :  { %3579 = vrot.lane.b32.xlu1 %v3577_v41, %s5251_s1  ;;  %v4808_v41 = vpack.c.bf16 %v3826_v62, %v3825_v29 }
0x289a   :  { %v3586_v11 = vpop.permute.xlu0 %3585 }
0x289b   :  { %v3588_v2 = vmul.f32 %v5062_v60, %v3586_v11 }
0x289d   :  { %3590 = vrot.lane.b32.xlu0 %v3588_v2, %s5251_s1 }
0x28f2   :  { %v3580_v54 = vpop.permute.xlu1 %3579 }
0x28f3   :  { %v3582_v5 = vadd.f32 %v3580_v54, %v3572_v52 }
0x28f5   :  { %5063 = vtanh.f32 %v3582_v5 }
0x28ff   :  { %v5064_v45 = vpop.eup %5063 }
0x2900   :  { %3596 = vrot.lane.b32.xlu1 %v5064_v45, %s5251_s1 }
0x290f   :  { %v3591_v58 = vpop.permute.xlu0 %3590 }
0x2910   :  { %v3593_v0 = vadd.f32 %v3591_v58, %v3583_v47 }
0x2912   :  { %5065 = vtanh.f32 %v3593_v0 }
0x291c   :  { %v5066_v63 = vpop.eup %5065 }
0x291d   :  { %3602 = vrot.lane.b32.xlu0 %v5066_v63, %s5251_s1 }
0x2972   :  { %v3597_v30 = vpop.permute.xlu1 %3596 }
0x2973   :  { %v3599_v27 = vmul.f32 %v5058_v18, %v3597_v30 }
0x2975   :  { %v6198_v3 = vmax.f32 %v3404_v31, %v3599_v27  ;;  %3609 = vrot.lane.b32.xlu1 %v3599_v27, %s5252_s27 }
0x298f   :  { %v3603_v15 = vpop.permute.xlu0 %3602 }
0x2990   :  { %v3605_v43 = vmul.f32 %v5062_v60, %v3603_v15 }
0x2992   :  { %v6204_v10 = vmax.f32 %v3405_v35, %v3605_v43  ;;  %3685 = vrot.lane.b32.xlu0 %v3605_v43, %s5252_s27 }
0x29e7   :  { %v3610_v49 = vpop.permute.xlu1 %3609 }
0x29e8   :  { %4526 = vmatmul.mubr.msk.f32.vlgmr.msra.gmra.mrb[42].mxu0 %vm377_vm1, %v3610_v49 }
0x29e9   :  { %4555 = vmatprep.mubr.msk.f32.mxu0 %vm5250_vm0, %v5249_v8  ;;  %4800 = vmatpush3.bf16.msra.mxu0 %v4799_v53 }
0x29ea   :  { %4801 = vmatprep.subr.bf16.mxu0 %v5248_v7 }
0x29ed   :  { %4803 = vmatpush3.bf16.msra.mxu0 %v4802_v51 }
0x29ee   :  { %4804 = vmatprep.subr.bf16.mxu0 %v5248_v7 }
0x29f1   :  { %4806 = vmatpush3.bf16.msra.mxu0 %v4805_v39 }
0x29f2   :  { %4807 = vmatprep.subr.bf16.mxu0 %v5248_v7 }
0x29f5   :  { %4809 = vmatpush3.bf16.msra.mxu0 %v4808_v41 }
0x2a04   :  { %v3686_v17 = vpop.permute.xlu0 %3685 }
0x2a05   :  { %4537 = vmatmul.mubr.msk.f32.vlgmr.msra.gmra.mrb[50].mxu1 %vm377_vm1, %v3686_v17 }
0x2abb   :  { %v3679_v61 = vpop.f32.mrb[42].mxu0 }
0x2abc   :  { %v3683_v12 = vadd.f32 %v3679_v61, %v5987_v22  ;;  %v4527_v14 = vpop.f32.mrb[43].mxu0 }
0x2abe   :  { %5067 = vtanh.f32 %v3683_v12  ;;  %v4014_v8 = vmul.f32 -1.442695, %v3683_v12 }
0x2ac8   :  { %v5068_v16 = vpop.eup %5067 }
0x2ac9   :  { %3776 = vrot.lane.b32.xlu1 %v5068_v16, %s5251_s1 }
0x2ad8   :  { %v3755_v59 = vpop.f32.mrb[50].mxu1 }
0x2ad9   :  { %v3759_v1 = vadd.f32 %v3755_v59, %v5960_v55  ;;  %v4538_v56 = vpop.f32.mrb[51].mxu1 }
0x2adb   :  { %5069 = vtanh.f32 %v3759_v1  ;;  %v4015_v24 = vmul.f32 -1.442695, %v3759_v1 }
0x2adc   :  { %5071 = vpow2.f32 %v4014_v8 }
0x2ae5   :  { %v5070_v19 = vpop.eup %5069 }
0x2ae6   :  { %3787 = vrot.lane.b32.xlu0 %v5070_v19, %s5251_s1  ;;  %v5072_v21 = vpop.eup %5071 }
0x2ae7   :  { %v3763_v23 = vadd.f32 1.0, %v5072_v21 }
0x2ae9   :  { %5073 = vrcp.f32 %v3763_v23 }
0x2aea   :  { %5075 = vpow2.f32 %v4015_v24 }
0x2af3   :  { %v5074_v22 = vpop.eup %5073 }
0x2af4   :  { %v5076_v32 = vpop.eup %5075  ;;  %v3774_v42 = vmul.f32 %v5074_v22, %v3582_v5  ;;  %v4016_v5 = vld [vmem:[%s6270_s11] ss:$0 sm:$0xff] }
0x2af5   :  { %v3769_v26 = vadd.f32 1.0, %v5076_v32 }
0x2af7   :  { %5077 = vrcp.f32 %v3769_v26 }
0x2b01   :  { %v5078_v55 = vpop.eup %5077 }
0x2b02   :  { %v3785_v35 = vmul.f32 %v5078_v55, %v3593_v0 }
0x2b3b   :  { %v3777_v20 = vpop.permute.xlu1 %3776 }
0x2b3c   :  { %v3779_v25 = vmul.f32 %v5074_v22, %v3777_v20 }
0x2b3e   :  { %3781 = vrot.lane.b32.xlu1 %v3779_v25, %s5251_s1 }
0x2b58   :  { %v3788_v28 = vpop.permute.xlu0 %3787 }
0x2b59   :  { %v3790_v6 = vmul.f32 %v5078_v55, %v3788_v28 }
0x2b5b   :  { %3792 = vrot.lane.b32.xlu0 %v3790_v6, %s5251_s1 }
0x2bb0   :  { %v3782_v31 = vpop.permute.xlu1 %3781 }
0x2bb1   :  { %v3784_v46 = vadd.f32 %v3782_v31, %v3774_v42 }
0x2bb3   :  { %5079 = vtanh.f32 %v3784_v46 }
0x2bbd   :  { %v5080_v34 = vpop.eup %5079 }
0x2bbe   :  { %3798 = vrot.lane.b32.xlu1 %v5080_v34, %s5251_s1 }
0x2bcd   :  { %v3793_v37 = vpop.permute.xlu0 %3792 }
0x2bce   :  { %v3795_v9 = vadd.f32 %v3793_v37, %v3785_v35 }
0x2bd0   :  { %5081 = vtanh.f32 %v3795_v9 }
0x2bda   :  { %v5082_v4 = vpop.eup %5081 }
0x2bdb   :  { %3804 = vrot.lane.b32.xlu0 %v5082_v4, %s5251_s1 }
0x2c30   :  { %v3799_v18 = vpop.permute.xlu1 %3798 }
0x2c31   :  { %v3801_v33 = vmul.f32 %v5074_v22, %v3799_v18 }
0x2c33   :  { %v3808_v44 = vmax.f32 %v6198_v3, %v3801_v33 }
0x2c35   :  { %3811 = vrot.lane.b32.xlu1 %v3808_v44, %s5252_s27 }
0x2c4d   :  { %v3805_v48 = vpop.permute.xlu0 %3804 }
0x2c4e   :  { %v3807_v60 = vmul.f32 %v5078_v55, %v3805_v48 }
0x2c50   :  { %v3809_v11 = vmax.f32 %v6204_v10, %v3807_v60 }
0x2c52   :  { %3815 = vrot.lane.b32.xlu0 %v3809_v11, %s5253_s4 }
0x2ca7   :  { %v3812_v2 = vpop.permute.xlu1 %3811 }
0x2cc4   :  { %v3816_v52 = vpop.permute.xlu0 %3815 }
0x2cc5   :  { %v3818_v54 = vsel %vm377_vm1, %v3812_v2, %v3816_v52 }
0x2cc6   :  { %4556 = vmatmul.mubr.msk.f32.vlgmr.msra.gmra.mrb[44].mxu0 %vm2068_vm3, %v3818_v54 }
0x2d99   :  { %v3903_v7 = vpop.f32.mrb[44].mxu0 }
0x2d9a   :  { %v3904_v45 = vadd.f32 %v4016_v5, %v3903_v7  ;;  %v4557_v47 = vpop.f32.mrb[45].mxu0 }
0x2d9c   :  { %3907 = vst.msk [vmem:[%s6271_s12] sm:$0xff] %vm377_vm1, %v3904_v45 }
0x2d9d   :  { %3912 = vsyncpa [#allocation5], 1 }
0x2d9e   :  { %3913 = vsyncpa [#allocation9], 1 }
0x2d9f   :  { %3914 = vsyncpa [#allocation12], 1 }
0x2da0   :  { %3915 = vsyncpa [#allocation15], 1 }
0x2da1   :  { %3916 = vsyncpa [#allocation6], 1 }

</bundles_post_ra>
